<compile_context>
chip_gen: v7x
topology: tpu7x:2x2x1
jax: 0.10.0
libtpu: 0.0.40
codegen_flags: <defaults>
</compile_context>

<pallas_src>
import math
import functools

import jax
import jax.numpy as jnp
from jax.experimental import pallas as pl
from jax.experimental.pallas import tpu as pltpu

VMEM = pltpu.MemorySpace.VMEM

# ----------------------------- model configuration -----------------------------

# OPS table mimicking input_container.OPS; op_code[i] selects the op for layer i.
OPS_TABLE = [
    [dict(expand=1, out=24), dict(expand=3, out=24), dict(expand=6, out=24)],
    [dict(expand=1, out=32), dict(expand=3, out=32), dict(expand=2, out=32)],
]
OP_CODE = [1, 2]
LAST_CHANNEL = 64
N_CLASS = 10
INPUT_SIZE = 16          # small ImageNet-like test resolution (stride-2 stem -> 8x8)
CPAD = 128               # every channel dim zero-padded to the 128-lane width
KSTEM = 3 * 3 * 3        # stem im2col depth (27)
KSTEM_PAD = 32           # padded to a sublane multiple


def _use_res_list():
    cin, res = 24, []
    for layer_idx, code in enumerate(OP_CODE):
        cout = OPS_TABLE[layer_idx][code]["out"]
        res.append(cin == cout)
        cin = cout
    return tuple(res)


USE_RES = _use_res_list()


# ----------------------------- in-kernel helpers ------------------------------

def _dw3x3_relu6(h, w9, b):
    """Depthwise 3x3 (pad=1, stride=1) + BN shift + ReLU6, register-resident.

    h: (N, H, W, C) f32, w9: (9, C) f32 (BN scale folded), b: broadcastable BN shift.
    H-shifts are static slices on a major (untiled) dim; W-shifts are sublane rolls on
    the XLU masked at the boundary with a broadcasted_iota -> no padded VMEM scratch.
    """
    N, H, W, C = h.shape
    col = jax.lax.broadcasted_iota(jnp.int32, (1, 1, W, C), 2)
    keep_shift_left = col < (W - 1)    # tap dj=+1: wrapped-around last column is invalid
    keep_shift_right = col > 0         # tap dj=-1: wrapped-around first column is invalid
    zrow = jnp.zeros((N, 1, W, C), h.dtype)
    acc = jnp.zeros_like(h)
    for di in (-1, 0, 1):
        if di == -1:                                   # shifted[i] = h[i-1]
            hh = jnp.concatenate([zrow, h[:, : H - 1]], axis=1)
        elif di == 1:                                  # shifted[i] = h[i+1]
            hh = jnp.concatenate([h[:, 1:], zrow], axis=1)
        else:
            hh = h
        for dj in (-1, 0, 1):
            if dj == 1:                                # shifted[j] = hh[j+1]
                sh = jnp.where(keep_shift_left, pltpu.roll(hh, shift=W - 1, axis=2), 0.0)
            elif dj == -1:                             # shifted[j] = hh[j-1]
                sh = jnp.where(keep_shift_right, pltpu.roll(hh, shift=1, axis=2), 0.0)
            else:
                sh = hh
            acc = acc + sh * w9[(di + 1) * 3 + (dj + 1)]
    return jnp.clip(acc + b, 0.0, 6.0)


# ------------------------------- fused kernel ---------------------------------

def fused_net_kernel(cols_ref, stem_w_ref, stem_b_ref,
                     sep_dw_w_ref, sep_dw_b_ref, sep_pw_w_ref, sep_pw_b_ref,
                     blk_exp_w_ref, blk_exp_b_ref, blk_dw_w_ref, blk_dw_b_ref,
                     blk_proj_w_ref, blk_proj_b_ref,
                     cbp_w_ref, cbp_b_ref, fc_w_ref, fc_b_ref,
                     o_ref, *, N, H, W, use_res):
    M = N * H * W
    C = stem_w_ref.shape[1]                                    # 128 (lane-dense)

    # --- stem0: Conv3x3 s2 (as im2col matmul, BN scale folded) + shift + ReLU6 ---
    x = jnp.dot(cols_ref[...], stem_w_ref[...], preferred_element_type=jnp.float32)
    x = jnp.clip(x + stem_b_ref[...], 0.0, 6.0)                # (M, C) f32

    # --- separable_conv: dw3x3 + BN + ReLU6, then pw + BN ---
    d = _dw3x3_relu6(x.reshape(N, H, W, C), sep_dw_w_ref[...], sep_dw_b_ref[...])
    x = jnp.dot(d.reshape(M, C).astype(jnp.bfloat16), sep_pw_w_ref[...],
                preferred_element_type=jnp.float32) + sep_pw_b_ref[...]

    # --- mb_module: MBConv blocks (expanded hidden never leaves vregs/VMEM) ---
    for i in range(len(use_res)):
        h = jnp.dot(x.astype(jnp.bfloat16), blk_exp_w_ref[i],
                    preferred_element_type=jnp.float32) + blk_exp_b_ref[i]
        h = jnp.clip(h, 0.0, 6.0)                              # expand + BN + ReLU6
        dh = _dw3x3_relu6(h.reshape(N, H, W, C), blk_dw_w_ref[i], blk_dw_b_ref[i])
        y = jnp.dot(dh.reshape(M, C).astype(jnp.bfloat16), blk_proj_w_ref[i],
                    preferred_element_type=jnp.float32) + blk_proj_b_ref[i]
        x = y + x if use_res[i] else y                         # inverted-residual skip

    # --- conv_before_pooling + ReLU6, global pool (scale folded into fc), classifier ---
    y = jnp.dot(x.astype(jnp.bfloat16), cbp_w_ref[...],
                preferred_element_type=jnp.float32) + cbp_b_ref[...]
    y = jnp.clip(y, 0.0, 6.0)
    yr = y.reshape(N, H * W, C)
    pooled = jnp.concatenate(                                  # sum; 1/(H*W) folded in fc_w
        [jnp.sum(yr[n], axis=0, keepdims=True) for n in range(N)], axis=0)
    logits = jnp.dot(pooled, fc_w_ref[...],
                     preferred_element_type=jnp.float32) + fc_b_ref[...]
    o_ref[...] = logits


# ------------------------------- host wrappers --------------------------------

def _im2col_stem(x_nhwc, stride=2, pad=1, k=3):
    # im2col for the tiny stem (Cin=3) in XLA; negligible at this size.
    N, H, W, Cin = x_nhwc.shape
    Ho = (H + 2 * pad - k) // stride + 1
    Wo = (W + 2 * pad - k) // stride + 1
    xp = jnp.pad(x_nhwc, ((0, 0), (pad, pad), (pad, pad), (0, 0)))
    patches = []
    for di in range(k):
        for dj in range(k):
            patches.append(xp[:, di:di + Ho * stride:stride, dj:dj + Wo * stride:stride, :])
    cols = jnp.stack(patches, axis=3).reshape(N * Ho * Wo, k * k * Cin)
    cols = jnp.pad(cols, ((0, 0), (0, KSTEM_PAD - k * k * Cin)))
    return cols.astype(jnp.bfloat16), Ho, Wo


def forward(params, x_nchw):
    x = jnp.transpose(x_nchw, (0, 2, 3, 1)).astype(jnp.float32)     # NCHW -> NHWC
    N = x.shape[0]
    cols, Ho, Wo = _im2col_stem(x)
    args = (cols,
            params["stem_w"], params["stem_b"],
            params["sep_dw_w"], params["sep_dw_b"], params["sep_pw_w"], params["sep_pw_b"],
            params["blk_exp_w"], params["blk_exp_b"], params["blk_dw_w"], params["blk_dw_b"],
            params["blk_proj_w"], params["blk_proj_b"],
            params["cbp_w"], params["cbp_b"], params["fc_w"], params["fc_b"])
    logits = pl.pallas_call(
        functools.partial(fused_net_kernel, N=N, H=Ho, W=Wo, use_res=USE_RES),
        out_shape=jax.ShapeDtypeStruct((N, CPAD), jnp.float32),
        in_specs=[pl.BlockSpec(memory_space=VMEM)] * len(args),
        out_specs=pl.BlockSpec(memory_space=VMEM),
    )(*args)
    return logits[:, :N_CLASS]


# ------------------------------- parameter setup -------------------------------

def conv_weight(key, cout, cin, kh, kw):
    # matches Imagenet_Models._initialize_weights for nn.Conv2d
    n = kh * kw * cout
    return jax.random.normal(key, (cout, cin, kh, kw), jnp.float32) * math.sqrt(2.0 / n)


def bn_affine(c, eps=1e-5):
    # BN folded to inference-mode affine: gamma=1, beta=0, running_mean=0, running_var=1
    scale = jnp.full((c,), 1.0 / math.sqrt(1.0 + eps), jnp.float32)
    shift = jnp.zeros((c,), jnp.float32)
    return scale, shift


def pw_weight(key, cout, cin):
    w = conv_weight(key, cout, cin, 1, 1)                 # (cout, cin, 1, 1)
    return w[:, :, 0, 0].T                                # (cin, cout)


def dw_weight(key, c):
    w = conv_weight(key, c, 1, 3, 3)                      # (c, 1, 3, 3), groups=c
    return jnp.transpose(w[:, 0], (1, 2, 0)).reshape(9, c)   # (9, c), row = kh*3+kw


def full_conv_weight(key, cout, cin, k):
    w = conv_weight(key, cout, cin, k, k)                 # (cout, cin, k, k)
    return jnp.transpose(w, (2, 3, 1, 0)).reshape(k * k * cin, cout)


def _pad2(w, rows, cols):
    return jnp.pad(w, ((0, rows - w.shape[0]), (0, cols - w.shape[1])))


def _pad_bias(b):
    return jnp.pad(b, (0, CPAD - b.shape[0]))


def init_params(key, input_size=INPUT_SIZE):
    ks = iter(jax.random.split(key, 32))
    p = {}
    # stem0 (BN scale folded into the weight columns, BN shift kept as a bias)
    s, b = bn_affine(16)
    p["stem_w"] = _pad2(full_conv_weight(next(ks), 16, 3, 3) * s[None, :],
                        KSTEM_PAD, CPAD).astype(jnp.bfloat16)
    p["stem_b"] = _pad_bias(b).reshape(1, CPAD)
    # separable_conv
    s, b = bn_affine(16)
    p["sep_dw_w"] = _pad2(dw_weight(next(ks), 16) * s[None, :], 9, CPAD)
    p["sep_dw_b"] = _pad_bias(b).reshape(1, CPAD)
    s, b = bn_affine(24)
    p["sep_pw_w"] = _pad2(pw_weight(next(ks), 24, 16) * s[None, :], CPAD, CPAD).astype(jnp.bfloat16)
    p["sep_pw_b"] = _pad_bias(b).reshape(1, CPAD)
    # mb_module (stacked; every block padded to the same 128-wide shapes)
    cin = 24
    exp_w, exp_b, dw_w, dw_b, proj_w, proj_b = [], [], [], [], [], []
    for layer_idx, code in enumerate(OP_CODE):
        cfg = OPS_TABLE[layer_idx][code]
        hidden, cout = cin * cfg["expand"], cfg["out"]
        s, b = bn_affine(hidden)
        exp_w.append(_pad2(pw_weight(next(ks), hidden, cin) * s[None, :], CPAD, CPAD))
        exp_b.append(_pad_bias(b))
        s, b = bn_affine(hidden)
        dw_w.append(_pad2(dw_weight(next(ks), hidden) * s[None, :], 9, CPAD))
        dw_b.append(_pad_bias(b))
        s, b = bn_affine(cout)
        proj_w.append(_pad2(pw_weight(next(ks), cout, hidden) * s[None, :], CPAD, CPAD))
        proj_b.append(_pad_bias(b))
        cin = cout
    p["blk_exp_w"] = jnp.stack(exp_w).astype(jnp.bfloat16)    # (nblk, 128, 128)
    p["blk_exp_b"] = jnp.stack(exp_b)                         # (nblk, 128) f32
    p["blk_dw_w"] = jnp.stack(dw_w)                           # (nblk, 9, 128) f32
    p["blk_dw_b"] = jnp.stack(dw_b)
    p["blk_proj_w"] = jnp.stack(proj_w).astype(jnp.bfloat16)
    p["blk_proj_b"] = jnp.stack(proj_b)
    # conv_before_pooling
    s, b = bn_affine(LAST_CHANNEL)
    p["cbp_w"] = _pad2(pw_weight(next(ks), LAST_CHANNEL, cin) * s[None, :],
                       CPAD, CPAD).astype(jnp.bfloat16)
    p["cbp_b"] = _pad_bias(b).reshape(1, CPAD)
    # classifier Linear(last_channel, n_class): uniform(-1/sqrt(n_class), ...), bias 0.
    # The 1/(H*W) global-average-pool scale is folded into the weight.
    r = 1.0 / math.sqrt(N_CLASS)
    fc_w = jax.random.uniform(next(ks), (N_CLASS, LAST_CHANNEL), jnp.float32, -r, r)
    ho = (input_size + 2 - 3) // 2 + 1                        # spatial after the stride-2 stem
    p["fc_w"] = _pad2(fc_w.T / float(ho * ho), CPAD, CPAD)    # (128, 128) f32
    p["fc_b"] = jnp.zeros((1, CPAD), jnp.float32)
    return p


# ----------------------------------- main --------------------------------------

if __name__ == "__main__":
    key = jax.random.PRNGKey(0)
    pkey, xkey = jax.random.split(key)
    params = init_params(pkey)

    # small ImageNet-like input: batch=2, 3 channels, 16x16 spatial (NCHW like PyTorch)
    x = jax.random.normal(xkey, (2, 3, INPUT_SIZE, INPUT_SIZE), jnp.float32)

    fwd = jax.jit(lambda inp: forward(params, inp))
    out = jax.block_until_ready(fwd(x))
    assert out.shape == (2, N_CLASS) and out.dtype == jnp.float32
    assert bool(jnp.all(jnp.isfinite(out)))
    print("KERNEL_OK")
</pallas_src>

<mosaic_0001>
module attributes {stable_mosaic.version = 11 : i64} {
  func.func @fused_net_kernel(%arg0: memref<128x32xbf16, #tpu.memory_space<vmem>>, %arg1: memref<32x128xbf16, #tpu.memory_space<vmem>>, %arg2: memref<1x128xf32, #tpu.memory_space<vmem>>, %arg3: memref<9x128xf32, #tpu.memory_space<vmem>>, %arg4: memref<1x128xf32, #tpu.memory_space<vmem>>, %arg5: memref<128x128xbf16, #tpu.memory_space<vmem>>, %arg6: memref<1x128xf32, #tpu.memory_space<vmem>>, %arg7: memref<2x128x128xbf16, #tpu.memory_space<vmem>>, %arg8: memref<2x128xf32, #tpu.memory_space<vmem>>, %arg9: memref<2x9x128xf32, #tpu.memory_space<vmem>>, %arg10: memref<2x128xf32, #tpu.memory_space<vmem>>, %arg11: memref<2x128x128xbf16, #tpu.memory_space<vmem>>, %arg12: memref<2x128xf32, #tpu.memory_space<vmem>>, %arg13: memref<128x128xbf16, #tpu.memory_space<vmem>>, %arg14: memref<1x128xf32, #tpu.memory_space<vmem>>, %arg15: memref<128x128xf32, #tpu.memory_space<vmem>>, %arg16: memref<1x128xf32, #tpu.memory_space<vmem>>, %arg17: memref<2x128xf32, #tpu.memory_space<vmem>>) attributes {dimension_semantics = [], scalar_prefetch = 0 : i64, scratch_operands = 0 : i64, tpu.core_type = #tpu.core_type<tc>} {
    %c0 = arith.constant 0 : index
    %c0_0 = arith.constant 0 : index
    %0 = vector.load %arg0[%c0, %c0_0] : memref<128x32xbf16, #tpu.memory_space<vmem>>, vector<128x32xbf16>
    %c0_1 = arith.constant 0 : index
    %c0_2 = arith.constant 0 : index
    %1 = vector.load %arg1[%c0_1, %c0_2] : memref<32x128xbf16, #tpu.memory_space<vmem>>, vector<32x128xbf16>
    %cst = arith.constant dense<0.000000e+00> : vector<128x128xf32>
    %2 = tpu.matmul %0, %1, %cst {dimension_numbers = #tpu.dot_dimension_numbers<[1], [0], [0], [1], [0, 0, 1, 1], [], []>} : vector<128x32xbf16>, vector<32x128xbf16>, vector<128x128xf32> -> vector<128x128xf32>
    %c0_3 = arith.constant 0 : index
    %c0_4 = arith.constant 0 : index
    %3 = vector.load %arg2[%c0_3, %c0_4] : memref<1x128xf32, #tpu.memory_space<vmem>>, vector<1x128xf32>
    %4 = vector.broadcast %3 : vector<1x128xf32> to vector<128x128xf32>
    %5 = arith.addf %2, %4 : vector<128x128xf32>
    %cst_5 = arith.constant 0.000000e+00 : f32
    %cst_6 = arith.constant 6.000000e+00 : f32
    %6 = vector.broadcast %cst_5 : f32 to vector<128x128xf32>
    %7 = arith.maximumf %6, %5 : vector<128x128xf32>
    %8 = vector.broadcast %cst_6 : f32 to vector<128x128xf32>
    %9 = arith.minimumf %8, %7 : vector<128x128xf32>
    %10 = vector.shape_cast %9 : vector<128x128xf32> to vector<2x8x8x128xf32>
    %c0_7 = arith.constant 0 : index
    %c0_8 = arith.constant 0 : index
    %11 = vector.load %arg3[%c0_7, %c0_8] : memref<9x128xf32, #tpu.memory_space<vmem>>, vector<9x128xf32>
    %c0_9 = arith.constant 0 : index
    %c0_10 = arith.constant 0 : index
    %12 = vector.load %arg4[%c0_9, %c0_10] : memref<1x128xf32, #tpu.memory_space<vmem>>, vector<1x128xf32>
    %13 = tpu.iota {dimensions = array<i32: 2>} : vector<1x1x8x128xi32>
    %c7_i32 = arith.constant 7 : i32
    %14 = vector.broadcast %c7_i32 : i32 to vector<1x1x8x128xi32>
    %15 = arith.cmpi slt, %13, %14 : vector<1x1x8x128xi32>
    %c0_i32 = arith.constant 0 : i32
    %16 = vector.broadcast %c0_i32 : i32 to vector<1x1x8x128xi32>
    %17 = arith.cmpi sgt, %13, %16 : vector<1x1x8x128xi32>
    %cst_11 = arith.constant 0.000000e+00 : f32
    %18 = vector.broadcast %cst_11 : f32 to vector<2x1x8x128xf32>
    %cst_12 = arith.constant 0.000000e+00 : f32
    %19 = vector.broadcast %cst_12 : f32 to vector<2x8x8x128xf32>
    %20 = vector.extract_strided_slice %10 {offsets = [0, 0, 0, 0], sizes = [2, 7, 8, 128], strides = [1, 1, 1, 1]} : vector<2x8x8x128xf32> to vector<2x7x8x128xf32>
    %21 = tpu.concatenate %18, %20 in 1 : vector<2x1x8x128xf32>, vector<2x7x8x128xf32> -> vector<2x8x8x128xf32>
    %c1_i32 = arith.constant 1 : i32
    %22 = tpu.dynamic_rotate %21 by %c1_i32 dim 2 : vector<2x8x8x128xf32>, i32 -> vector<2x8x8x128xf32>
    %cst_13 = arith.constant 0.000000e+00 : f32
    %23 = vector.shape_cast %17 : vector<1x1x8x128xi1> to vector<1x1x8x128xi1>
    %24 = vector.broadcast %23 : vector<1x1x8x128xi1> to vector<2x8x8x128xi1>
    %25 = vector.broadcast %cst_13 : f32 to vector<2x8x8x128xf32>
    %26 = arith.select %24, %22, %25 : vector<2x8x8x128xi1>, vector<2x8x8x128xf32>
    %27 = vector.extract_strided_slice %11 {offsets = [0, 0], sizes = [1, 128], strides = [1, 1]} : vector<9x128xf32> to vector<1x128xf32>
    %28 = vector.shape_cast %27 : vector<1x128xf32> to vector<128xf32>
    %29 = vector.shape_cast %28 : vector<128xf32> to vector<1x1x1x128xf32>
    %30 = vector.broadcast %29 : vector<1x1x1x128xf32> to vector<2x8x8x128xf32>
    %31 = arith.mulf %26, %30 : vector<2x8x8x128xf32>
    %32 = arith.addf %19, %31 : vector<2x8x8x128xf32>
    %33 = vector.extract_strided_slice %11 {offsets = [1, 0], sizes = [1, 128], strides = [1, 1]} : vector<9x128xf32> to vector<1x128xf32>
    %34 = vector.shape_cast %33 : vector<1x128xf32> to vector<128xf32>
    %35 = vector.shape_cast %34 : vector<128xf32> to vector<1x1x1x128xf32>
    %36 = vector.broadcast %35 : vector<1x1x1x128xf32> to vector<2x8x8x128xf32>
    %37 = arith.mulf %21, %36 : vector<2x8x8x128xf32>
    %38 = arith.addf %32, %37 : vector<2x8x8x128xf32>
    %c7_i32_14 = arith.constant 7 : i32
    %39 = tpu.dynamic_rotate %21 by %c7_i32_14 dim 2 : vector<2x8x8x128xf32>, i32 -> vector<2x8x8x128xf32>
    %cst_15 = arith.constant 0.000000e+00 : f32
    %40 = vector.shape_cast %15 : vector<1x1x8x128xi1> to vector<1x1x8x128xi1>
    %41 = vector.broadcast %40 : vector<1x1x8x128xi1> to vector<2x8x8x128xi1>
    %42 = vector.broadcast %cst_15 : f32 to vector<2x8x8x128xf32>
    %43 = arith.select %41, %39, %42 : vector<2x8x8x128xi1>, vector<2x8x8x128xf32>
    %44 = vector.extract_strided_slice %11 {offsets = [2, 0], sizes = [1, 128], strides = [1, 1]} : vector<9x128xf32> to vector<1x128xf32>
    %45 = vector.shape_cast %44 : vector<1x128xf32> to vector<128xf32>
    %46 = vector.shape_cast %45 : vector<128xf32> to vector<1x1x1x128xf32>
    %47 = vector.broadcast %46 : vector<1x1x1x128xf32> to vector<2x8x8x128xf32>
    %48 = arith.mulf %43, %47 : vector<2x8x8x128xf32>
    %49 = arith.addf %38, %48 : vector<2x8x8x128xf32>
    %c1_i32_16 = arith.constant 1 : i32
    %50 = tpu.dynamic_rotate %10 by %c1_i32_16 dim 2 : vector<2x8x8x128xf32>, i32 -> vector<2x8x8x128xf32>
    %cst_17 = arith.constant 0.000000e+00 : f32
    %51 = vector.shape_cast %17 : vector<1x1x8x128xi1> to vector<1x1x8x128xi1>
    %52 = vector.broadcast %51 : vector<1x1x8x128xi1> to vector<2x8x8x128xi1>
    %53 = vector.broadcast %cst_17 : f32 to vector<2x8x8x128xf32>
    %54 = arith.select %52, %50, %53 : vector<2x8x8x128xi1>, vector<2x8x8x128xf32>
    %55 = vector.extract_strided_slice %11 {offsets = [3, 0], sizes = [1, 128], strides = [1, 1]} : vector<9x128xf32> to vector<1x128xf32>
    %56 = vector.shape_cast %55 : vector<1x128xf32> to vector<128xf32>
    %57 = vector.shape_cast %56 : vector<128xf32> to vector<1x1x1x128xf32>
    %58 = vector.broadcast %57 : vector<1x1x1x128xf32> to vector<2x8x8x128xf32>
    %59 = arith.mulf %54, %58 : vector<2x8x8x128xf32>
    %60 = arith.addf %49, %59 : vector<2x8x8x128xf32>
    %61 = vector.extract_strided_slice %11 {offsets = [4, 0], sizes = [1, 128], strides = [1, 1]} : vector<9x128xf32> to vector<1x128xf32>
    %62 = vector.shape_cast %61 : vector<1x128xf32> to vector<128xf32>
    %63 = vector.shape_cast %62 : vector<128xf32> to vector<1x1x1x128xf32>
    %64 = vector.broadcast %63 : vector<1x1x1x128xf32> to vector<2x8x8x128xf32>
    %65 = arith.mulf %10, %64 : vector<2x8x8x128xf32>
    %66 = arith.addf %60, %65 : vector<2x8x8x128xf32>
    %c7_i32_18 = arith.constant 7 : i32
    %67 = tpu.dynamic_rotate %10 by %c7_i32_18 dim 2 : vector<2x8x8x128xf32>, i32 -> vector<2x8x8x128xf32>
    %cst_19 = arith.constant 0.000000e+00 : f32
    %68 = vector.shape_cast %15 : vector<1x1x8x128xi1> to vector<1x1x8x128xi1>
    %69 = vector.broadcast %68 : vector<1x1x8x128xi1> to vector<2x8x8x128xi1>
    %70 = vector.broadcast %cst_19 : f32 to vector<2x8x8x128xf32>
    %71 = arith.select %69, %67, %70 : vector<2x8x8x128xi1>, vector<2x8x8x128xf32>
    %72 = vector.extract_strided_slice %11 {offsets = [5, 0], sizes = [1, 128], strides = [1, 1]} : vector<9x128xf32> to vector<1x128xf32>
    %73 = vector.shape_cast %72 : vector<1x128xf32> to vector<128xf32>
    %74 = vector.shape_cast %73 : vector<128xf32> to vector<1x1x1x128xf32>
    %75 = vector.broadcast %74 : vector<1x1x1x128xf32> to vector<2x8x8x128xf32>
    %76 = arith.mulf %71, %75 : vector<2x8x8x128xf32>
    %77 = arith.addf %66, %76 : vector<2x8x8x128xf32>
    %78 = vector.extract_strided_slice %10 {offsets = [0, 1, 0, 0], sizes = [2, 7, 8, 128], strides = [1, 1, 1, 1]} : vector<2x8x8x128xf32> to vector<2x7x8x128xf32>
    %79 = tpu.concatenate %78, %18 in 1 : vector<2x7x8x128xf32>, vector<2x1x8x128xf32> -> vector<2x8x8x128xf32>
    %c1_i32_20 = arith.constant 1 : i32
    %80 = tpu.dynamic_rotate %79 by %c1_i32_20 dim 2 : vector<2x8x8x128xf32>, i32 -> vector<2x8x8x128xf32>
    %cst_21 = arith.constant 0.000000e+00 : f32
    %81 = vector.shape_cast %17 : vector<1x1x8x128xi1> to vector<1x1x8x128xi1>
    %82 = vector.broadcast %81 : vector<1x1x8x128xi1> to vector<2x8x8x128xi1>
    %83 = vector.broadcast %cst_21 : f32 to vector<2x8x8x128xf32>
    %84 = arith.select %82, %80, %83 : vector<2x8x8x128xi1>, vector<2x8x8x128xf32>
    %85 = vector.extract_strided_slice %11 {offsets = [6, 0], sizes = [1, 128], strides = [1, 1]} : vector<9x128xf32> to vector<1x128xf32>
    %86 = vector.shape_cast %85 : vector<1x128xf32> to vector<128xf32>
    %87 = vector.shape_cast %86 : vector<128xf32> to vector<1x1x1x128xf32>
    %88 = vector.broadcast %87 : vector<1x1x1x128xf32> to vector<2x8x8x128xf32>
    %89 = arith.mulf %84, %88 : vector<2x8x8x128xf32>
    %90 = arith.addf %77, %89 : vector<2x8x8x128xf32>
    %91 = vector.extract_strided_slice %11 {offsets = [7, 0], sizes = [1, 128], strides = [1, 1]} : vector<9x128xf32> to vector<1x128xf32>
    %92 = vector.shape_cast %91 : vector<1x128xf32> to vector<128xf32>
    %93 = vector.shape_cast %92 : vector<128xf32> to vector<1x1x1x128xf32>
    %94 = vector.broadcast %93 : vector<1x1x1x128xf32> to vector<2x8x8x128xf32>
    %95 = arith.mulf %79, %94 : vector<2x8x8x128xf32>
    %96 = arith.addf %90, %95 : vector<2x8x8x128xf32>
    %c7_i32_22 = arith.constant 7 : i32
    %97 = tpu.dynamic_rotate %79 by %c7_i32_22 dim 2 : vector<2x8x8x128xf32>, i32 -> vector<2x8x8x128xf32>
    %cst_23 = arith.constant 0.000000e+00 : f32
    %98 = vector.shape_cast %15 : vector<1x1x8x128xi1> to vector<1x1x8x128xi1>
    %99 = vector.broadcast %98 : vector<1x1x8x128xi1> to vector<2x8x8x128xi1>
    %100 = vector.broadcast %cst_23 : f32 to vector<2x8x8x128xf32>
    %101 = arith.select %99, %97, %100 : vector<2x8x8x128xi1>, vector<2x8x8x128xf32>
    %102 = vector.extract_strided_slice %11 {offsets = [8, 0], sizes = [1, 128], strides = [1, 1]} : vector<9x128xf32> to vector<1x128xf32>
    %103 = vector.shape_cast %102 : vector<1x128xf32> to vector<128xf32>
    %104 = vector.shape_cast %103 : vector<128xf32> to vector<1x1x1x128xf32>
    %105 = vector.broadcast %104 : vector<1x1x1x128xf32> to vector<2x8x8x128xf32>
    %106 = arith.mulf %101, %105 : vector<2x8x8x128xf32>
    %107 = arith.addf %96, %106 : vector<2x8x8x128xf32>
    %108 = vector.shape_cast %12 : vector<1x128xf32> to vector<1x1x1x128xf32>
    %109 = vector.broadcast %108 : vector<1x1x1x128xf32> to vector<2x8x8x128xf32>
    %110 = arith.addf %107, %109 : vector<2x8x8x128xf32>
    %cst_24 = arith.constant 0.000000e+00 : f32
    %cst_25 = arith.constant 6.000000e+00 : f32
    %111 = vector.broadcast %cst_24 : f32 to vector<2x8x8x128xf32>
    %112 = arith.maximumf %111, %110 : vector<2x8x8x128xf32>
    %113 = vector.broadcast %cst_25 : f32 to vector<2x8x8x128xf32>
    %114 = arith.minimumf %113, %112 : vector<2x8x8x128xf32>
    %115 = vector.shape_cast %114 : vector<2x8x8x128xf32> to vector<128x128xf32>
    %116 = arith.truncf %115 : vector<128x128xf32> to vector<128x128xbf16>
    %c0_26 = arith.constant 0 : index
    %c0_27 = arith.constant 0 : index
    %117 = vector.load %arg5[%c0_26, %c0_27] : memref<128x128xbf16, #tpu.memory_space<vmem>>, vector<128x128xbf16>
    %cst_28 = arith.constant dense<0.000000e+00> : vector<128x128xf32>
    %118 = tpu.matmul %116, %117, %cst_28 {dimension_numbers = #tpu.dot_dimension_numbers<[1], [0], [0], [1], [0, 0, 1, 1], [], []>} : vector<128x128xbf16>, vector<128x128xbf16>, vector<128x128xf32> -> vector<128x128xf32>
    %c0_29 = arith.constant 0 : index
    %c0_30 = arith.constant 0 : index
    %119 = vector.load %arg6[%c0_29, %c0_30] : memref<1x128xf32, #tpu.memory_space<vmem>>, vector<1x128xf32>
    %120 = vector.broadcast %119 : vector<1x128xf32> to vector<128x128xf32>
    %121 = arith.addf %118, %120 : vector<128x128xf32>
    %122 = arith.truncf %121 : vector<128x128xf32> to vector<128x128xbf16>
    %c0_31 = arith.constant 0 : index
    %c0_32 = arith.constant 0 : index
    %c0_33 = arith.constant 0 : index
    %123 = vector.load %arg7[%c0_31, %c0_32, %c0_33] : memref<2x128x128xbf16, #tpu.memory_space<vmem>>, vector<1x128x128xbf16>
    %124 = vector.shape_cast %123 : vector<1x128x128xbf16> to vector<128x128xbf16>
    %cst_34 = arith.constant dense<0.000000e+00> : vector<128x128xf32>
    %125 = tpu.matmul %122, %124, %cst_34 {dimension_numbers = #tpu.dot_dimension_numbers<[1], [0], [0], [1], [0, 0, 1, 1], [], []>} : vector<128x128xbf16>, vector<128x128xbf16>, vector<128x128xf32> -> vector<128x128xf32>
    %c0_35 = arith.constant 0 : index
    %c0_36 = arith.constant 0 : index
    %126 = vector.load %arg8[%c0_35, %c0_36] : memref<2x128xf32, #tpu.memory_space<vmem>>, vector<1x128xf32>
    %127 = vector.shape_cast %126 : vector<1x128xf32> to vector<128xf32>
    %128 = vector.shape_cast %127 : vector<128xf32> to vector<1x128xf32>
    %129 = vector.broadcast %128 : vector<1x128xf32> to vector<128x128xf32>
    %130 = arith.addf %125, %129 : vector<128x128xf32>
    %cst_37 = arith.constant 0.000000e+00 : f32
    %cst_38 = arith.constant 6.000000e+00 : f32
    %131 = vector.broadcast %cst_37 : f32 to vector<128x128xf32>
    %132 = arith.maximumf %131, %130 : vector<128x128xf32>
    %133 = vector.broadcast %cst_38 : f32 to vector<128x128xf32>
    %134 = arith.minimumf %133, %132 : vector<128x128xf32>
    %135 = vector.shape_cast %134 : vector<128x128xf32> to vector<2x8x8x128xf32>
    %c0_39 = arith.constant 0 : index
    %c0_40 = arith.constant 0 : index
    %c0_41 = arith.constant 0 : index
    %136 = vector.load %arg9[%c0_39, %c0_40, %c0_41] : memref<2x9x128xf32, #tpu.memory_space<vmem>>, vector<1x9x128xf32>
    %137 = vector.shape_cast %136 : vector<1x9x128xf32> to vector<9x128xf32>
    %c0_42 = arith.constant 0 : index
    %c0_43 = arith.constant 0 : index
    %138 = vector.load %arg10[%c0_42, %c0_43] : memref<2x128xf32, #tpu.memory_space<vmem>>, vector<1x128xf32>
    %139 = vector.shape_cast %138 : vector<1x128xf32> to vector<128xf32>
    %140 = tpu.iota {dimensions = array<i32: 2>} : vector<1x1x8x128xi32>
    %c7_i32_44 = arith.constant 7 : i32
    %141 = vector.broadcast %c7_i32_44 : i32 to vector<1x1x8x128xi32>
    %142 = arith.cmpi slt, %140, %141 : vector<1x1x8x128xi32>
    %c0_i32_45 = arith.constant 0 : i32
    %143 = vector.broadcast %c0_i32_45 : i32 to vector<1x1x8x128xi32>
    %144 = arith.cmpi sgt, %140, %143 : vector<1x1x8x128xi32>
    %cst_46 = arith.constant 0.000000e+00 : f32
    %145 = vector.broadcast %cst_46 : f32 to vector<2x1x8x128xf32>
    %cst_47 = arith.constant 0.000000e+00 : f32
    %146 = vector.broadcast %cst_47 : f32 to vector<2x8x8x128xf32>
    %147 = vector.extract_strided_slice %135 {offsets = [0, 0, 0, 0], sizes = [2, 7, 8, 128], strides = [1, 1, 1, 1]} : vector<2x8x8x128xf32> to vector<2x7x8x128xf32>
    %148 = tpu.concatenate %145, %147 in 1 : vector<2x1x8x128xf32>, vector<2x7x8x128xf32> -> vector<2x8x8x128xf32>
    %c1_i32_48 = arith.constant 1 : i32
    %149 = tpu.dynamic_rotate %148 by %c1_i32_48 dim 2 : vector<2x8x8x128xf32>, i32 -> vector<2x8x8x128xf32>
    %cst_49 = arith.constant 0.000000e+00 : f32
    %150 = vector.shape_cast %144 : vector<1x1x8x128xi1> to vector<1x1x8x128xi1>
    %151 = vector.broadcast %150 : vector<1x1x8x128xi1> to vector<2x8x8x128xi1>
    %152 = vector.broadcast %cst_49 : f32 to vector<2x8x8x128xf32>
    %153 = arith.select %151, %149, %152 : vector<2x8x8x128xi1>, vector<2x8x8x128xf32>
    %154 = vector.extract_strided_slice %137 {offsets = [0, 0], sizes = [1, 128], strides = [1, 1]} : vector<9x128xf32> to vector<1x128xf32>
    %155 = vector.shape_cast %154 : vector<1x128xf32> to vector<128xf32>
    %156 = vector.shape_cast %155 : vector<128xf32> to vector<1x1x1x128xf32>
    %157 = vector.broadcast %156 : vector<1x1x1x128xf32> to vector<2x8x8x128xf32>
    %158 = arith.mulf %153, %157 : vector<2x8x8x128xf32>
    %159 = arith.addf %146, %158 : vector<2x8x8x128xf32>
    %160 = vector.extract_strided_slice %137 {offsets = [1, 0], sizes = [1, 128], strides = [1, 1]} : vector<9x128xf32> to vector<1x128xf32>
    %161 = vector.shape_cast %160 : vector<1x128xf32> to vector<128xf32>
    %162 = vector.shape_cast %161 : vector<128xf32> to vector<1x1x1x128xf32>
    %163 = vector.broadcast %162 : vector<1x1x1x128xf32> to vector<2x8x8x128xf32>
    %164 = arith.mulf %148, %163 : vector<2x8x8x128xf32>
    %165 = arith.addf %159, %164 : vector<2x8x8x128xf32>
    %c7_i32_50 = arith.constant 7 : i32
    %166 = tpu.dynamic_rotate %148 by %c7_i32_50 dim 2 : vector<2x8x8x128xf32>, i32 -> vector<2x8x8x128xf32>
    %cst_51 = arith.constant 0.000000e+00 : f32
    %167 = vector.shape_cast %142 : vector<1x1x8x128xi1> to vector<1x1x8x128xi1>
    %168 = vector.broadcast %167 : vector<1x1x8x128xi1> to vector<2x8x8x128xi1>
    %169 = vector.broadcast %cst_51 : f32 to vector<2x8x8x128xf32>
    %170 = arith.select %168, %166, %169 : vector<2x8x8x128xi1>, vector<2x8x8x128xf32>
    %171 = vector.extract_strided_slice %137 {offsets = [2, 0], sizes = [1, 128], strides = [1, 1]} : vector<9x128xf32> to vector<1x128xf32>
    %172 = vector.shape_cast %171 : vector<1x128xf32> to vector<128xf32>
    %173 = vector.shape_cast %172 : vector<128xf32> to vector<1x1x1x128xf32>
    %174 = vector.broadcast %173 : vector<1x1x1x128xf32> to vector<2x8x8x128xf32>
    %175 = arith.mulf %170, %174 : vector<2x8x8x128xf32>
    %176 = arith.addf %165, %175 : vector<2x8x8x128xf32>
    %c1_i32_52 = arith.constant 1 : i32
    %177 = tpu.dynamic_rotate %135 by %c1_i32_52 dim 2 : vector<2x8x8x128xf32>, i32 -> vector<2x8x8x128xf32>
    %cst_53 = arith.constant 0.000000e+00 : f32
    %178 = vector.shape_cast %144 : vector<1x1x8x128xi1> to vector<1x1x8x128xi1>
    %179 = vector.broadcast %178 : vector<1x1x8x128xi1> to vector<2x8x8x128xi1>
    %180 = vector.broadcast %cst_53 : f32 to vector<2x8x8x128xf32>
    %181 = arith.select %179, %177, %180 : vector<2x8x8x128xi1>, vector<2x8x8x128xf32>
    %182 = vector.extract_strided_slice %137 {offsets = [3, 0], sizes = [1, 128], strides = [1, 1]} : vector<9x128xf32> to vector<1x128xf32>
    %183 = vector.shape_cast %182 : vector<1x128xf32> to vector<128xf32>
    %184 = vector.shape_cast %183 : vector<128xf32> to vector<1x1x1x128xf32>
    %185 = vector.broadcast %184 : vector<1x1x1x128xf32> to vector<2x8x8x128xf32>
    %186 = arith.mulf %181, %185 : vector<2x8x8x128xf32>
    %187 = arith.addf %176, %186 : vector<2x8x8x128xf32>
    %188 = vector.extract_strided_slice %137 {offsets = [4, 0], sizes = [1, 128], strides = [1, 1]} : vector<9x128xf32> to vector<1x128xf32>
    %189 = vector.shape_cast %188 : vector<1x128xf32> to vector<128xf32>
    %190 = vector.shape_cast %189 : vector<128xf32> to vector<1x1x1x128xf32>
    %191 = vector.broadcast %190 : vector<1x1x1x128xf32> to vector<2x8x8x128xf32>
    %192 = arith.mulf %135, %191 : vector<2x8x8x128xf32>
    %193 = arith.addf %187, %192 : vector<2x8x8x128xf32>
    %c7_i32_54 = arith.constant 7 : i32
    %194 = tpu.dynamic_rotate %135 by %c7_i32_54 dim 2 : vector<2x8x8x128xf32>, i32 -> vector<2x8x8x128xf32>
    %cst_55 = arith.constant 0.000000e+00 : f32
    %195 = vector.shape_cast %142 : vector<1x1x8x128xi1> to vector<1x1x8x128xi1>
    %196 = vector.broadcast %195 : vector<1x1x8x128xi1> to vector<2x8x8x128xi1>
    %197 = vector.broadcast %cst_55 : f32 to vector<2x8x8x128xf32>
    %198 = arith.select %196, %194, %197 : vector<2x8x8x128xi1>, vector<2x8x8x128xf32>
    %199 = vector.extract_strided_slice %137 {offsets = [5, 0], sizes = [1, 128], strides = [1, 1]} : vector<9x128xf32> to vector<1x128xf32>
    %200 = vector.shape_cast %199 : vector<1x128xf32> to vector<128xf32>
    %201 = vector.shape_cast %200 : vector<128xf32> to vector<1x1x1x128xf32>
    %202 = vector.broadcast %201 : vector<1x1x1x128xf32> to vector<2x8x8x128xf32>
    %203 = arith.mulf %198, %202 : vector<2x8x8x128xf32>
    %204 = arith.addf %193, %203 : vector<2x8x8x128xf32>
    %205 = vector.extract_strided_slice %135 {offsets = [0, 1, 0, 0], sizes = [2, 7, 8, 128], strides = [1, 1, 1, 1]} : vector<2x8x8x128xf32> to vector<2x7x8x128xf32>
    %206 = tpu.concatenate %205, %145 in 1 : vector<2x7x8x128xf32>, vector<2x1x8x128xf32> -> vector<2x8x8x128xf32>
    %c1_i32_56 = arith.constant 1 : i32
    %207 = tpu.dynamic_rotate %206 by %c1_i32_56 dim 2 : vector<2x8x8x128xf32>, i32 -> vector<2x8x8x128xf32>
    %cst_57 = arith.constant 0.000000e+00 : f32
    %208 = vector.shape_cast %144 : vector<1x1x8x128xi1> to vector<1x1x8x128xi1>
    %209 = vector.broadcast %208 : vector<1x1x8x128xi1> to vector<2x8x8x128xi1>
    %210 = vector.broadcast %cst_57 : f32 to vector<2x8x8x128xf32>
    %211 = arith.select %209, %207, %210 : vector<2x8x8x128xi1>, vector<2x8x8x128xf32>
    %212 = vector.extract_strided_slice %137 {offsets = [6, 0], sizes = [1, 128], strides = [1, 1]} : vector<9x128xf32> to vector<1x128xf32>
    %213 = vector.shape_cast %212 : vector<1x128xf32> to vector<128xf32>
    %214 = vector.shape_cast %213 : vector<128xf32> to vector<1x1x1x128xf32>
    %215 = vector.broadcast %214 : vector<1x1x1x128xf32> to vector<2x8x8x128xf32>
    %216 = arith.mulf %211, %215 : vector<2x8x8x128xf32>
    %217 = arith.addf %204, %216 : vector<2x8x8x128xf32>
    %218 = vector.extract_strided_slice %137 {offsets = [7, 0], sizes = [1, 128], strides = [1, 1]} : vector<9x128xf32> to vector<1x128xf32>
    %219 = vector.shape_cast %218 : vector<1x128xf32> to vector<128xf32>
    %220 = vector.shape_cast %219 : vector<128xf32> to vector<1x1x1x128xf32>
    %221 = vector.broadcast %220 : vector<1x1x1x128xf32> to vector<2x8x8x128xf32>
    %222 = arith.mulf %206, %221 : vector<2x8x8x128xf32>
    %223 = arith.addf %217, %222 : vector<2x8x8x128xf32>
    %c7_i32_58 = arith.constant 7 : i32
    %224 = tpu.dynamic_rotate %206 by %c7_i32_58 dim 2 : vector<2x8x8x128xf32>, i32 -> vector<2x8x8x128xf32>
    %cst_59 = arith.constant 0.000000e+00 : f32
    %225 = vector.shape_cast %142 : vector<1x1x8x128xi1> to vector<1x1x8x128xi1>
    %226 = vector.broadcast %225 : vector<1x1x8x128xi1> to vector<2x8x8x128xi1>
    %227 = vector.broadcast %cst_59 : f32 to vector<2x8x8x128xf32>
    %228 = arith.select %226, %224, %227 : vector<2x8x8x128xi1>, vector<2x8x8x128xf32>
    %229 = vector.extract_strided_slice %137 {offsets = [8, 0], sizes = [1, 128], strides = [1, 1]} : vector<9x128xf32> to vector<1x128xf32>
    %230 = vector.shape_cast %229 : vector<1x128xf32> to vector<128xf32>
    %231 = vector.shape_cast %230 : vector<128xf32> to vector<1x1x1x128xf32>
    %232 = vector.broadcast %231 : vector<1x1x1x128xf32> to vector<2x8x8x128xf32>
    %233 = arith.mulf %228, %232 : vector<2x8x8x128xf32>
    %234 = arith.addf %223, %233 : vector<2x8x8x128xf32>
    %235 = vector.shape_cast %139 : vector<128xf32> to vector<1x1x1x128xf32>
    %236 = vector.broadcast %235 : vector<1x1x1x128xf32> to vector<2x8x8x128xf32>
    %237 = arith.addf %234, %236 : vector<2x8x8x128xf32>
    %cst_60 = arith.constant 0.000000e+00 : f32
    %cst_61 = arith.constant 6.000000e+00 : f32
    %238 = vector.broadcast %cst_60 : f32 to vector<2x8x8x128xf32>
    %239 = arith.maximumf %238, %237 : vector<2x8x8x128xf32>
    %240 = vector.broadcast %cst_61 : f32 to vector<2x8x8x128xf32>
    %241 = arith.minimumf %240, %239 : vector<2x8x8x128xf32>
    %242 = vector.shape_cast %241 : vector<2x8x8x128xf32> to vector<128x128xf32>
    %243 = arith.truncf %242 : vector<128x128xf32> to vector<128x128xbf16>
    %c0_62 = arith.constant 0 : index
    %c0_63 = arith.constant 0 : index
    %c0_64 = arith.constant 0 : index
    %244 = vector.load %arg11[%c0_62, %c0_63, %c0_64] : memref<2x128x128xbf16, #tpu.memory_space<vmem>>, vector<1x128x128xbf16>
    %245 = vector.shape_cast %244 : vector<1x128x128xbf16> to vector<128x128xbf16>
    %cst_65 = arith.constant dense<0.000000e+00> : vector<128x128xf32>
    %246 = tpu.matmul %243, %245, %cst_65 {dimension_numbers = #tpu.dot_dimension_numbers<[1], [0], [0], [1], [0, 0, 1, 1], [], []>} : vector<128x128xbf16>, vector<128x128xbf16>, vector<128x128xf32> -> vector<128x128xf32>
    %c0_66 = arith.constant 0 : index
    %c0_67 = arith.constant 0 : index
    %247 = vector.load %arg12[%c0_66, %c0_67] : memref<2x128xf32, #tpu.memory_space<vmem>>, vector<1x128xf32>
    %248 = vector.shape_cast %247 : vector<1x128xf32> to vector<128xf32>
    %249 = vector.shape_cast %248 : vector<128xf32> to vector<1x128xf32>
    %250 = vector.broadcast %249 : vector<1x128xf32> to vector<128x128xf32>
    %251 = arith.addf %246, %250 : vector<128x128xf32>
    %252 = arith.addf %251, %121 : vector<128x128xf32>
    %253 = arith.truncf %252 : vector<128x128xf32> to vector<128x128xbf16>
    %c1 = arith.constant 1 : index
    %c0_68 = arith.constant 0 : index
    %c0_69 = arith.constant 0 : index
    %254 = vector.load %arg7[%c1, %c0_68, %c0_69] : memref<2x128x128xbf16, #tpu.memory_space<vmem>>, vector<1x128x128xbf16>
    %255 = vector.shape_cast %254 : vector<1x128x128xbf16> to vector<128x128xbf16>
    %cst_70 = arith.constant dense<0.000000e+00> : vector<128x128xf32>
    %256 = tpu.matmul %253, %255, %cst_70 {dimension_numbers = #tpu.dot_dimension_numbers<[1], [0], [0], [1], [0, 0, 1, 1], [], []>} : vector<128x128xbf16>, vector<128x128xbf16>, vector<128x128xf32> -> vector<128x128xf32>
    %c1_71 = arith.constant 1 : index
    %c0_72 = arith.constant 0 : index
    %257 = vector.load %arg8[%c1_71, %c0_72] : memref<2x128xf32, #tpu.memory_space<vmem>>, vector<1x128xf32>
    %258 = vector.shape_cast %257 : vector<1x128xf32> to vector<128xf32>
    %259 = vector.shape_cast %258 : vector<128xf32> to vector<1x128xf32>
    %260 = vector.broadcast %259 : vector<1x128xf32> to vector<128x128xf32>
    %261 = arith.addf %256, %260 : vector<128x128xf32>
    %cst_73 = arith.constant 0.000000e+00 : f32
    %cst_74 = arith.constant 6.000000e+00 : f32
    %262 = vector.broadcast %cst_73 : f32 to vector<128x128xf32>
    %263 = arith.maximumf %262, %261 : vector<128x128xf32>
    %264 = vector.broadcast %cst_74 : f32 to vector<128x128xf32>
    %265 = arith.minimumf %264, %263 : vector<128x128xf32>
    %266 = vector.shape_cast %265 : vector<128x128xf32> to vector<2x8x8x128xf32>
    %c1_75 = arith.constant 1 : index
    %c0_76 = arith.constant 0 : index
    %c0_77 = arith.constant 0 : index
    %267 = vector.load %arg9[%c1_75, %c0_76, %c0_77] : memref<2x9x128xf32, #tpu.memory_space<vmem>>, vector<1x9x128xf32>
    %268 = vector.shape_cast %267 : vector<1x9x128xf32> to vector<9x128xf32>
    %c1_78 = arith.constant 1 : index
    %c0_79 = arith.constant 0 : index
    %269 = vector.load %arg10[%c1_78, %c0_79] : memref<2x128xf32, #tpu.memory_space<vmem>>, vector<1x128xf32>
    %270 = vector.shape_cast %269 : vector<1x128xf32> to vector<128xf32>
    %271 = tpu.iota {dimensions = array<i32: 2>} : vector<1x1x8x128xi32>
    %c7_i32_80 = arith.constant 7 : i32
    %272 = vector.broadcast %c7_i32_80 : i32 to vector<1x1x8x128xi32>
    %273 = arith.cmpi slt, %271, %272 : vector<1x1x8x128xi32>
    %c0_i32_81 = arith.constant 0 : i32
    %274 = vector.broadcast %c0_i32_81 : i32 to vector<1x1x8x128xi32>
    %275 = arith.cmpi sgt, %271, %274 : vector<1x1x8x128xi32>
    %cst_82 = arith.constant 0.000000e+00 : f32
    %276 = vector.broadcast %cst_82 : f32 to vector<2x1x8x128xf32>
    %cst_83 = arith.constant 0.000000e+00 : f32
    %277 = vector.broadcast %cst_83 : f32 to vector<2x8x8x128xf32>
    %278 = vector.extract_strided_slice %266 {offsets = [0, 0, 0, 0], sizes = [2, 7, 8, 128], strides = [1, 1, 1, 1]} : vector<2x8x8x128xf32> to vector<2x7x8x128xf32>
    %279 = tpu.concatenate %276, %278 in 1 : vector<2x1x8x128xf32>, vector<2x7x8x128xf32> -> vector<2x8x8x128xf32>
    %c1_i32_84 = arith.constant 1 : i32
    %280 = tpu.dynamic_rotate %279 by %c1_i32_84 dim 2 : vector<2x8x8x128xf32>, i32 -> vector<2x8x8x128xf32>
    %cst_85 = arith.constant 0.000000e+00 : f32
    %281 = vector.shape_cast %275 : vector<1x1x8x128xi1> to vector<1x1x8x128xi1>
    %282 = vector.broadcast %281 : vector<1x1x8x128xi1> to vector<2x8x8x128xi1>
    %283 = vector.broadcast %cst_85 : f32 to vector<2x8x8x128xf32>
    %284 = arith.select %282, %280, %283 : vector<2x8x8x128xi1>, vector<2x8x8x128xf32>
    %285 = vector.extract_strided_slice %268 {offsets = [0, 0], sizes = [1, 128], strides = [1, 1]} : vector<9x128xf32> to vector<1x128xf32>
    %286 = vector.shape_cast %285 : vector<1x128xf32> to vector<128xf32>
    %287 = vector.shape_cast %286 : vector<128xf32> to vector<1x1x1x128xf32>
    %288 = vector.broadcast %287 : vector<1x1x1x128xf32> to vector<2x8x8x128xf32>
    %289 = arith.mulf %284, %288 : vector<2x8x8x128xf32>
    %290 = arith.addf %277, %289 : vector<2x8x8x128xf32>
    %291 = vector.extract_strided_slice %268 {offsets = [1, 0], sizes = [1, 128], strides = [1, 1]} : vector<9x128xf32> to vector<1x128xf32>
    %292 = vector.shape_cast %291 : vector<1x128xf32> to vector<128xf32>
    %293 = vector.shape_cast %292 : vector<128xf32> to vector<1x1x1x128xf32>
    %294 = vector.broadcast %293 : vector<1x1x1x128xf32> to vector<2x8x8x128xf32>
    %295 = arith.mulf %279, %294 : vector<2x8x8x128xf32>
    %296 = arith.addf %290, %295 : vector<2x8x8x128xf32>
    %c7_i32_86 = arith.constant 7 : i32
    %297 = tpu.dynamic_rotate %279 by %c7_i32_86 dim 2 : vector<2x8x8x128xf32>, i32 -> vector<2x8x8x128xf32>
    %cst_87 = arith.constant 0.000000e+00 : f32
    %298 = vector.shape_cast %273 : vector<1x1x8x128xi1> to vector<1x1x8x128xi1>
    %299 = vector.broadcast %298 : vector<1x1x8x128xi1> to vector<2x8x8x128xi1>
    %300 = vector.broadcast %cst_87 : f32 to vector<2x8x8x128xf32>
    %301 = arith.select %299, %297, %300 : vector<2x8x8x128xi1>, vector<2x8x8x128xf32>
    %302 = vector.extract_strided_slice %268 {offsets = [2, 0], sizes = [1, 128], strides = [1, 1]} : vector<9x128xf32> to vector<1x128xf32>
    %303 = vector.shape_cast %302 : vector<1x128xf32> to vector<128xf32>
    %304 = vector.shape_cast %303 : vector<128xf32> to vector<1x1x1x128xf32>
    %305 = vector.broadcast %304 : vector<1x1x1x128xf32> to vector<2x8x8x128xf32>
    %306 = arith.mulf %301, %305 : vector<2x8x8x128xf32>
    %307 = arith.addf %296, %306 : vector<2x8x8x128xf32>
    %c1_i32_88 = arith.constant 1 : i32
    %308 = tpu.dynamic_rotate %266 by %c1_i32_88 dim 2 : vector<2x8x8x128xf32>, i32 -> vector<2x8x8x128xf32>
    %cst_89 = arith.constant 0.000000e+00 : f32
    %309 = vector.shape_cast %275 : vector<1x1x8x128xi1> to vector<1x1x8x128xi1>
    %310 = vector.broadcast %309 : vector<1x1x8x128xi1> to vector<2x8x8x128xi1>
    %311 = vector.broadcast %cst_89 : f32 to vector<2x8x8x128xf32>
    %312 = arith.select %310, %308, %311 : vector<2x8x8x128xi1>, vector<2x8x8x128xf32>
    %313 = vector.extract_strided_slice %268 {offsets = [3, 0], sizes = [1, 128], strides = [1, 1]} : vector<9x128xf32> to vector<1x128xf32>
    %314 = vector.shape_cast %313 : vector<1x128xf32> to vector<128xf32>
    %315 = vector.shape_cast %314 : vector<128xf32> to vector<1x1x1x128xf32>
    %316 = vector.broadcast %315 : vector<1x1x1x128xf32> to vector<2x8x8x128xf32>
    %317 = arith.mulf %312, %316 : vector<2x8x8x128xf32>
    %318 = arith.addf %307, %317 : vector<2x8x8x128xf32>
    %319 = vector.extract_strided_slice %268 {offsets = [4, 0], sizes = [1, 128], strides = [1, 1]} : vector<9x128xf32> to vector<1x128xf32>
    %320 = vector.shape_cast %319 : vector<1x128xf32> to vector<128xf32>
    %321 = vector.shape_cast %320 : vector<128xf32> to vector<1x1x1x128xf32>
    %322 = vector.broadcast %321 : vector<1x1x1x128xf32> to vector<2x8x8x128xf32>
    %323 = arith.mulf %266, %322 : vector<2x8x8x128xf32>
    %324 = arith.addf %318, %323 : vector<2x8x8x128xf32>
    %c7_i32_90 = arith.constant 7 : i32
    %325 = tpu.dynamic_rotate %266 by %c7_i32_90 dim 2 : vector<2x8x8x128xf32>, i32 -> vector<2x8x8x128xf32>
    %cst_91 = arith.constant 0.000000e+00 : f32
    %326 = vector.shape_cast %273 : vector<1x1x8x128xi1> to vector<1x1x8x128xi1>
    %327 = vector.broadcast %326 : vector<1x1x8x128xi1> to vector<2x8x8x128xi1>
    %328 = vector.broadcast %cst_91 : f32 to vector<2x8x8x128xf32>
    %329 = arith.select %327, %325, %328 : vector<2x8x8x128xi1>, vector<2x8x8x128xf32>
    %330 = vector.extract_strided_slice %268 {offsets = [5, 0], sizes = [1, 128], strides = [1, 1]} : vector<9x128xf32> to vector<1x128xf32>
    %331 = vector.shape_cast %330 : vector<1x128xf32> to vector<128xf32>
    %332 = vector.shape_cast %331 : vector<128xf32> to vector<1x1x1x128xf32>
    %333 = vector.broadcast %332 : vector<1x1x1x128xf32> to vector<2x8x8x128xf32>
    %334 = arith.mulf %329, %333 : vector<2x8x8x128xf32>
    %335 = arith.addf %324, %334 : vector<2x8x8x128xf32>
    %336 = vector.extract_strided_slice %266 {offsets = [0, 1, 0, 0], sizes = [2, 7, 8, 128], strides = [1, 1, 1, 1]} : vector<2x8x8x128xf32> to vector<2x7x8x128xf32>
    %337 = tpu.concatenate %336, %276 in 1 : vector<2x7x8x128xf32>, vector<2x1x8x128xf32> -> vector<2x8x8x128xf32>
    %c1_i32_92 = arith.constant 1 : i32
    %338 = tpu.dynamic_rotate %337 by %c1_i32_92 dim 2 : vector<2x8x8x128xf32>, i32 -> vector<2x8x8x128xf32>
    %cst_93 = arith.constant 0.000000e+00 : f32
    %339 = vector.shape_cast %275 : vector<1x1x8x128xi1> to vector<1x1x8x128xi1>
    %340 = vector.broadcast %339 : vector<1x1x8x128xi1> to vector<2x8x8x128xi1>
    %341 = vector.broadcast %cst_93 : f32 to vector<2x8x8x128xf32>
    %342 = arith.select %340, %338, %341 : vector<2x8x8x128xi1>, vector<2x8x8x128xf32>
    %343 = vector.extract_strided_slice %268 {offsets = [6, 0], sizes = [1, 128], strides = [1, 1]} : vector<9x128xf32> to vector<1x128xf32>
    %344 = vector.shape_cast %343 : vector<1x128xf32> to vector<128xf32>
    %345 = vector.shape_cast %344 : vector<128xf32> to vector<1x1x1x128xf32>
    %346 = vector.broadcast %345 : vector<1x1x1x128xf32> to vector<2x8x8x128xf32>
    %347 = arith.mulf %342, %346 : vector<2x8x8x128xf32>
    %348 = arith.addf %335, %347 : vector<2x8x8x128xf32>
    %349 = vector.extract_strided_slice %268 {offsets = [7, 0], sizes = [1, 128], strides = [1, 1]} : vector<9x128xf32> to vector<1x128xf32>
    %350 = vector.shape_cast %349 : vector<1x128xf32> to vector<128xf32>
    %351 = vector.shape_cast %350 : vector<128xf32> to vector<1x1x1x128xf32>
    %352 = vector.broadcast %351 : vector<1x1x1x128xf32> to vector<2x8x8x128xf32>
    %353 = arith.mulf %337, %352 : vector<2x8x8x128xf32>
    %354 = arith.addf %348, %353 : vector<2x8x8x128xf32>
    %c7_i32_94 = arith.constant 7 : i32
    %355 = tpu.dynamic_rotate %337 by %c7_i32_94 dim 2 : vector<2x8x8x128xf32>, i32 -> vector<2x8x8x128xf32>
    %cst_95 = arith.constant 0.000000e+00 : f32
    %356 = vector.shape_cast %273 : vector<1x1x8x128xi1> to vector<1x1x8x128xi1>
    %357 = vector.broadcast %356 : vector<1x1x8x128xi1> to vector<2x8x8x128xi1>
    %358 = vector.broadcast %cst_95 : f32 to vector<2x8x8x128xf32>
    %359 = arith.select %357, %355, %358 : vector<2x8x8x128xi1>, vector<2x8x8x128xf32>
    %360 = vector.extract_strided_slice %268 {offsets = [8, 0], sizes = [1, 128], strides = [1, 1]} : vector<9x128xf32> to vector<1x128xf32>
    %361 = vector.shape_cast %360 : vector<1x128xf32> to vector<128xf32>
    %362 = vector.shape_cast %361 : vector<128xf32> to vector<1x1x1x128xf32>
    %363 = vector.broadcast %362 : vector<1x1x1x128xf32> to vector<2x8x8x128xf32>
    %364 = arith.mulf %359, %363 : vector<2x8x8x128xf32>
    %365 = arith.addf %354, %364 : vector<2x8x8x128xf32>
    %366 = vector.shape_cast %270 : vector<128xf32> to vector<1x1x1x128xf32>
    %367 = vector.broadcast %366 : vector<1x1x1x128xf32> to vector<2x8x8x128xf32>
    %368 = arith.addf %365, %367 : vector<2x8x8x128xf32>
    %cst_96 = arith.constant 0.000000e+00 : f32
    %cst_97 = arith.constant 6.000000e+00 : f32
    %369 = vector.broadcast %cst_96 : f32 to vector<2x8x8x128xf32>
    %370 = arith.maximumf %369, %368 : vector<2x8x8x128xf32>
    %371 = vector.broadcast %cst_97 : f32 to vector<2x8x8x128xf32>
    %372 = arith.minimumf %371, %370 : vector<2x8x8x128xf32>
    %373 = vector.shape_cast %372 : vector<2x8x8x128xf32> to vector<128x128xf32>
    %374 = arith.truncf %373 : vector<128x128xf32> to vector<128x128xbf16>
    %c1_98 = arith.constant 1 : index
    %c0_99 = arith.constant 0 : index
    %c0_100 = arith.constant 0 : index
    %375 = vector.load %arg11[%c1_98, %c0_99, %c0_100] : memref<2x128x128xbf16, #tpu.memory_space<vmem>>, vector<1x128x128xbf16>
    %376 = vector.shape_cast %375 : vector<1x128x128xbf16> to vector<128x128xbf16>
    %cst_101 = arith.constant dense<0.000000e+00> : vector<128x128xf32>
    %377 = tpu.matmul %374, %376, %cst_101 {dimension_numbers = #tpu.dot_dimension_numbers<[1], [0], [0], [1], [0, 0, 1, 1], [], []>} : vector<128x128xbf16>, vector<128x128xbf16>, vector<128x128xf32> -> vector<128x128xf32>
    %c1_102 = arith.constant 1 : index
    %c0_103 = arith.constant 0 : index
    %378 = vector.load %arg12[%c1_102, %c0_103] : memref<2x128xf32, #tpu.memory_space<vmem>>, vector<1x128xf32>
    %379 = vector.shape_cast %378 : vector<1x128xf32> to vector<128xf32>
    %380 = vector.shape_cast %379 : vector<128xf32> to vector<1x128xf32>
    %381 = vector.broadcast %380 : vector<1x128xf32> to vector<128x128xf32>
    %382 = arith.addf %377, %381 : vector<128x128xf32>
    %383 = arith.truncf %382 : vector<128x128xf32> to vector<128x128xbf16>
    %c0_104 = arith.constant 0 : index
    %c0_105 = arith.constant 0 : index
    %384 = vector.load %arg13[%c0_104, %c0_105] : memref<128x128xbf16, #tpu.memory_space<vmem>>, vector<128x128xbf16>
    %cst_106 = arith.constant dense<0.000000e+00> : vector<128x128xf32>
    %385 = tpu.matmul %383, %384, %cst_106 {dimension_numbers = #tpu.dot_dimension_numbers<[1], [0], [0], [1], [0, 0, 1, 1], [], []>} : vector<128x128xbf16>, vector<128x128xbf16>, vector<128x128xf32> -> vector<128x128xf32>
    %c0_107 = arith.constant 0 : index
    %c0_108 = arith.constant 0 : index
    %386 = vector.load %arg14[%c0_107, %c0_108] : memref<1x128xf32, #tpu.memory_space<vmem>>, vector<1x128xf32>
    %387 = vector.broadcast %386 : vector<1x128xf32> to vector<128x128xf32>
    %388 = arith.addf %385, %387 : vector<128x128xf32>
    %cst_109 = arith.constant 0.000000e+00 : f32
    %cst_110 = arith.constant 6.000000e+00 : f32
    %389 = vector.broadcast %cst_109 : f32 to vector<128x128xf32>
    %390 = arith.maximumf %389, %388 : vector<128x128xf32>
    %391 = vector.broadcast %cst_110 : f32 to vector<128x128xf32>
    %392 = arith.minimumf %391, %390 : vector<128x128xf32>
    %393 = vector.shape_cast %392 : vector<128x128xf32> to vector<2x64x128xf32>
    %394 = vector.extract_strided_slice %393 {offsets = [0, 0, 0], sizes = [1, 64, 128], strides = [1, 1, 1]} : vector<2x64x128xf32> to vector<1x64x128xf32>
    %395 = vector.shape_cast %394 : vector<1x64x128xf32> to vector<64x128xf32>
    %cst_111 = arith.constant dense<0.000000e+00> : vector<128xf32>
    %396 = vector.multi_reduction <add>, %395, %cst_111 [0] : vector<64x128xf32> to vector<128xf32>
    %397 = vector.shape_cast %396 : vector<128xf32> to vector<1x128xf32>
    %398 = vector.extract_strided_slice %393 {offsets = [1, 0, 0], sizes = [1, 64, 128], strides = [1, 1, 1]} : vector<2x64x128xf32> to vector<1x64x128xf32>
    %399 = vector.shape_cast %398 : vector<1x64x128xf32> to vector<64x128xf32>
    %cst_112 = arith.constant dense<0.000000e+00> : vector<128xf32>
    %400 = vector.multi_reduction <add>, %399, %cst_112 [0] : vector<64x128xf32> to vector<128xf32>
    %401 = vector.shape_cast %400 : vector<128xf32> to vector<1x128xf32>
    %402 = tpu.concatenate %397, %401 in 0 : vector<1x128xf32>, vector<1x128xf32> -> vector<2x128xf32>
    %c0_113 = arith.constant 0 : index
    %c0_114 = arith.constant 0 : index
    %403 = vector.load %arg15[%c0_113, %c0_114] : memref<128x128xf32, #tpu.memory_space<vmem>>, vector<128x128xf32>
    %cst_115 = arith.constant dense<0.000000e+00> : vector<2x128xf32>
    %404 = tpu.matmul %402, %403, %cst_115 {dimension_numbers = #tpu.dot_dimension_numbers<[1], [0], [0], [1], [0, 0, 1, 1], [], []>} : vector<2x128xf32>, vector<128x128xf32>, vector<2x128xf32> -> vector<2x128xf32>
    %c0_116 = arith.constant 0 : index
    %c0_117 = arith.constant 0 : index
    %405 = vector.load %arg16[%c0_116, %c0_117] : memref<1x128xf32, #tpu.memory_space<vmem>>, vector<1x128xf32>
    %406 = vector.broadcast %405 : vector<1x128xf32> to vector<2x128xf32>
    %407 = arith.addf %404, %406 : vector<2x128xf32>
    %c0_118 = arith.constant 0 : index
    %c0_119 = arith.constant 0 : index
    %408 = vector.load %arg17[%c0_118, %c0_119] : memref<2x128xf32, #tpu.memory_space<vmem>>, vector<2x128xf32>
    tpu.vector_store %arg17[%c0_118, %c0_119], %407 {strides = array<i32>} : memref<2x128xf32, #tpu.memory_space<vmem>>, vector<2x128xf32>,
    return
  }
}

</mosaic_0001>

<bundles_post_ra>
// kernel: _lambda_.1
= control target key start
LH: loop header
LB: loop body
LE: loop exit
PB: predicated region body
PF: predicated region fallthrough
CT: control target
= control target key end

     0   :  { %s5742_s0 = inlined_call_operand.vmem [shape: bf16[128,32], index: 0, kind: input, shape index: {}]   ;;  %s5743_s1 = inlined_call_operand.vmem [shape: bf16[32,128], index: 1, kind: input, shape index: {}]   ;;  %s5744_s2 = inlined_call_operand.vmem [shape: f32[1,128], index: 2, kind: input, shape index: {}, may-alias: {2,4,6,14,16}]   ;;  %s5745_s3 = inlined_call_operand.vmem [shape: f32[9,128], index: 3, kind: input, shape index: {}]   ;;  %s5746_s4 = inlined_call_operand.vmem [shape: f32[1,128], index: 4, kind: input, shape index: {}, may-alias: {2,4,6,14,16}]   ;;  %s5747_s5 = inlined_call_operand.vmem [shape: bf16[128,128], index: 5, kind: input, shape index: {}]   ;;  %s5748_s6 = inlined_call_operand.vmem [shape: f32[1,128], index: 6, kind: input, shape index: {}, may-alias: {2,4,6,14,16}]   ;;  %s5749_s7 = inlined_call_operand.vmem [shape: bf16[2,128,128], index: 7, kind: input, shape index: {}]   ;;  %s5750_s8 = inlined_call_operand.vmem [shape: f32[2,128], index: 8, kind: input, shape index: {}, may-alias: {8,10,12}]   ;;  %s5751_s9 = inlined_call_operand.vmem [shape: f32[2,9,128], index: 9, kind: input, shape index: {}]   ;;  %s5752_s10 = inlined_call_operand.vmem [shape: f32[2,128], index: 10, kind: input, shape index: {}, may-alias: {8,10,12}]   ;;  %s5753_s11 = inlined_call_operand.vmem [shape: bf16[2,128,128], index: 11, kind: input, shape index: {}]   ;;  %s5754_s12 = inlined_call_operand.vmem [shape: f32[2,128], index: 12, kind: input, shape index: {}, may-alias: {8,10,12}]   ;;  %s5755_s13 = inlined_call_operand.vmem [shape: bf16[128,128], index: 13, kind: input, shape index: {}]   ;;  %s5756_s14 = inlined_call_operand.vmem [shape: f32[1,128], index: 14, kind: input, shape index: {}, may-alias: {2,4,6,14,16}]   ;;  %s5757_s15 = inlined_call_operand.vmem [shape: f32[128,128], index: 15, kind: input, shape index: {}]   ;;  %s5758_s16 = inlined_call_operand.vmem [shape: f32[1,128], index: 16, kind: input, shape index: {}, may-alias: {2,4,6,14,16}]   ;;  %s5759_s17 = inlined_call_operand.hbm [shape: f32[2,128], index: 17, kind: output, shape index: {}]  }
   0x1   :  { %5847 = sst [smem:[#allocation53_spill]] %s5742_s0 }
   0x2   :  { %5848 = sst [smem:[#allocation54_spill]] %s5743_s1 }
   0x3   :  { %s5849_s26 = sld [smem:[#allocation54_spill]]  ;;  %vm137_vm0 = vcmask 261120   ;;  %s5850_s30 = sld [smem:[#allocation53_spill]] }
   0x9   :  { %v3416_v0 = vld [vmem:[%s5849_s26] sm:$0xff]   ;;  %v3417_v1 = vld [vmem:[%s5849_s26 + $0x8] sm:$0xff]   ;;  %v3420_v4 = vld [vmem:[%s5850_s30 + $0x10] sm:$0xff]  }
   0xa   :  { %3141 = vmatprep.subr.bf16.mxu0 %v3416_v0  ;;  %v3418_v2 = vld [vmem:[%s5850_s30] sm:$0xff]   ;;  %v3419_v3 = vld [vmem:[%s5850_s30 + $0x8] sm:$0xff]   ;;  %v3421_v5 = vld [vmem:[%s5850_s30 + $0x18] sm:$0xff]  }
   0xb   :  { %3142 = vmatpush3.bf16.msra.mxu0 %v3416_v0  ;;  %3145 = vmatprep.mubr.msk.bf16.mxu0 %vm137_vm0, %v3418_v2  ;;  %v3422_v6 = vld [vmem:[%s5850_s30 + $0x20] sm:$0xff]   ;;  %v3423_v7 = vld [vmem:[%s5850_s30 + $0x28] sm:$0xff]   ;;  %v3424_v8 = vld [vmem:[%s5850_s30 + $0x30] sm:$0xff]  }
   0xc   :  { %3143 = vmatprep.subr.bf16.mxu0 %v3417_v1  ;;  %v3425_v9 = vld [vmem:[%s5850_s30 + $0x38] sm:$0xff]  }
   0xf   :  { %3144 = vmatpush3.bf16.msra.mxu0 %v3417_v1 }
  0x12   :  { %3146 = vmatmul.mubr.msk.bf16.vlgmr.msra.gmra.mrb[0].mxu0 %vm137_vm0, %v3419_v3 }
  0x13   :  { %3149 = vmatprep.mubr.msk.bf16.mxu0 %vm137_vm0, %v3420_v4 }
  0x1a   :  { %3150 = vmatmul.mubr.msk.bf16.gmra.mrb[4].mxu0 %vm137_vm0, %v3421_v5 }
  0x1b   :  { %3153 = vmatprep.mubr.msk.bf16.mxu0 %vm137_vm0, %v3422_v6 }
  0x22   :  { %3154 = vmatmul.mubr.msk.bf16.gmra.mrb[8].mxu0 %vm137_vm0, %v3423_v7 }
  0x23   :  { %3157 = vmatprep.mubr.msk.bf16.mxu0 %vm137_vm0, %v3424_v8 }
  0x2a   :  { %3158 = vmatmul.mubr.msk.bf16.gmra.mrb[12].mxu0 %vm137_vm0, %v3425_v9 }
  0x2b   :  { %22 = vsyncpa [#allocation3], 0  ;;  %v3426_v10 = vld [vmem:[%s5747_s5] sm:$0xff]   ;;  %v3427_v11 = vld [vmem:[%s5747_s5 + $0x8] sm:$0xff]   ;;  %v294_v18 = vlaneseq  ;;  %vm3499_vm3 = vmmov 0   ;;  %vm2794_vm4 = vcmask 1040384  }
  0x2c   :  { %3161 = vmatprep.subr.bf16.mxu1 %v3426_v10  ;;  %v3428_v12 = vld [vmem:[%s5747_s5 + $0x10] sm:$0xff]   ;;  %v3429_v13 = vld [vmem:[%s5747_s5 + $0x18] sm:$0xff]   ;;  %v3430_v14 = vld [vmem:[%s5747_s5 + $0x20] sm:$0xff]  }
  0x2d   :  { %3162 = vmatpush3.bf16.msra.mxu1 %v3426_v10  ;;  %v3431_v15 = vld [vmem:[%s5747_s5 + $0x28] sm:$0xff]   ;;  %v3432_v16 = vld [vmem:[%s5747_s5 + $0x30] sm:$0xff]   ;;  %v3433_v17 = vld [vmem:[%s5747_s5 + $0x38] sm:$0xff]   ;;  %v3654_v19 = vshrl.u32 %v294_v18, 7 }
  0x2e   :  { %3163 = vmatprep.subr.bf16.mxu1 %v3427_v11  ;;  %v291_v22 = vld [vmem:[%s5745_s3] sm:$0xff]  ;;  %v3435_v24 = vld [vmem:[%s5749_s7 + $0x8] sm:$0xff]   ;;  %v3436_v28 = vld [vmem:[%s5749_s7 + $0x10] sm:$0xff]  }
  0x2f   :  { %v3657_v20 = vsub.s32 1, %v3654_v19  ;;  %v3660_v21 = vsub.s32 0, %v3654_v19  ;;  %v3434_v23 = vld [vmem:[%s5749_s7] sm:$0xff]   ;;  %v3678_v27 = vsub.s32 2, %v3654_v19  ;;  %v3689_v30 = vsub.s32 4, %v3654_v19  ;;  %v3437_v39 = vld [vmem:[%s5749_s7 + $0x18] sm:$0xff]  }
  0x30   :  { %3193 = vmatprep.subr.bf16.mxu0 %v3434_v23  ;;  %v3686_v29 = vld [vmem:[%s5744_s2] ss:$0 sm:$0xff]  ;;  %v3698_v37 = vsub.s32 6, %v3654_v19  ;;  %v3701_v38 = vsub.s32 7, %v3654_v19  ;;  %v3711_v42 = vsub.s32 3, %v3654_v19  ;;  %v3714_v43 = vsub.s32 5, %v3654_v19 }
  0x31   :  { %3164 = vmatpush3.bf16.msra.mxu1 %v3427_v11  ;;  %5851 = vst [vmem:[#allocation5_spill] sm:$0xff] %v3657_v20  ;;  %5852 = vst [vmem:[#allocation6_spill] sm:$0xff] %v3660_v21  ;;  %v3672_v25 = vrot.slane %v291_v22, %v3657_v20  ;;  %v3675_v26 = vrot.slane %v291_v22, %v3660_v21  ;;  %3194 = vmatpush3.bf16.msra.mxu0 %v3434_v23  ;;  %vm296_vm1 = vcmp.lt.s32.totalorder %v3654_v19, 7  ;;  %v3438_v56 = vld [vmem:[%s5749_s7 + $0x20] sm:$0xff]   ;;  %v3745_v63 = vld [vmem:[%s5745_s3 + $0x8] ss:$0 sm:$0xff] }
  0x32   :  { %3165 = vmatprep.subr.bf16.mxu1 %v3428_v12  ;;  %5853 = vst [vmem:[#allocation7_spill] sm:$0xff] %v3678_v27  ;;  %3195 = vmatprep.subr.bf16.mxu0 %v3435_v24  ;;  %5854 = vst [vmem:[#allocation8_spill] sm:$0xff] %v3689_v30  ;;  %v3694_v33 = vrot.slane %v291_v22, %v3678_v27  ;;  %v3707_v40 = vrot.slane %v291_v22, %v3689_v30  ;;  %vm297_vm2 = vcmp.gt.s32.totalorder %v3654_v19, 0 }
  0x33   :  { %v333_v31 = vmul.f32 0.0, %v3675_v26  ;;  %v367_v32 = vmul.f32 0.0, %v3672_v25  ;;  %5855 = vst [vmem:[#allocation9_spill] sm:$0xff] %v3698_v37  ;;  %5856 = vst [vmem:[#allocation10_spill] sm:$0xff] %v3701_v38  ;;  %v3724_v54 = vrot.slane %v291_v22, %v3698_v37  ;;  %v3727_v55 = vrot.slane %v291_v22, %v3701_v38 }
  0x34   :  { %5857 = vst [vmem:[#allocation11_spill] sm:$0xff] %v3711_v42  ;;  %5858 = vst [vmem:[#allocation12_spill] sm:$0xff] %v3714_v43  ;;  %v432_v47 = vmul.f32 0.0, %v3694_v33  ;;  %v3733_v58 = vrot.slane %v291_v22, %v3711_v42  ;;  %v3736_v59 = vrot.slane %v291_v22, %v3714_v43  ;;  %v3755_v6 = vmul.f32 0.0, %v3745_v63 }
  0x35   :  { %3166 = vmatpush3.bf16.msra.mxu1 %v3428_v12  ;;  %3196 = vmatpush3.bf16.msra.mxu0 %v3435_v24  ;;  %v382_v46 = vadd.f32 %v367_v32, %v333_v31  ;;  %v3748_v0 = vmul.f32 0.0, %v3724_v54  ;;  %v3751_v1 = vmul.f32 0.0, %v3727_v55  ;;  %v3439_v12 = vld [vmem:[%s5749_s7 + $0x28] sm:$0xff]  }
  0x36   :  { %3167 = vmatprep.subr.bf16.mxu1 %v3429_v13  ;;  %3197 = vmatprep.subr.bf16.mxu0 %v3436_v28  ;;  %5861 = vst [vmem:[#allocation15_spill] sm:$0xff] %v3755_v6 }
  0x37   :  { %v3738_v61 = vadd.f32 %v432_v47, %v382_v46  ;;  %5859 = vst [vmem:[#allocation13_spill] sm:$0xff] %v3748_v0  ;;  %5860 = vst [vmem:[#allocation14_spill] sm:$0xff] %v3751_v1 }
  0x39   :  { %3168 = vmatpush3.bf16.msra.mxu1 %v3429_v13  ;;  %3198 = vmatpush3.bf16.msra.mxu0 %v3436_v28 }
  0x3a   :  { %3169 = vmatprep.subr.bf16.mxu1 %v3430_v14  ;;  %3199 = vmatprep.subr.bf16.mxu0 %v3437_v39 }
  0x3d   :  { %3170 = vmatpush3.bf16.msra.mxu1 %v3430_v14  ;;  %3200 = vmatpush3.bf16.msra.mxu0 %v3437_v39 }
  0x3e   :  { %3171 = vmatprep.subr.bf16.mxu1 %v3431_v15  ;;  %3201 = vmatprep.subr.bf16.mxu0 %v3438_v56 }
  0x41   :  { %3172 = vmatpush3.bf16.msra.mxu1 %v3431_v15  ;;  %3202 = vmatpush3.bf16.msra.mxu0 %v3438_v56 }
  0x42   :  { %3173 = vmatprep.subr.bf16.mxu1 %v3432_v16  ;;  %3203 = vmatprep.subr.bf16.mxu0 %v3439_v12 }
  0x45   :  { %3174 = vmatpush3.bf16.msra.mxu1 %v3432_v16  ;;  %3204 = vmatpush3.bf16.msra.mxu0 %v3439_v12 }
  0x46   :  { %3175 = vmatprep.subr.bf16.mxu1 %v3433_v17 }
  0x49   :  { %3176 = vmatpush3.bf16.msra.mxu1 %v3433_v17 }
  0xe5   :  { %v3147_v34 = vpop.f32.mrb[0].mxu0 }
  0xe6   :  { %v205_v35 = vadd.f32 %v3147_v34, %v3686_v29  ;;  %v196_v36 = vpop.f32.mrb[1].mxu0 }
  0xe7   :  { %v197_v41 = vadd.f32 %v3686_v29, %v196_v36  ;;  %v3148_v44 = vpop.f32.mrb[2].mxu0 }
  0xe8   :  { %v261_v45 = vmax.f32 %v205_v35, 0.0  ;;  %v208_v48 = vadd.f32 %v3148_v44, %v3686_v29  ;;  %v199_v49 = vpop.f32.mrb[3].mxu0 }
  0xe9   :  { %v259_v50 = vmax.f32 %v197_v41, 0.0  ;;  %v200_v51 = vadd.f32 %v3686_v29, %v199_v49 }
  0xea   :  { %v3721_v52 = vmin.f32 %v261_v45, 6.0  ;;  %v262_v53 = vmax.f32 %v208_v48, 0.0 }
  0xeb   :  { %v275_v57 = vmin.f32 %v259_v50, 6.0  ;;  %v260_v60 = vmax.f32 %v200_v51, 0.0 }
  0xec   :  { %v3740_v62 = vmin.f32 %v262_v53, 6.0  ;;  %v300_v2 = vrot.slane %v3721_v52, 7  ;;  %v3759_v7 = vmul.f32 %v3672_v25, %v3721_v52  ;;  %v3763_v8 = vmul.f32 %v3707_v40, %v3721_v52 }
  0xed   :  { %v298_v3 = vrot.slane %v275_v57, 7  ;;  %v397_v4 = vrot.slane %v275_v57, 1  ;;  %v3151_v5 = vpop.f32.mrb[4].mxu0  ;;  %v368_v9 = vmul.f32 %v3672_v25, %v275_v57  ;;  %v3774_v15 = vmin.f32 %v260_v60, 6.0 }
  0xee   :  { %v301_v10 = vrot.slane %v3740_v62, 7  ;;  %v212_v11 = vpop.f32.mrb[5].mxu0  ;;  %v221_v16 = vadd.f32 %v3151_v5, %v3686_v29  ;;  %v506_v23 = vmul.f32 %v3707_v40, %v275_v57  ;;  %v371_v24 = vmul.f32 %v3672_v25, %v3740_v62 }
  0xef   :  { %v315_v13 = vsel %vm297_vm2, %v298_v3, 0.0  ;;  %v414_v14 = vsel %vm296_vm1, %v397_v4, 0.0  ;;  %v3152_v17 = vpop.f32.mrb[6].mxu0  ;;  %v3789_v34 = vmul.f32 %v3707_v40, %v3740_v62  ;;  %v299_v35 = vrot.slane %v3774_v15, 7 }
  0xf0   :  { %v334_v18 = vmul.f32 %v3675_v26, %v315_v13  ;;  %v470_v22 = vmul.f32 %v3733_v58, %v315_v13  ;;  %v215_v28 = vpop.f32.mrb[7].mxu0  ;;  %v3784_v31 = vsel %vm297_vm2, %v301_v10, 0.0  ;;  %v433_v39 = vmul.f32 %v3694_v33, %v414_v14 }
  0xf1   :  { %v265_v44 = vmax.f32 %v221_v16, 0.0  ;;  %v337_v45 = vmul.f32 %v3675_v26, %v3784_v31  ;;  %v213_v46 = vadd.f32 %v3686_v29, %v212_v11  ;;  %v224_v47 = vadd.f32 %v3152_v17, %v3686_v29 }
  0xf2   :  { %v383_v36 = vadd.f32 %v368_v9, %v334_v18  ;;  %v486_v41 = vadd.f32 %v470_v22, %v3738_v61  ;;  %v216_v48 = vadd.f32 %v3686_v29, %v215_v28  ;;  %v3800_v49 = vmul.f32 %v3736_v59, %v414_v14 }
  0xf3   :  { %v3804_v50 = vmul.f32 %v3672_v25, %v3774_v15  ;;  %v3808_v51 = vmul.f32 %v3707_v40, %v3774_v15  ;;  %v3810_v53 = vmin.f32 %v265_v44, 6.0  ;;  %v263_v56 = vmax.f32 %v213_v46, 0.0 }
  0xf4   :  { %v266_v57 = vmax.f32 %v224_v47, 0.0  ;;  %v264_v60 = vmax.f32 %v216_v48, 0.0  ;;  %v3814_v4 = vsel %vm297_vm2, %v299_v35, 0.0  ;;  %v3816_v5 = vadd.f32 %v433_v39, %v383_v36 }
  0xf5   :  { %v3155_v3 = vpop.f32.mrb[8].mxu0  ;;  %v3818_v9 = vadd.f32 %v506_v23, %v486_v41  ;;  %v304_v10 = vrot.slane %v3810_v53, 7  ;;  %v403_v11 = vrot.slane %v3810_v53, 1  ;;  %v3822_v14 = vadd.f32 %v371_v24, %v337_v45 }
  0xf6   :  { %v228_v13 = vpop.f32.mrb[9].mxu0  ;;  %v3824_v16 = vmin.f32 %v263_v56, 6.0  ;;  %v282_v17 = vmin.f32 %v266_v57, 6.0  ;;  %v3828_v22 = vsel %vm297_vm2, %v300_v2, 0.0  ;;  %v374_v23 = vmul.f32 %v3672_v25, %v3810_v53 }
  0xf7   :  { %v3156_v18 = vpop.f32.mrb[10].mxu0  ;;  %v3832_v12 = vsel %vm297_vm2, %v304_v10, 0.0  ;;  %v3838_v28 = vsel %vm296_vm1, %v403_v11, 0.0  ;;  %v3842_v24 = vmul.f32 %v3707_v40, %v3810_v53  ;;  %v3847_v39 = vmin.f32 %v264_v60, 6.0 }
  0xf8   :  { %5862 = vst [vmem:[#allocation16_spill] sm:$0xff] %v3838_v28  ;;  %v231_v35 = vpop.f32.mrb[11].mxu0  ;;  %v340_v2 = vmul.f32 %v3675_v26, %v3832_v12  ;;  %v302_v36 = vrot.slane %v3824_v16, 7  ;;  %v237_v41 = vadd.f32 %v3155_v3, %v3686_v29  ;;  %v3852_v44 = vmul.f32 %v3733_v58, %v3832_v12 }
  0xf9   :  { %5863 = vst [vmem:[#allocation17_spill] sm:$0xff] %v3842_v24  ;;  %v462_v45 = vrot.slane %v282_v17, 7  ;;  %v229_v46 = vadd.f32 %v3686_v29, %v228_v13  ;;  %v240_v47 = vadd.f32 %v3156_v18, %v3686_v29  ;;  %v439_v57 = vmul.f32 %v3694_v33, %v3838_v28 }
  0xfa   :  { %5864 = vst [vmem:[#allocation18_spill] sm:$0xff] %v3852_v44  ;;  %v389_v48 = vadd.f32 %v374_v23, %v340_v2  ;;  %v3858_v56 = vsel %vm297_vm2, %v302_v36, 0.0  ;;  %v538_v60 = vrot.slane %v282_v17, 1  ;;  %v372_v10 = vmul.f32 %v3672_v25, %v3824_v16 }
  0xfb   :  { %v338_v3 = vmul.f32 %v3675_v26, %v3858_v56  ;;  %v464_v13 = vsel %vm297_vm2, %v462_v45, 0.0  ;;  %v3871_v18 = vmul.f32 %v3707_v40, %v3824_v16  ;;  %v513_v36 = vmul.f32 %v3707_v40, %v282_v17 }
  0xfc   :  { %v454_v23 = vadd.f32 %v439_v57, %v389_v48  ;;  %v477_v2 = vmul.f32 %v3733_v58, %v464_v13  ;;  %v3877_v43 = vmul.f32 %v3733_v58, %v3858_v56  ;;  %v3881_v11 = vsel %vm296_vm1, %v538_v60, 0.0 }
  0xfd   :  { %v3159_v32 = vpop.f32.mrb[12].mxu0  ;;  %5865 = vst [vmem:[#allocation19_spill] sm:$0xff] %v3881_v11  ;;  %v3884_v45 = vmul.f32 %v3727_v55, %v282_v17  ;;  %v303_v42 = vrot.slane %v3847_v39, 7  ;;  %v3887_v48 = vadd.f32 %v372_v10, %v338_v3  ;;  %v3890_v37 = vmul.f32 %v3724_v54, %v464_v13 }
  0xfe   :  { %v244_v38 = vpop.f32.mrb[13].mxu0  ;;  %v493_v57 = vadd.f32 %v477_v2, %v454_v23  ;;  %v269_v30 = vmax.f32 %v237_v41, 0.0  ;;  %v267_v60 = vmax.f32 %v229_v46, 0.0  ;;  %v270_v21 = vmax.f32 %v240_v47, 0.0 }
  0xff   :  { %5866 = vst [vmem:[#allocation20_spill] sm:$0xff] %v3884_v45  ;;  %5867 = vst [vmem:[#allocation21_spill] sm:$0xff] %v3890_v37  ;;  %v3160_v27 = vpop.f32.mrb[14].mxu0  ;;  %v3894_v20 = vsel %vm297_vm2, %v303_v42, 0.0  ;;  %v232_v17 = vadd.f32 %v3686_v29, %v231_v35  ;;  %v553_v3 = vmul.f32 %v3736_v59, %v3881_v11  ;;  %v373_v41 = vmul.f32 %v3672_v25, %v3847_v39 }
 0x100   :  { %v247_v45 = vpop.f32.mrb[15].mxu0  ;;  %v529_v6 = vadd.f32 %v513_v36, %v493_v57  ;;  %v339_v10 = vmul.f32 %v3675_v26, %v3894_v20  ;;  %v3901_v13 = vmin.f32 %v269_v30, 6.0  ;;  %v283_v23 = vmin.f32 %v267_v60, 6.0 }
 0x101   :  { %v3906_v46 = vmin.f32 %v270_v21, 6.0  ;;  %v3912_v35 = vmul.f32 %v3733_v58, %v3894_v20  ;;  %v3916_v2 = vmul.f32 %v3707_v40, %v3847_v39  ;;  %v268_v37 = vmax.f32 %v232_v17, 0.0 }
 0x102   :  { %5868 = vst [vmem:[#allocation22_spill] sm:$0xff] %v3901_v13  ;;  %v3908_v47 = vadd.f32 %v553_v3, %v529_v6  ;;  %v307_v30 = vrot.slane %v3901_v13, 7  ;;  %v3919_v36 = vadd.f32 %v373_v41, %v339_v10  ;;  %v305_v57 = vrot.slane %v283_v23, 7 }
 0x103   :  { %v253_v60 = vadd.f32 %v3159_v32, %v3686_v29  ;;  %v377_v6 = vmul.f32 %v3672_v25, %v3901_v13  ;;  %v404_v3 = vrot.slane %v283_v23, 1  ;;  %v308_v42 = vrot.slane %v3906_v46, 7 }
 0x104   :  { %5869 = vst [vmem:[#allocation23_spill] sm:$0xff] %v3908_v47  ;;  %v3924_v21 = vsel %vm297_vm2, %v307_v30, 0.0  ;;  %v322_v17 = vsel %vm297_vm2, %v305_v57, 0.0  ;;  %v375_v32 = vmul.f32 %v3672_v25, %v283_v23  ;;  %v3949_v57 = vmul.f32 %v3707_v40, %v3901_v13 }
 0x105   :  { %5870 = vst [vmem:[#allocation24_spill] sm:$0xff] %v3924_v21  ;;  %v343_v11 = vmul.f32 %v3675_v26, %v3924_v21  ;;  %v341_v41 = vmul.f32 %v3675_v26, %v322_v17  ;;  %v421_v30 = vsel %vm296_vm1, %v404_v3, 0.0  ;;  %v478_v1 = vmul.f32 %v3733_v58, %v322_v17 }
 0x106   :  { %v3941_v24 = vsel %vm297_vm2, %v308_v42, 0.0  ;;  %v3945_v0 = vmul.f32 %v3733_v58, %v3924_v21  ;;  %5873 = vst [vmem:[#allocation27_spill] sm:$0xff] %v3949_v57  ;;  %v514_v10 = vmul.f32 %v3707_v40, %v283_v23  ;;  %v378_v42 = vmul.f32 %v3672_v25, %v3906_v46 }
 0x107   :  { %5871 = vst [vmem:[#allocation25_spill] sm:$0xff] %v3941_v24  ;;  %v344_v47 = vmul.f32 %v3675_v26, %v3941_v24  ;;  %v3954_v3 = vadd.f32 %v377_v6, %v343_v11  ;;  %v390_v17 = vadd.f32 %v375_v32, %v341_v41  ;;  %v494_v44 = vadd.f32 %v478_v1, %v3738_v61 }
 0x108   :  { %5872 = vst [vmem:[#allocation26_spill] sm:$0xff] %v3945_v0  ;;  %v440_v21 = vmul.f32 %v3694_v33, %v421_v30  ;;  %v554_v0 = vmul.f32 %v3736_v59, %v421_v30  ;;  %v3961_v28 = vmin.f32 %v268_v37, 6.0  ;;  %v273_v57 = vmax.f32 %v253_v60, 0.0 }
 0x109   :  { %v3966_v13 = vmul.f32 %v3733_v58, %v3941_v24  ;;  %v245_v11 = vadd.f32 %v3686_v29, %v244_v38  ;;  %v256_v61 = vadd.f32 %v3160_v27, %v3686_v29  ;;  %v530_v1 = vadd.f32 %v514_v10, %v494_v44 }
 0x10a   :  { %v3970_v6 = vadd.f32 %v378_v42, %v344_v47  ;;  %v3974_v32 = vmul.f32 %v3707_v40, %v3906_v46  ;;  %v306_v37 = vrot.slane %v3961_v28, 7  ;;  %v455_v60 = vadd.f32 %v440_v21, %v390_v17 }
 0x10b   :  { %v3977_v41 = vmin.f32 %v273_v57, 6.0  ;;  %v271_v30 = vmax.f32 %v245_v11, 0.0  ;;  %v274_v23 = vmax.f32 %v256_v61, 0.0  ;;  %v376_v27 = vmul.f32 %v3672_v25, %v3961_v28 }
 0x10c   :  { %5874 = vst [vmem:[#allocation28_spill] sm:$0xff] %v3970_v6  ;;  %5875 = vst [vmem:[#allocation29_spill] sm:$0xff] %v3974_v32  ;;  %v3981_v24 = vsel %vm297_vm2, %v306_v37, 0.0  ;;  %v248_v44 = vadd.f32 %v3686_v29, %v247_v45  ;;  %v515_v10 = vmul.f32 %v3707_v40, %v3961_v28  ;;  %v3994_v17 = vadd.f32 %v554_v0, %v530_v1 }
 0x10d   :  { %5876 = vst [vmem:[#allocation30_spill] sm:$0xff] %v3977_v41  ;;  %v342_v47 = vmul.f32 %v3675_v26, %v3981_v24  ;;  %v479_v21 = vmul.f32 %v3733_v58, %v3981_v24  ;;  %v311_v57 = vrot.slane %v3977_v41, 7  ;;  %v410_v42 = vrot.slane %v3977_v41, 1 }
 0x10e   :  { %v3997_v11 = vmin.f32 %v271_v30, 6.0  ;;  %v3999_v61 = vmin.f32 %v274_v23, 6.0  ;;  %v381_v37 = vmul.f32 %v3672_v25, %v3977_v41  ;;  %v335_v38 = vmul.f32 %v3675_v26, %v3814_v4 }
 0x10f   :  { %v495_v29 = vadd.f32 %v479_v21, %v455_v60  ;;  %v4003_v45 = vsel %vm297_vm2, %v311_v57, 0.0  ;;  %v4013_v1 = vsel %vm296_vm1, %v410_v42, 0.0  ;;  %v272_v60 = vmax.f32 %v248_v44, 0.0 }
 0x110   :  { %5877 = vst [vmem:[#allocation31_spill] sm:$0xff] %v3999_v61  ;;  %5878 = vst [vmem:[#allocation32_spill] sm:$0xff] %v4003_v45  ;;  %v347_v0 = vmul.f32 %v3675_v26, %v4003_v45  ;;  %v309_v23 = vrot.slane %v3997_v11, 7  ;;  %v4016_v30 = vadd.f32 %v376_v27, %v342_v47  ;;  %v4022_v57 = vmul.f32 %v3707_v40, %v3977_v41 }
 0x111   :  { %5879 = vst [vmem:[#allocation33_spill] sm:$0xff] %v4013_v1  ;;  %v4018_v21 = vadd.f32 %v515_v10, %v495_v29  ;;  %v336_v32 = vmul.f32 %v3675_v26, %v3828_v22  ;;  %v446_v42 = vmul.f32 %v3694_v33, %v4013_v1  ;;  %v463_v27 = vrot.slane %v3999_v61, 7 }
 0x112   :  { %5880 = vst [vmem:[#allocation34_spill] sm:$0xff] %v4022_v57  ;;  %v396_v6 = vadd.f32 %v381_v37, %v347_v0  ;;  %v4028_v45 = vsel %vm297_vm2, %v309_v23, 0.0  ;;  %v379_v47 = vmul.f32 %v3672_v25, %v3997_v11  ;;  %v539_v29 = vrot.slane %v3999_v61, 1 }
 0x113   :  { %v345_v44 = vmul.f32 %v3675_v26, %v4028_v45  ;;  %v4041_v37 = vmul.f32 %v3707_v40, %v3997_v11  ;;  %v4045_v23 = vsel %vm297_vm2, %v463_v27, 0.0  ;;  %v4047_v57 = vmin.f32 %v272_v60, 6.0 }
 0x114   :  { %v461_v0 = vadd.f32 %v446_v42, %v396_v6  ;;  %5882 = vst [vmem:[#allocation36_spill] sm:$0xff] %v4045_v23  ;;  %v4051_v1 = vmul.f32 %v3733_v58, %v4028_v45  ;;  %v485_v10 = vmul.f32 %v3733_v58, %v4045_v23  ;;  %v521_v41 = vmul.f32 %v3707_v40, %v3999_v61 }
 0x115   :  { %5881 = vst [vmem:[#allocation35_spill] sm:$0xff] %v4041_v37  ;;  %v4059_v37 = vsel %vm296_vm1, %v539_v29, 0.0  ;;  %v4061_v6 = vadd.f32 %v379_v47, %v345_v44  ;;  %v310_v42 = vrot.slane %v4047_v57, 7  ;;  %v380_v27 = vmul.f32 %v3672_v25, %v4047_v57 }
 0x116   :  { %5883 = vst [vmem:[#allocation37_spill] sm:$0xff] %v4051_v1  ;;  %5884 = vst [vmem:[#allocation38_spill] sm:$0xff] %v4059_v37  ;;  %v561_v60 = vmul.f32 %v3736_v59, %v4059_v37  ;;  %v501_v1 = vadd.f32 %v485_v10, %v461_v0  ;;  %v4071_v61 = vmul.f32 %v3707_v40, %v4047_v57  ;;  %v398_v47 = vrot.slane %v3774_v15, 1 }
 0x117   :  { %v384_v29 = vadd.f32 %v3804_v50, %v335_v38  ;;  %v4076_v44 = vsel %vm297_vm2, %v310_v42, 0.0  ;;  %v399_v37 = vrot.slane %v3721_v52, 1  ;;  %v471_v25 = vmul.f32 %v3733_v58, %v3814_v4 }
 0x118   :  { %5885 = vst [vmem:[#allocation39_spill] sm:$0xff] %v4071_v61  ;;  %5886 = vst [vmem:[#allocation40_spill] sm:$0xff] %v4076_v44  ;;  %v537_v10 = vadd.f32 %v521_v41, %v501_v1  ;;  %v346_v0 = vmul.f32 %v3675_v26, %v4076_v44  ;;  %v4086_v40 = vmul.f32 %v3733_v58, %v4076_v44  ;;  %v415_v38 = vsel %vm296_vm1, %v398_v47, 0.0 }
 0x119   :  { %v385_v50 = vadd.f32 %v3759_v7, %v336_v32  ;;  %v416_v42 = vsel %vm296_vm1, %v399_v37, 0.0  ;;  %v472_v23 = vmul.f32 %v3733_v58, %v3828_v22  ;;  %v487_v41 = vadd.f32 %v471_v25, %v3816_v5 }
 0x11a   :  { %5887 = vst [vmem:[#allocation41_spill] sm:$0xff] %v4086_v40  ;;  %v4096_v1 = vadd.f32 %v561_v60, %v537_v10  ;;  %v434_v26 = vmul.f32 %v3694_v33, %v415_v38  ;;  %v435_v44 = vmul.f32 %v3694_v33, %v416_v42  ;;  %v473_v7 = vmul.f32 %v3733_v58, %v3784_v31 }
 0x11b   :  { %v4102_v32 = vadd.f32 %v380_v27, %v346_v0  ;;  %v523_v47 = vadd.f32 %v3808_v51, %v487_v41  ;;  %v547_v37 = vmul.f32 %v3736_v59, %v415_v38  ;;  %v562_v61 = vadd.f32 %v3800_v49, %v3818_v9 }
 0x11c   :  { %5888 = vst [vmem:[#allocation42_spill] sm:$0xff] %v4096_v1  ;;  %v449_v40 = vadd.f32 %v434_v26, %v384_v29  ;;  %v450_v5 = vadd.f32 %v435_v44, %v385_v50  ;;  %v548_v60 = vmul.f32 %v3736_v59, %v416_v42  ;;  %v582_v25 = vmul.f32 %v3724_v54, %v3814_v4 }
 0x11d   :  { %v563_v10 = vadd.f32 %v547_v37, %v523_v47  ;;  %v583_v1 = vmul.f32 %v3724_v54, %v3828_v22  ;;  %v617_v27 = vmul.f32 %v3727_v55, %v3774_v15  ;;  %v618_v51 = vmul.f32 %v3727_v55, %v3721_v52 }
 0x11e   :  { %v488_v0 = vadd.f32 %v472_v23, %v449_v40  ;;  %v489_v41 = vadd.f32 %v473_v7, %v450_v5  ;;  %v597_v49 = vadd.f32 %v582_v25, %v562_v61  ;;  %v652_v9 = vmul.f32 %v3745_v63, %v415_v38  ;;  %v4134_v38 = vld [vmem:[%s5746_s4] ss:$0 sm:$0xff] }
 0x11f   :  { %v598_v29 = vadd.f32 %v583_v1, %v563_v10  ;;  %v653_v44 = vmul.f32 %v3745_v63, %v416_v42  ;;  %v5889_v4 = vrot.slane %v3740_v62, 1  ;;  %v5890_v22 = vrot.slane %v3824_v16, 1 }
 0x120   :  { %v524_v52 = vadd.f32 %v3763_v8, %v488_v0  ;;  %v632_v23 = vadd.f32 %v617_v27, %v597_v49  ;;  %v584_v40 = vmul.f32 %v3724_v54, %v3784_v31  ;;  %v525_v26 = vadd.f32 %v3789_v34, %v489_v41 }
 0x121   :  { %v417_v50 = vsel %vm296_vm1, %v5889_v4, 0.0  ;;  %v418_v15 = vsel %vm296_vm1, %v5890_v22, 0.0  ;;  %v633_v42 = vadd.f32 %v618_v51, %v598_v29  ;;  %v585_v27 = vmul.f32 %v3724_v54, %v3858_v56 }
 0x122   :  { %v436_v61 = vmul.f32 %v3694_v33, %v417_v50  ;;  %v437_v1 = vmul.f32 %v3694_v33, %v418_v15  ;;  %v549_v7 = vmul.f32 %v3736_v59, %v417_v50  ;;  %v564_v47 = vadd.f32 %v548_v60, %v524_v52 }
 0x123   :  { %v667_v8 = vadd.f32 %v652_v9, %v632_v23  ;;  %v550_v5 = vmul.f32 %v3736_v59, %v418_v15  ;;  %v668_v25 = vadd.f32 %v653_v44, %v633_v42  ;;  %v619_v34 = vmul.f32 %v3727_v55, %v3740_v62 }
 0x124   :  { %v451_v37 = vadd.f32 %v436_v61, %v3822_v14  ;;  %v452_v31 = vadd.f32 %v437_v1, %v3887_v48  ;;  %v565_v10 = vadd.f32 %v549_v7, %v525_v26  ;;  %v599_v0 = vadd.f32 %v584_v40, %v564_v47 }
 0x125   :  { %v689_v51 = vadd.f32 %v4134_v38, %v667_v8  ;;  %v620_v60 = vmul.f32 %v3727_v55, %v3824_v16  ;;  %v690_v14 = vadd.f32 %v4134_v38, %v668_v25  ;;  %v654_v49 = vmul.f32 %v3745_v63, %v417_v50 }
 0x126   :  { %v600_v41 = vadd.f32 %v585_v27, %v565_v10  ;;  %v5891_v48 = vrot.slane %v3847_v39, 1  ;;  %v634_v29 = vadd.f32 %v619_v34, %v599_v0  ;;  %v655_v44 = vmul.f32 %v3745_v63, %v418_v15  ;;  %v5892_v27 = vld [vmem:[#allocation16_spill] sm:$0xff] }
 0x127   :  { %v705_v56 = vmax.f32 %v689_v51, 0.0  ;;  %v490_v4 = vadd.f32 %v3877_v43, %v451_v37  ;;  %v706_v62 = vmax.f32 %v690_v14, 0.0  ;;  %v491_v52 = vadd.f32 %v3912_v35, %v452_v31  ;;  %v5893_v51 = vld [vmem:[#allocation18_spill] sm:$0xff]  ;;  %v5894_v14 = vld [vmem:[#allocation23_spill] sm:$0xff] }
 0x128   :  { %v419_v9 = vsel %vm296_vm1, %v5891_v48, 0.0  ;;  %v635_v22 = vadd.f32 %v620_v60, %v600_v41  ;;  %v669_v61 = vadd.f32 %v654_v49, %v634_v29  ;;  %v586_v47 = vmul.f32 %v3724_v54, %v3894_v20  ;;  %v5895_v41 = vld [vmem:[#allocation13_spill] sm:$0xff] }
 0x129   :  { %v438_v16 = vmul.f32 %v3694_v33, %v419_v9  ;;  %v721_v23 = vmin.f32 %v705_v56, 6.0  ;;  %v526_v50 = vadd.f32 %v3871_v18, %v490_v4  ;;  %v551_v40 = vmul.f32 %v3736_v59, %v419_v9  ;;  %v5896_v56 = vld [vmem:[#allocation17_spill] sm:$0xff] }
 0x12a   :  { %v722_v42 = vmin.f32 %v706_v62, 6.0  ;;  %v670_v1 = vadd.f32 %v655_v44, %v635_v22  ;;  %v527_v15 = vadd.f32 %v3916_v2, %v491_v52  ;;  %v691_v43 = vadd.f32 %v4134_v38, %v669_v61  ;;  %v5898_v62 = vld [vmem:[#allocation14_spill] sm:$0xff] }
 0x12b   :  { %v453_v26 = vadd.f32 %v438_v16, %v3919_v36  ;;  %v566_v7 = vadd.f32 %v550_v5, %v526_v50  ;;  %v587_v35 = vmul.f32 %v3724_v54, %v3832_v12  ;;  %v621_v25 = vmul.f32 %v3727_v55, %v3847_v39  ;;  %v5899_v16 = vld [vmem:[#allocation22_spill] sm:$0xff] }
 0x12c   :  { %v737_v8 = vpack.c.bf16 %v722_v42, %v721_v23  ;;  %v692_v18 = vadd.f32 %v4134_v38, %v670_v1  ;;  %v567_v37 = vadd.f32 %v551_v40, %v527_v15  ;;  %v707_v31 = vmax.f32 %v691_v43, 0.0  ;;  %v5901_v15 = vld [vmem:[#allocation19_spill] sm:$0xff] }
 0x12d   :  { %v601_v36 = vadd.f32 %v586_v47, %v566_v7  ;;  %v622_v2 = vmul.f32 %v3727_v55, %v3810_v53  ;;  %v656_v5 = vmul.f32 %v3745_v63, %v419_v9  ;;  %v657_v12 = vmul.f32 %v3745_v63, %v5892_v27  ;;  %v5902_v7 = vld [vmem:[#allocation15_spill] sm:$0xff] }
 0x12e   :  { %3177 = vmatprep.mubr.bf16.mxu1 %v737_v8  ;;  %v708_v10 = vmax.f32 %v692_v18, 0.0  ;;  %v602_v20 = vadd.f32 %v587_v35, %v567_v37  ;;  %v492_v0 = vadd.f32 %v5893_v51, %v453_v26  ;;  %v723_v34 = vmin.f32 %v707_v31, 6.0  ;;  %v5903_v18 = vld [vmem:[#allocation21_spill] sm:$0xff] }
 0x12f   :  { %v636_v60 = vadd.f32 %v621_v25, %v601_v36  ;;  %v552_v39 = vmul.f32 %v3736_v59, %v5892_v27  ;;  %v604_v49 = vadd.f32 %v5895_v41, %v5894_v14  ;;  %v5897_v29 = vrot.slane %v3961_v28, 1  ;;  %v5904_v27 = vld [vmem:[#allocation20_spill] sm:$0xff] }
 0x130   :  { %v724_v48 = vmin.f32 %v708_v10, 6.0  ;;  %v637_v53 = vadd.f32 %v622_v2, %v602_v20  ;;  %v528_v9 = vadd.f32 %v5896_v56, %v492_v0  ;;  %v5900_v52 = vrot.slane %v5899_v16, 1  ;;  %v5905_v0 = vld [vmem:[#allocation24_spill] sm:$0xff] }
 0x131   :  { %v422_v44 = vsel %vm296_vm1, %v5897_v29, 0.0  ;;  %v671_v4 = vadd.f32 %v656_v5, %v636_v60  ;;  %v639_v22 = vadd.f32 %v5898_v62, %v604_v49  ;;  %v658_v43 = vmul.f32 %v3745_v63, %v5901_v15 }
 0x132   :  { %v423_v23 = vsel %vm296_vm1, %v5900_v52, 0.0  ;;  %v441_v61 = vmul.f32 %v3694_v33, %v422_v44  ;;  %v738_v50 = vpack.c.bf16 %v724_v48, %v723_v34  ;;  %v672_v40 = vadd.f32 %v657_v12, %v637_v53 }
 0x133   :  { %v568_v42 = vadd.f32 %v552_v39, %v528_v9  ;;  %v442_v1 = vmul.f32 %v3694_v33, %v423_v23  ;;  %v693_v26 = vadd.f32 %v4134_v38, %v671_v4  ;;  %v674_v47 = vadd.f32 %v5902_v7, %v639_v22 }
 0x134   :  { %v555_v35 = vmul.f32 %v3736_v59, %v422_v44  ;;  %3178 = vmatmul.mubr.bf16.vlgmr.msra.gmra.mrb[0].mxu1 %v738_v50  ;;  %v694_v8 = vadd.f32 %v4134_v38, %v672_v40  ;;  %v456_v25 = vadd.f32 %v441_v61, %v4016_v30  ;;  %v590_v10 = vmul.f32 %v3724_v54, %v3981_v24  ;;  %v5908_v50 = vld [vmem:[#allocation26_spill] sm:$0xff] }
 0x135   :  { %v603_v37 = vadd.f32 %v5903_v18, %v568_v42  ;;  %v457_v31 = vadd.f32 %v442_v1, %v3954_v3  ;;  %v709_v36 = vmax.f32 %v693_v26, 0.0  ;;  %v696_v2 = vadd.f32 %v4134_v38, %v674_v47 }
 0x136   :  { %v571_v5 = vadd.f32 %v555_v35, %v4018_v21  ;;  %v710_v20 = vmax.f32 %v694_v8, 0.0  ;;  %v556_v51 = vmul.f32 %v3736_v59, %v423_v23  ;;  %v591_v34 = vmul.f32 %v3724_v54, %v5905_v0  ;;  %v5910_v35 = vld [vmem:[#allocation27_spill] sm:$0xff] }
 0x137   :  { %v638_v12 = vadd.f32 %v5904_v27, %v603_v37  ;;  %v725_v60 = vmin.f32 %v709_v36, 6.0  ;;  %v712_v30 = vmax.f32 %v696_v2, 0.0  ;;  %v605_v3 = vadd.f32 %v590_v10, %v3994_v17  ;;  %v5911_v2 = vld [vmem:[#allocation29_spill] sm:$0xff] }
 0x138   :  { %v625_v39 = vmul.f32 %v3727_v55, %v3961_v28  ;;  %v726_v14 = vmin.f32 %v710_v20, 6.0  ;;  %v606_v49 = vadd.f32 %v591_v34, %v571_v5  ;;  %v626_v24 = vmul.f32 %v3727_v55, %v5899_v16  ;;  %v5912_v27 = vld [vmem:[#allocation25_spill] sm:$0xff] }
 0x139   :  { %v673_v21 = vadd.f32 %v658_v43, %v638_v12  ;;  %v660_v53 = vmul.f32 %v3745_v63, %v422_v44  ;;  %v661_v56 = vmul.f32 %v3745_v63, %v423_v23  ;;  %v5906_v9 = vrot.slane %v3906_v46, 1  ;;  %v5909_v43 = vld [vmem:[#allocation28_spill] sm:$0xff] }
 0x13a   :  { %v640_v48 = vadd.f32 %v625_v39, %v605_v3  ;;  %v739_v17 = vpack.c.bf16 %v726_v14, %v725_v60  ;;  %v641_v28 = vadd.f32 %v626_v24, %v606_v49  ;;  %v5907_v22 = vrot.slane %v3997_v11, 1 }
 0x13b   :  { %v424_v29 = vsel %vm296_vm1, %v5906_v9, 0.0  ;;  %v695_v4 = vadd.f32 %v4134_v38, %v673_v21  ;;  %v728_v16 = vmin.f32 %v712_v30, 6.0  ;;  %v496_v23 = vadd.f32 %v5908_v50, %v456_v25  ;;  %v5915_v9 = vld [vmem:[#allocation41_spill] sm:$0xff] }
 0x13c   :  { %v425_v52 = vsel %vm296_vm1, %v5907_v22, 0.0  ;;  %v675_v61 = vadd.f32 %v660_v53, %v640_v48  ;;  %v443_v44 = vmul.f32 %v3694_v33, %v424_v29  ;;  %3181 = vmatprep.mubr.bf16.mxu1 %v739_v17  ;;  %v676_v42 = vadd.f32 %v661_v56, %v641_v28  ;;  %v5914_v53 = vld [vmem:[#allocation37_spill] sm:$0xff] }
 0x13d   :  { %v711_v40 = vmax.f32 %v695_v4, 0.0  ;;  %v444_v1 = vmul.f32 %v3694_v33, %v425_v52  ;;  %v497_v26 = vadd.f32 %v3966_v13, %v457_v31  ;;  %v532_v8 = vadd.f32 %v5910_v35, %v496_v23  ;;  %v5918_v23 = vld [vmem:[#allocation32_spill] sm:$0xff]  ;;  %v5920_v35 = vld [vmem:[#allocation30_spill] sm:$0xff] }
 0x13e   :  { %v697_v15 = vadd.f32 %v4134_v38, %v675_v61  ;;  %v458_v47 = vadd.f32 %v443_v44, %v5909_v43  ;;  %v557_v18 = vmul.f32 %v3736_v59, %v424_v29  ;;  %v698_v36 = vadd.f32 %v4134_v38, %v676_v42  ;;  %v5917_v44 = vld [vmem:[#allocation39_spill] sm:$0xff]  ;;  %v5919_v42 = vld [vmem:[#allocation40_spill] sm:$0xff] }
 0x13f   :  { %v727_v37 = vmin.f32 %v711_v40, 6.0  ;;  %v459_v25 = vadd.f32 %v444_v1, %v4061_v6  ;;  %v533_v5 = vadd.f32 %v5911_v2, %v497_v26  ;;  %v572_v20 = vadd.f32 %v556_v51, %v532_v8  ;;  %v5921_v2 = vld [vmem:[#allocation42_spill] sm:$0xff] }
 0x140   :  { %v713_v10 = vmax.f32 %v697_v15, 0.0  ;;  %v592_v13 = vmul.f32 %v3724_v54, %v5912_v27  ;;  %v593_v31 = vmul.f32 %v3724_v54, %v4028_v45  ;;  %v714_v0 = vmax.f32 %v698_v36, 0.0 }
 0x141   :  { %v740_v12 = vpack.c.bf16 %v728_v16, %v727_v37  ;;  %v558_v34 = vmul.f32 %v3736_v59, %v425_v52  ;;  %v573_v60 = vadd.f32 %v557_v18, %v533_v5  ;;  %v627_v6 = vmul.f32 %v3727_v55, %v3906_v46  ;;  %v5916_v16 = vld [vmem:[#allocation35_spill] sm:$0xff] }
 0x142   :  { %v729_v30 = vmin.f32 %v713_v10, 6.0  ;;  %v607_v3 = vadd.f32 %v592_v13, %v572_v20  ;;  %v628_v39 = vmul.f32 %v3727_v55, %v3997_v11  ;;  %v730_v51 = vmin.f32 %v714_v0, 6.0  ;;  %v5922_v20 = vld [vmem:[#allocation33_spill] sm:$0xff]  ;;  %v5923_v13 = vld [vmem:[#allocation34_spill] sm:$0xff] }
 0x143   :  { %3182 = vmatmul.mubr.bf16.gmra.mrb[4].mxu1 %v740_v12  ;;  %v608_v14 = vadd.f32 %v593_v31, %v573_v60  ;;  %v662_v21 = vmul.f32 %v3745_v63, %v424_v29  ;;  %v5913_v45 = vrot.slane %v4047_v57, 1  ;;  %v498_v56 = vadd.f32 %v5914_v53, %v458_v47  ;;  %v5926_v53 = vld [vmem:[#allocation38_spill] sm:$0xff] }
 0x144   :  { %v642_v24 = vadd.f32 %v627_v6, %v607_v3  ;;  %v499_v46 = vadd.f32 %v5915_v9, %v459_v25  ;;  %v741_v17 = vpack.c.bf16 %v730_v51, %v729_v30  ;;  %v663_v11 = vmul.f32 %v3745_v63, %v425_v52  ;;  %v5924_v30 = vld [vmem:[#allocation36_spill] sm:$0xff] }
 0x145   :  { %v426_v49 = vsel %vm296_vm1, %v5913_v45, 0.0  ;;  %v643_v4 = vadd.f32 %v628_v39, %v608_v14  ;;  %v534_v61 = vadd.f32 %v5916_v16, %v498_v56  ;;  %v594_v1 = vmul.f32 %v3724_v54, %v5919_v42 }
 0x146   :  { %v445_v48 = vmul.f32 %v3694_v33, %v426_v49  ;;  %v559_v28 = vmul.f32 %v3736_v59, %v426_v49  ;;  %v677_v22 = vadd.f32 %v662_v21, %v642_v24  ;;  %v535_v50 = vadd.f32 %v5917_v44, %v499_v46  ;;  %3185 = vmatprep.mubr.bf16.mxu1 %v741_v17  ;;  %v5925_v21 = vld [vmem:[#allocation31_spill] sm:$0xff] }
 0x147   :  { %v484_v33 = vmul.f32 %v3733_v58, %v5918_v23  ;;  %v678_v40 = vadd.f32 %v663_v11, %v643_v4  ;;  %v595_v52 = vmul.f32 %v3724_v54, %v5918_v23  ;;  %v574_v15 = vadd.f32 %v558_v34, %v534_v61  ;;  %v3441_v44 = vld [vmem:[%s5749_s7 + $0x38] sm:$0xff]  }
 0x148   :  { %v460_v29 = vadd.f32 %v445_v48, %v4102_v32  ;;  %v699_v26 = vadd.f32 %v4134_v38, %v677_v22  ;;  %v575_v43 = vadd.f32 %v559_v28, %v535_v50  ;;  %v629_v32 = vmul.f32 %v3727_v55, %v4047_v57  ;;  %v2925_v50 = vld [vmem:[%s5748_s6] ss:$0 sm:$0xff] }
 0x149   :  { %v700_v47 = vadd.f32 %v4134_v38, %v678_v40  ;;  %v630_v58 = vmul.f32 %v3727_v55, %v5920_v35  ;;  %v664_v8 = vmul.f32 %v3745_v63, %v426_v49  ;;  %v609_v36 = vadd.f32 %v594_v1, %v574_v15 }
 0x14a   :  { %v500_v18 = vadd.f32 %v484_v33, %v460_v29  ;;  %v715_v37 = vmax.f32 %v699_v26, 0.0  ;;  %v610_v25 = vadd.f32 %v595_v52, %v575_v43  ;;  %v612_v5 = vadd.f32 %v5895_v41, %v5921_v2 }
 0x14b   :  { %v716_v10 = vmax.f32 %v700_v47, 0.0  ;;  %v665_v27 = vmul.f32 %v3745_v63, %v5922_v20  ;;  %v560_v31 = vmul.f32 %v3736_v59, %v5922_v20  ;;  %v644_v0 = vadd.f32 %v629_v32, %v609_v36 }
 0x14c   :  { %v536_v57 = vadd.f32 %v5923_v13, %v500_v18  ;;  %v731_v12 = vmin.f32 %v715_v37, 6.0  ;;  %v645_v34 = vadd.f32 %v630_v58, %v610_v25  ;;  %v647_v60 = vadd.f32 %v5898_v62, %v612_v5 }
 0x14d   :  { %v596_v3 = vmul.f32 %v3724_v54, %v5924_v30  ;;  %v732_v6 = vmin.f32 %v716_v10, 6.0  ;;  %v679_v41 = vadd.f32 %v664_v8, %v644_v0  ;;  %v631_v45 = vmul.f32 %v3727_v55, %v5925_v21 }
 0x14e   :  { %v576_v39 = vadd.f32 %v560_v31, %v536_v57  ;;  %v680_v51 = vadd.f32 %v665_v27, %v645_v34  ;;  %v682_v14 = vadd.f32 %v5902_v7, %v647_v60  ;;  %v666_v54 = vmul.f32 %v3745_v63, %v5926_v53  ;;  %v3440_v63 = vld [vmem:[%s5749_s7 + $0x30] sm:$0xff]   ;;  %v3447_v53 = vld [vmem:[%s5753_s11 + $0x28] sm:$0xff]  }
 0x14f   :  { %v742_v49 = vpack.c.bf16 %v732_v6, %v731_v12  ;;  %v701_v59 = vadd.f32 %v4134_v38, %v679_v41  ;;  %3205 = vmatprep.subr.bf16.mxu0 %v3440_v63 }
 0x150   :  { %v611_v24 = vadd.f32 %v596_v3, %v576_v39  ;;  %v702_v48 = vadd.f32 %v4134_v38, %v680_v51  ;;  %v704_v56 = vadd.f32 %v4134_v38, %v682_v14  ;;  %3206 = vmatpush3.bf16.msra.mxu0 %v3440_v63 }
 0x151   :  { %3186 = vmatmul.mubr.bf16.gmra.mrb[8].mxu1 %v742_v49  ;;  %v717_v9 = vmax.f32 %v701_v59, 0.0  ;;  %3207 = vmatprep.subr.bf16.mxu0 %v3441_v44  ;;  %v3442_v49 = vld [vmem:[%s5753_s11] sm:$0xff]   ;;  %v3444_v59 = vld [vmem:[%s5753_s11 + $0x10] sm:$0xff]  }
 0x152   :  { %v646_v62 = vadd.f32 %v631_v45, %v611_v24  ;;  %v718_v46 = vmax.f32 %v702_v48, 0.0  ;;  %v720_v11 = vmax.f32 %v704_v56, 0.0  ;;  %3225 = vmatprep.subr.bf16.mxu1 %v3442_v49  ;;  %v3443_v24 = vld [vmem:[%s5753_s11 + $0x8] sm:$0xff]   ;;  %v3445_v48 = vld [vmem:[%s5753_s11 + $0x18] sm:$0xff]  }
 0x153   :  { %v733_v7 = vmin.f32 %v717_v9, 6.0  ;;  %3226 = vmatpush3.bf16.msra.mxu1 %v3442_v49  ;;  %v3449_v56 = vld [vmem:[%s5753_s11 + $0x38] sm:$0xff]   ;;  %v1119_v9 = vld [vmem:[%s5751_s9] sm:$0xff] }
 0x154   :  { %v681_v17 = vadd.f32 %v666_v54, %v646_v62  ;;  %v734_v4 = vmin.f32 %v718_v46, 6.0  ;;  %v736_v16 = vmin.f32 %v720_v11, 6.0  ;;  %3208 = vmatpush3.bf16.msra.mxu0 %v3441_v44  ;;  %3227 = vmatprep.subr.bf16.mxu1 %v3443_v24  ;;  %v3446_v62 = vld [vmem:[%s5753_s11 + $0x20] sm:$0xff]   ;;  %v3448_v54 = vld [vmem:[%s5753_s11 + $0x30] sm:$0xff]  }
 0x155   :  { %v3450_v46 = vld [vmem:[%s5749_s7 + $0x40] sm:$0xff]  }
 0x156   :  { %v703_v55 = vadd.f32 %v4134_v38, %v681_v17  ;;  %v743_v28 = vpack.c.bf16 %v734_v4, %v733_v7  ;;  %v3451_v17 = vld [vmem:[%s5749_s7 + $0x48] sm:$0xff]   ;;  %3257 = vmatprep.subr.bf16.mxu0 %v3450_v46 }
 0x157   :  { %3228 = vmatpush3.bf16.msra.mxu1 %v3443_v24  ;;  %v5943_v7 = vld [vmem:[#allocation6_spill] sm:$0xff] }
 0x158   :  { %v719_v22 = vmax.f32 %v703_v55, 0.0  ;;  %3189 = vmatprep.mubr.bf16.mxu1 %v743_v28  ;;  %3229 = vmatprep.subr.bf16.mxu1 %v3444_v59  ;;  %v4382_v4 = vrot.slane %v1119_v9, %v5943_v7  ;;  %v5944_v55 = vld [vmem:[#allocation5_spill] sm:$0xff]  ;;  %v3452_v28 = vld [vmem:[%s5749_s7 + $0x50] sm:$0xff]  }
 0x159   :  { %v4385_v11 = vrot.slane %v1119_v9, %v5944_v55 }
 0x15a   :  { %v735_v29 = vmin.f32 %v719_v22, 6.0  ;;  %v4393_v22 = vld [vmem:[%s5750_s8] ss:$0 sm:$0xff] }
 0x15b   :  { %3230 = vmatpush3.bf16.msra.mxu1 %v3444_v59 }
 0x15c   :  { %v744_v61 = vpack.c.bf16 %v736_v16, %v735_v29  ;;  %3231 = vmatprep.subr.bf16.mxu1 %v3445_v48  ;;  %v1154_v29 = vmul.f32 0.0, %v4382_v4  ;;  %v1188_v16 = vmul.f32 0.0, %v4385_v11 }
 0x15e   :  { %3190 = vmatmul.mubr.bf16.gmra.mrb[12].mxu1 %v744_v61  ;;  %v5945_v61 = vld [vmem:[#allocation7_spill] sm:$0xff] }
 0x15f   :  { %3232 = vmatpush3.bf16.msra.mxu1 %v3445_v48  ;;  %v4398_v63 = vrot.slane %v1119_v9, %v5945_v61 }
 0x160   :  { %3233 = vmatprep.subr.bf16.mxu1 %v3446_v62 }
 0x163   :  { %3234 = vmatpush3.bf16.msra.mxu1 %v3446_v62  ;;  %v4434_v62 = vld [vmem:[%s5751_s9 + $0x8] ss:$0 sm:$0xff] }
 0x164   :  { %3235 = vmatprep.subr.bf16.mxu1 %v3447_v53 }
 0x167   :  { %3236 = vmatpush3.bf16.msra.mxu1 %v3447_v53 }
 0x168   :  { %3237 = vmatprep.subr.bf16.mxu1 %v3448_v54 }
 0x16b   :  { %3238 = vmatpush3.bf16.msra.mxu1 %v3448_v54 }
 0x16c   :  { %3239 = vmatprep.subr.bf16.mxu1 %v3449_v56 }
 0x16f   :  { %3240 = vmatpush3.bf16.msra.mxu1 %v3449_v56 }
 0x207   :  { %v3179_v38 = vpop.f32.mrb[0].mxu1 }
 0x208   :  { %v850_v23 = vpop.f32.mrb[1].mxu1  ;;  %v4306_v26 = vadd.f32 %v3179_v38, %v2925_v50 }
 0x209   :  { %v3180_v33 = vpop.f32.mrb[2].mxu1  ;;  %v4302_v1 = vadd.f32 %v2925_v50, %v850_v23  ;;  %v3453_v23 = vld [vmem:[%s5749_s7 + $0x58] sm:$0xff]  }
 0x20a   :  { %v4300_v40 = vadd.f32 %v3180_v33, %v2925_v50  ;;  %v853_v42 = vpop.f32.mrb[3].mxu1  ;;  %5930 = vst [vmem:[#allocation13_spill] sm:$0xff] %v4306_v26 }
 0x20b   :  { %5928 = vst [vmem:[#allocation18_spill] sm:$0xff] %v4302_v1  ;;  %v4304_v52 = vadd.f32 %v2925_v50, %v853_v42 }
 0x20c   :  { %5927 = vst [vmem:[#allocation16_spill] sm:$0xff] %v4300_v40  ;;  %v914_v43 = vpack.c.bf16 %v4300_v40, %v4306_v26 }
 0x20d   :  { %5929 = vst [vmem:[#allocation23_spill] sm:$0xff] %v4304_v52  ;;  %v913_v15 = vpack.c.bf16 %v4304_v52, %v4302_v1 }
 0x20f   :  { %3209 = vmatprep.mubr.bf16.mxu0 %v913_v15 }
 0x210   :  { %3210 = vmatmul.mubr.bf16.vlgmr.msra.gmra.mrb[16].mxu0 %v914_v43  ;;  %v1203_v43 = vadd.f32 %v1188_v16, %v1154_v29 }
 0x211   :  { %3258 = vmatpush3.bf16.msra.mxu0 %v3450_v46 }
 0x212   :  { %3259 = vmatprep.subr.bf16.mxu0 %v3451_v17 }
 0x215   :  { %3260 = vmatpush3.bf16.msra.mxu0 %v3451_v17  ;;  %v4444_v17 = vmul.f32 0.0, %v4434_v62 }
 0x216   :  { %v3183_v32 = vpop.f32.mrb[4].mxu1  ;;  %3261 = vmatprep.subr.bf16.mxu0 %v3452_v28 }
 0x217   :  { %v866_v47 = vpop.f32.mrb[5].mxu1  ;;  %v4318_v36 = vadd.f32 %v3183_v32, %v2925_v50  ;;  %v1250_v32 = vmul.f32 0.0, %v4398_v63  ;;  %5953 = vst [vmem:[#allocation41_spill] sm:$0xff] %v4444_v17 }
 0x218   :  { %v3184_v35 = vpop.f32.mrb[6].mxu1  ;;  %v4314_v18 = vadd.f32 %v2925_v50, %v866_v47 }
 0x219   :  { %v4312_v58 = vadd.f32 %v3184_v35, %v2925_v50  ;;  %v869_v8 = vpop.f32.mrb[7].mxu1  ;;  %5934 = vst [vmem:[#allocation19_spill] sm:$0xff] %v4318_v36  ;;  %3262 = vmatpush3.bf16.msra.mxu0 %v3452_v28  ;;  %v4429_v48 = vadd.f32 %v1250_v32, %v1203_v43 }
 0x21a   :  { %5932 = vst [vmem:[#allocation14_spill] sm:$0xff] %v4314_v18  ;;  %v4316_v37 = vadd.f32 %v2925_v50, %v869_v8  ;;  %v5946_v8 = vld [vmem:[#allocation8_spill] sm:$0xff]  ;;  %3263 = vmatprep.subr.bf16.mxu0 %v3453_v23 }
 0x21b   :  { %5931 = vst [vmem:[#allocation17_spill] sm:$0xff] %v4312_v58  ;;  %v916_v2 = vpack.c.bf16 %v4312_v58, %v4318_v36 }
 0x21c   :  { %5933 = vst [vmem:[#allocation22_spill] sm:$0xff] %v4316_v37  ;;  %v915_v25 = vpack.c.bf16 %v4316_v37, %v4314_v18 }
 0x21d   :  { %3264 = vmatpush3.bf16.msra.mxu0 %v3453_v23 }
 0x21e   :  { %3213 = vmatprep.mubr.bf16.mxu0 %v915_v25  ;;  %v4408_v25 = vrot.slane %v1119_v9, %v5946_v8 }
 0x21f   :  { %3214 = vmatmul.mubr.bf16.gmra.mrb[20].mxu0 %v916_v2 }
 0x224   :  { %v3187_v5 = vpop.f32.mrb[8].mxu1 }
 0x225   :  { %v882_v10 = vpop.f32.mrb[9].mxu1  ;;  %v4330_v12 = vadd.f32 %v3187_v5, %v2925_v50 }
 0x226   :  { %v3188_v20 = vpop.f32.mrb[10].mxu1  ;;  %v4326_v57 = vadd.f32 %v2925_v50, %v882_v10 }
 0x227   :  { %v4324_v27 = vadd.f32 %v3188_v20, %v2925_v50  ;;  %v885_v13 = vpop.f32.mrb[11].mxu1  ;;  %5938 = vst [vmem:[#allocation24_spill] sm:$0xff] %v4330_v12 }
 0x228   :  { %5936 = vst [vmem:[#allocation21_spill] sm:$0xff] %v4326_v57  ;;  %v4328_v31 = vadd.f32 %v2925_v50, %v885_v13  ;;  %v5947_v13 = vld [vmem:[#allocation9_spill] sm:$0xff] }
 0x229   :  { %5935 = vst [vmem:[#allocation15_spill] sm:$0xff] %v4324_v27  ;;  %v918_v34 = vpack.c.bf16 %v4324_v27, %v4330_v12 }
 0x22a   :  { %5937 = vst [vmem:[#allocation20_spill] sm:$0xff] %v4328_v31  ;;  %v917_v0 = vpack.c.bf16 %v4328_v31, %v4326_v57 }
 0x22c   :  { %3217 = vmatprep.mubr.bf16.mxu0 %v917_v0  ;;  %v4414_v0 = vrot.slane %v1119_v9, %v5947_v13 }
 0x22d   :  { %3218 = vmatmul.mubr.bf16.gmra.mrb[24].mxu0 %v918_v34  ;;  %v5948_v34 = vld [vmem:[#allocation10_spill] sm:$0xff] }
 0x22e   :  { %v4437_v53 = vmul.f32 0.0, %v4414_v0 }
 0x230   :  { %5951 = vst [vmem:[#allocation25_spill] sm:$0xff] %v4437_v53 }
 0x231   :  { %v3191_v60 = vpop.f32.mrb[12].mxu1 }
 0x232   :  { %v898_v30 = vpop.f32.mrb[13].mxu1  ;;  %v4342_v14 = vadd.f32 %v3191_v60, %v2925_v50  ;;  %v4417_v60 = vrot.slane %v1119_v9, %v5948_v34 }
 0x233   :  { %v3192_v3 = vpop.f32.mrb[14].mxu1  ;;  %v4338_v41 = vadd.f32 %v2925_v50, %v898_v30  ;;  %v3454_v30 = vld [vmem:[%s5749_s7 + $0x60] sm:$0xff]  }
 0x234   :  { %v4336_v6 = vadd.f32 %v3192_v3, %v2925_v50  ;;  %v901_v39 = vpop.f32.mrb[15].mxu1  ;;  %5942 = vst [vmem:[#allocation29_spill] sm:$0xff] %v4342_v14  ;;  %v5949_v3 = vld [vmem:[#allocation11_spill] sm:$0xff]  ;;  %v4440_v54 = vmul.f32 0.0, %v4417_v60  ;;  %3265 = vmatprep.subr.bf16.mxu0 %v3454_v30 }
 0x235   :  { %5940 = vst [vmem:[#allocation28_spill] sm:$0xff] %v4338_v41  ;;  %v4340_v51 = vadd.f32 %v2925_v50, %v901_v39  ;;  %v4423_v39 = vrot.slane %v1119_v9, %v5949_v3  ;;  %3266 = vmatpush3.bf16.msra.mxu0 %v3454_v30 }
 0x236   :  { %5939 = vst [vmem:[#allocation26_spill] sm:$0xff] %v4336_v6  ;;  %v920_v45 = vpack.c.bf16 %v4336_v6, %v4342_v14  ;;  %5952 = vst [vmem:[#allocation37_spill] sm:$0xff] %v4440_v54 }
 0x237   :  { %5941 = vst [vmem:[#allocation27_spill] sm:$0xff] %v4340_v51  ;;  %v919_v21 = vpack.c.bf16 %v4340_v51, %v4338_v41 }
 0x239   :  { %3221 = vmatprep.mubr.bf16.mxu0 %v919_v21 }
 0x23a   :  { %3222 = vmatmul.mubr.bf16.gmra.mrb[28].mxu0 %v920_v45  ;;  %v5950_v45 = vld [vmem:[#allocation12_spill] sm:$0xff] }
 0x23b   :  { %v4426_v49 = vrot.slane %v1119_v9, %v5950_v45 }
 0x2e3   :  { %v3211_v44 = vpop.f32.mrb[16].mxu0 }
 0x2e4   :  { %v1033_v38 = vadd.f32 %v3211_v44, %v4393_v22  ;;  %v1024_v50 = vpop.f32.mrb[17].mxu0 }
 0x2e5   :  { %v1025_v33 = vadd.f32 %v4393_v22, %v1024_v50  ;;  %v3212_v42 = vpop.f32.mrb[18].mxu0 }
 0x2e6   :  { %v1089_v15 = vmax.f32 %v1033_v38, 0.0  ;;  %v1036_v47 = vadd.f32 %v3212_v42, %v4393_v22  ;;  %v1027_v35 = vpop.f32.mrb[19].mxu0  ;;  %v3455_v38 = vld [vmem:[%s5749_s7 + $0x68] sm:$0xff]  }
 0x2e7   :  { %v1087_v2 = vmax.f32 %v1025_v33, 0.0  ;;  %v1028_v5 = vadd.f32 %v4393_v22, %v1027_v35  ;;  %3267 = vmatprep.subr.bf16.mxu0 %v3455_v38 }
 0x2e8   :  { %v4411_v10 = vmin.f32 %v1089_v15, 6.0  ;;  %v1090_v20 = vmax.f32 %v1036_v47, 0.0  ;;  %3268 = vmatpush3.bf16.msra.mxu0 %v3455_v38 }
 0x2e9   :  { %v1103_v21 = vmin.f32 %v1087_v2, 6.0  ;;  %v1088_v24 = vmax.f32 %v1028_v5, 0.0 }
 0x2ea   :  { %v1124_v59 = vrot.slane %v4411_v10, 7  ;;  %v1220_v56 = vrot.slane %v4411_v10, 1  ;;  %v1191_v29 = vmul.f32 %v4385_v11, %v4411_v10  ;;  %v4454_v16 = vmul.f32 %v4408_v25, %v4411_v10 }
 0x2eb   :  { %v1122_v9 = vrot.slane %v1103_v21, 7  ;;  %v1218_v46 = vrot.slane %v1103_v21, 1  ;;  %v1106_v44 = vmin.f32 %v1090_v20, 6.0  ;;  %v4465_v42 = vmin.f32 %v1088_v24, 6.0 }
 0x2ec   :  { %v4448_v28 = vsel %vm297_vm2, %v1124_v59, 0.0  ;;  %v1189_v43 = vmul.f32 %v4385_v11, %v1103_v21  ;;  %v1324_v47 = vmul.f32 %v4408_v25, %v1103_v21  ;;  %v4477_v20 = vsel %vm296_vm1, %v1220_v56, 0.0 }
 0x2ed   :  { %v1157_v50 = vmul.f32 %v4382_v4, %v4448_v28  ;;  %v1136_v23 = vsel %vm297_vm2, %v1122_v9, 0.0  ;;  %v1232_v33 = vsel %vm296_vm1, %v1218_v46, 0.0  ;;  %v4473_v35 = vmul.f32 %v4423_v39, %v4448_v28 }
 0x2ee   :  { %v1155_v15 = vmul.f32 %v4382_v4, %v1136_v23  ;;  %v1288_v32 = vmul.f32 %v4423_v39, %v1136_v23  ;;  %v1125_v2 = vrot.slane %v1106_v44, 7  ;;  %v1221_v5 = vrot.slane %v1106_v44, 1 }
 0x2ef   :  { %v1251_v59 = vmul.f32 %v4398_v63, %v1232_v33  ;;  %v1364_v46 = vmul.f32 %v4426_v49, %v1232_v33  ;;  %v4482_v21 = vadd.f32 %v1191_v29, %v1157_v50  ;;  %v1123_v56 = vrot.slane %v4465_v42, 7 }
 0x2f0   :  { %v1204_v24 = vadd.f32 %v1189_v43, %v1155_v15  ;;  %v1304_v9 = vadd.f32 %v1288_v32, %v4429_v48  ;;  %v1139_v23 = vsel %vm297_vm2, %v1125_v2, 0.0  ;;  %v1235_v45 = vsel %vm296_vm1, %v1221_v5, 0.0 }
 0x2f1   :  { %v1158_v30 = vmul.f32 %v4382_v4, %v1139_v23  ;;  %v1192_v15 = vmul.f32 %v4385_v11, %v1106_v44  ;;  %v4492_v43 = vmul.f32 %v4408_v25, %v1106_v44  ;;  %v4495_v33 = vmul.f32 %v4417_v60, %v1106_v44 }
 0x2f2   :  { %v3215_v3 = vpop.f32.mrb[20].mxu0  ;;  %v1266_v50 = vadd.f32 %v1251_v59, %v1204_v24  ;;  %v1340_v32 = vadd.f32 %v1324_v47, %v1304_v9  ;;  %v1254_v2 = vmul.f32 %v4398_v63, %v1235_v45  ;;  %v1190_v5 = vmul.f32 %v4385_v11, %v4465_v42 }
 0x2f3   :  { %v1040_v29 = vpop.f32.mrb[21].mxu0  ;;  %v4501_v13 = vmul.f32 %v4423_v39, %v1139_v23  ;;  %v4504_v8 = vmul.f32 %v4426_v49, %v1235_v45  ;;  %v4508_v44 = vsel %vm297_vm2, %v1123_v56, 0.0  ;;  %v1219_v24 = vrot.slane %v4465_v42, 1 }
 0x2f4   :  { %v3216_v34 = vpop.f32.mrb[22].mxu0  ;;  %v4512_v59 = vmul.f32 %v4414_v0, %v1139_v23  ;;  %v1156_v9 = vmul.f32 %v4382_v4, %v4508_v44  ;;  %v1289_v38 = vmul.f32 %v4423_v39, %v4508_v44  ;;  %v1049_v61 = vadd.f32 %v3215_v3, %v4393_v22 }
 0x2f5   :  { %v1043_v47 = vpop.f32.mrb[23].mxu0  ;;  %v1207_v55 = vadd.f32 %v1192_v15, %v1158_v30  ;;  %v1041_v7 = vadd.f32 %v4393_v22, %v1040_v29  ;;  %v1052_v56 = vadd.f32 %v3216_v34, %v4393_v22  ;;  %v1325_v23 = vmul.f32 %v4408_v25, %v4465_v42 }
 0x2f6   :  { %v1044_v51 = vadd.f32 %v4393_v22, %v1043_v47  ;;  %v1305_v41 = vadd.f32 %v1289_v38, %v1266_v50  ;;  %v1093_v6 = vmax.f32 %v1049_v61, 0.0  ;;  %v4526_v14 = vsel %vm296_vm1, %v1219_v24, 0.0 }
 0x2f7   :  { %v1205_v31 = vadd.f32 %v1190_v5, %v1156_v9  ;;  %v1091_v57 = vmax.f32 %v1041_v7, 0.0  ;;  %v1094_v27 = vmax.f32 %v1052_v56, 0.0  ;;  %v4528_v30 = vadd.f32 %v1364_v46, %v1340_v32 }
 0x2f8   :  { %v1092_v3 = vmax.f32 %v1044_v51, 0.0  ;;  %v4531_v15 = vmul.f32 %v4434_v62, %v1235_v45  ;;  %v4533_v34 = vadd.f32 %v1325_v23, %v1305_v41  ;;  %v4535_v29 = vmin.f32 %v1093_v6, 6.0 }
 0x2f9   :  { %v1269_v50 = vadd.f32 %v1254_v2, %v1207_v55  ;;  %v1107_v47 = vmin.f32 %v1091_v57, 6.0  ;;  %v4537_v61 = vmin.f32 %v1094_v27, 6.0  ;;  %v1252_v24 = vmul.f32 %v4398_v63, %v4526_v14 }
 0x2fa   :  { %5954 = vst [vmem:[#allocation35_spill] sm:$0xff] %v4535_v29  ;;  %v1128_v7 = vrot.slane %v4535_v29, 7  ;;  %v1224_v51 = vrot.slane %v4535_v29, 1  ;;  %v1253_v46 = vmul.f32 %v4398_v63, %v4477_v20  ;;  %v4547_v41 = vmul.f32 %v4426_v49, %v4526_v14 }
 0x2fb   :  { %v1126_v6 = vrot.slane %v1107_v47, 7  ;;  %v1222_v45 = vrot.slane %v1107_v47, 1  ;;  %v4549_v55 = vmin.f32 %v1092_v3, 6.0  ;;  %v1267_v27 = vadd.f32 %v1252_v24, %v1205_v31 }
 0x2fc   :  { %v4553_v57 = vsel %vm297_vm2, %v1128_v7, 0.0  ;;  %v1195_v32 = vmul.f32 %v4385_v11, %v4535_v29  ;;  %v4559_v2 = vsel %vm296_vm1, %v1224_v51, 0.0  ;;  %v1280_v5 = vrot.slane %v4537_v61, 7 }
 0x2fd   :  { %5955 = vst [vmem:[#allocation39_spill] sm:$0xff] %v4559_v2  ;;  %v1161_v9 = vmul.f32 %v4382_v4, %v4553_v57  ;;  %v4566_v38 = vmul.f32 %v4408_v25, %v4535_v29  ;;  %v1140_v31 = vsel %vm297_vm2, %v1126_v6, 0.0  ;;  %v4572_v56 = vsel %vm296_vm1, %v1222_v45, 0.0 }
 0x2fe   :  { %v1159_v23 = vmul.f32 %v4382_v4, %v1140_v31  ;;  %v1193_v3 = vmul.f32 %v4385_v11, %v1107_v47  ;;  %v1292_v24 = vmul.f32 %v4423_v39, %v1140_v31  ;;  %v1328_v7 = vmul.f32 %v4408_v25, %v1107_v47 }
 0x2ff   :  { %5956 = vst [vmem:[#allocation32_spill] sm:$0xff] %v4566_v38  ;;  %v1210_v12 = vadd.f32 %v1195_v32, %v1161_v9  ;;  %v4579_v37 = vmul.f32 %v4417_v60, %v1107_v47  ;;  %v1257_v6 = vmul.f32 %v4398_v63, %v4559_v2  ;;  %v1282_v45 = vsel %vm297_vm2, %v1280_v5, 0.0 }
 0x300   :  { %v3219_v51 = vpop.f32.mrb[24].mxu0  ;;  %v4587_v58 = vmul.f32 %v4423_v39, %v4553_v57  ;;  %v1208_v36 = vadd.f32 %v1193_v3, %v1159_v23  ;;  %v1255_v52 = vmul.f32 %v4398_v63, %v4572_v56  ;;  %v1308_v1 = vadd.f32 %v1292_v24, %v1269_v50 }
 0x301   :  { %v1056_v18 = vpop.f32.mrb[25].mxu0  ;;  %v4592_v47 = vmul.f32 %v4414_v0, %v1140_v31  ;;  %v1272_v9 = vadd.f32 %v1257_v6, %v1210_v12  ;;  %v1295_v40 = vmul.f32 %v4423_v39, %v1282_v45  ;;  %v1356_v26 = vrot.slane %v4537_v61, 1 }
 0x302   :  { %5957 = vst [vmem:[#allocation40_spill] sm:$0xff] %v4587_v58  ;;  %v3220_v32 = vpop.f32.mrb[26].mxu0  ;;  %v4596_v17 = vadd.f32 %v1328_v7, %v1308_v1  ;;  %v4600_v54 = vmul.f32 %v4434_v62, %v4572_v56  ;;  %v1331_v23 = vmul.f32 %v4408_v25, %v4537_v61  ;;  %v1127_v50 = vrot.slane %v4549_v55, 7 }
 0x303   :  { %v1059_v5 = vpop.f32.mrb[27].mxu0  ;;  %v1270_v3 = vadd.f32 %v1255_v52, %v1208_v36  ;;  %v1311_v31 = vadd.f32 %v1295_v40, %v1272_v9  ;;  %v4607_v12 = vsel %vm296_vm1, %v1356_v26, 0.0  ;;  %v4610_v24 = vmul.f32 %v4414_v0, %v1282_v45 }
 0x304   :  { %5958 = vst [vmem:[#allocation30_spill] sm:$0xff] %v4600_v54  ;;  %5959 = vst [vmem:[#allocation42_spill] sm:$0xff] %v4607_v12  ;;  %v1371_v1 = vmul.f32 %v4426_v49, %v4607_v12  ;;  %v4616_v7 = vsel %vm297_vm2, %v1127_v50, 0.0  ;;  %v1065_v6 = vadd.f32 %v3219_v51, %v4393_v22  ;;  %v1057_v38 = vadd.f32 %v4393_v22, %v1056_v18 }
 0x305   :  { %5960 = vst [vmem:[#allocation33_spill] sm:$0xff] %v4610_v24  ;;  %v1347_v52 = vadd.f32 %v1331_v23, %v1311_v31  ;;  %v1160_v40 = vmul.f32 %v4382_v4, %v4616_v7  ;;  %v1293_v26 = vmul.f32 %v4423_v39, %v4616_v7  ;;  %v1068_v36 = vadd.f32 %v3220_v32, %v4393_v22 }
 0x306   :  { %v1097_v45 = vmax.f32 %v1065_v6, 0.0  ;;  %v1095_v9 = vmax.f32 %v1057_v38, 0.0  ;;  %v1060_v12 = vadd.f32 %v4393_v22, %v1059_v5  ;;  %v1268_v50 = vadd.f32 %v1253_v46, %v4482_v21 }
 0x307   :  { %v4627_v24 = vadd.f32 %v1371_v1, %v1347_v52  ;;  %v1309_v51 = vadd.f32 %v1293_v26, %v1270_v3  ;;  %v1329_v18 = vmul.f32 %v4408_v25, %v4549_v55  ;;  %v1098_v23 = vmax.f32 %v1068_v36, 0.0 }
 0x308   :  { %v1194_v31 = vmul.f32 %v4385_v11, %v4549_v55  ;;  %v4633_v53 = vmin.f32 %v1097_v45, 6.0  ;;  %v1111_v58 = vmin.f32 %v1095_v9, 6.0  ;;  %v1306_v32 = vadd.f32 %v4473_v35, %v1267_v27 }
 0x309   :  { %5961 = vst [vmem:[#allocation34_spill] sm:$0xff] %v4627_v24  ;;  %v4638_v38 = vmul.f32 %v4417_v60, %v4537_v61  ;;  %v4640_v21 = vadd.f32 %v1329_v18, %v1309_v51  ;;  %v4642_v46 = vmin.f32 %v1098_v23, 6.0  ;;  %v1307_v5 = vadd.f32 %v4501_v13, %v1268_v50 }
 0x30a   :  { %5962 = vst [vmem:[#allocation36_spill] sm:$0xff] %v4633_v53  ;;  %v4645_v3 = vadd.f32 %v1194_v31, %v1160_v40  ;;  %v1131_v6 = vrot.slane %v4633_v53, 7  ;;  %v1096_v52 = vmax.f32 %v1060_v12, 0.0  ;;  %v1198_v35 = vmul.f32 %v4385_v11, %v4633_v53 }
 0x30b   :  { %5963 = vst [vmem:[#allocation31_spill] sm:$0xff] %v4638_v38  ;;  %5964 = vst [vmem:[#allocation38_spill] sm:$0xff] %v4642_v46  ;;  %v1129_v27 = vrot.slane %v1111_v58, 7  ;;  %v1225_v61 = vrot.slane %v1111_v58, 1  ;;  %v4653_v45 = vmul.f32 %v4426_v49, %v4477_v20  ;;  %v4662_v12 = vmul.f32 %v4408_v25, %v4633_v53 }
 0x30c   :  { %v4657_v13 = vsel %vm297_vm2, %v1131_v6, 0.0  ;;  %v1132_v9 = vrot.slane %v4642_v46, 7  ;;  %v1196_v23 = vmul.f32 %v4385_v11, %v1111_v58  ;;  %v1199_v38 = vmul.f32 %v4385_v11, %v4642_v46 }
 0x30d   :  { %v3223_v26 = vpop.f32.mrb[28].mxu0  ;;  %5965 = vst [vmem:[#allocation43_spill] sm:$0xff] %v4657_v13  ;;  %5966 = vst [vmem:[#allocation44_spill] sm:$0xff] %v4662_v12  ;;  %v1164_v51 = vmul.f32 %v4382_v4, %v4657_v13  ;;  %v1143_v18 = vsel %vm297_vm2, %v1129_v27, 0.0  ;;  %v1239_v31 = vsel %vm296_vm1, %v1225_v61, 0.0  ;;  %v1332_v12 = vmul.f32 %v4408_v25, %v1111_v58 }
 0x30e   :  { %v1072_v36 = vpop.f32.mrb[29].mxu0  ;;  %v1162_v40 = vmul.f32 %v4382_v4, %v1143_v18  ;;  %v1296_v1 = vmul.f32 %v4423_v39, %v1143_v18  ;;  %v4679_v53 = vmul.f32 %v4423_v39, %v4657_v13  ;;  %v4683_v27 = vsel %vm297_vm2, %v1132_v9, 0.0 }
 0x30f   :  { %v3224_v50 = vpop.f32.mrb[30].mxu0  ;;  %5968 = vst [vmem:[#allocation46_spill] sm:$0xff] %v4683_v27  ;;  %v4686_v24 = vmin.f32 %v1096_v52, 6.0  ;;  %v1258_v18 = vmul.f32 %v4398_v63, %v1239_v31  ;;  %v1372_v29 = vmul.f32 %v4426_v49, %v1239_v31  ;;  %v4691_v54 = vadd.f32 %v1198_v35, %v1164_v51 }
 0x310   :  { %v1075_v6 = vpop.f32.mrb[31].mxu0  ;;  %5967 = vst [vmem:[#allocation45_spill] sm:$0xff] %v4679_v53  ;;  %v1211_v2 = vadd.f32 %v1196_v23, %v1162_v40  ;;  %v1312_v58 = vadd.f32 %v1296_v1, %v4429_v48  ;;  %v1165_v53 = vmul.f32 %v4382_v4, %v4683_v27  ;;  %v4697_v9 = vmul.f32 %v4408_v25, %v4642_v46 }
 0x311   :  { %v1130_v61 = vrot.slane %v4686_v24, 7  ;;  %v4702_v40 = vmul.f32 %v4423_v39, %v4683_v27  ;;  %v1197_v48 = vmul.f32 %v4385_v11, %v4686_v24  ;;  %v1081_v1 = vadd.f32 %v3223_v26, %v4393_v22 }
 0x312   :  { %5969 = vst [vmem:[#allocation47_spill] sm:$0xff] %v4697_v9  ;;  %v1273_v52 = vadd.f32 %v1258_v18, %v1211_v2  ;;  %v1073_v51 = vadd.f32 %v4393_v22, %v1072_v36  ;;  %v1084_v23 = vadd.f32 %v3224_v50, %v4393_v22  ;;  %v1076_v31 = vadd.f32 %v4393_v22, %v1075_v6 }
 0x313   :  { %5970 = vst [vmem:[#allocation48_spill] sm:$0xff] %v4702_v40  ;;  %v4709_v35 = vsel %vm297_vm2, %v1130_v61, 0.0  ;;  %v1348_v2 = vadd.f32 %v1332_v12, %v1312_v58  ;;  %v1101_v9 = vmax.f32 %v1081_v1, 0.0  ;;  %v1342_v61 = vadd.f32 %v4454_v16, %v1306_v32 }
 0x314   :  { %v1163_v18 = vmul.f32 %v4382_v4, %v4709_v35  ;;  %v1297_v27 = vmul.f32 %v4423_v39, %v4709_v35  ;;  %v1099_v40 = vmax.f32 %v1073_v51, 0.0  ;;  %v1102_v26 = vmax.f32 %v1084_v23, 0.0 }
 0x315   :  { %v1100_v46 = vmax.f32 %v1076_v31, 0.0  ;;  %v1333_v36 = vmul.f32 %v4408_v25, %v4686_v24  ;;  %v4721_v50 = vmin.f32 %v1101_v9, 6.0  ;;  %v1343_v22 = vadd.f32 %v4492_v43, %v1307_v5 }
 0x316   :  { %v1313_v13 = vadd.f32 %v1297_v27, %v1273_v52  ;;  %v4725_v6 = vmin.f32 %v1099_v40, 6.0  ;;  %v4727_v58 = vmin.f32 %v1102_v26, 6.0  ;;  %v1381_v1 = vadd.f32 %v4547_v41, %v4533_v34 }
 0x317   :  { %v4731_v51 = vadd.f32 %v1199_v38, %v1165_v53  ;;  %v1135_v32 = vrot.slane %v4721_v50, 7  ;;  %v1231_v27 = vrot.slane %v4721_v50, 1  ;;  %v4737_v9 = vadd.f32 %v1372_v29, %v1348_v2 }
 0x318   :  { %5971 = vst [vmem:[#allocation49_spill] sm:$0xff] %v4727_v58  ;;  %v4733_v16 = vadd.f32 %v1333_v36, %v1313_v13  ;;  %v4739_v43 = vadd.f32 %v1197_v48, %v1163_v18  ;;  %v1133_v5 = vrot.slane %v4725_v6, 7  ;;  %v4742_v52 = vmin.f32 %v1100_v46, 6.0 }
 0x319   :  { %v4746_v40 = vsel %vm297_vm2, %v1135_v32, 0.0  ;;  %v1202_v53 = vmul.f32 %v4385_v11, %v4721_v50  ;;  %v4752_v34 = vsel %vm296_vm1, %v1231_v27, 0.0  ;;  %v1281_v29 = vrot.slane %v4727_v58, 7 }
 0x31a   :  { %5972 = vst [vmem:[#allocation50_spill] sm:$0xff] %v4752_v34  ;;  %v1168_v41 = vmul.f32 %v4382_v4, %v4746_v40  ;;  %v4759_v38 = vmul.f32 %v4408_v25, %v4721_v50  ;;  %v4763_v46 = vsel %vm297_vm2, %v1133_v5, 0.0  ;;  %v1200_v13 = vmul.f32 %v4385_v11, %v4725_v6 }
 0x31b   :  { %v1166_v48 = vmul.f32 %v4382_v4, %v4763_v46  ;;  %v4772_v31 = vmul.f32 %v4408_v25, %v4725_v6  ;;  %v4776_v2 = vsel %vm297_vm2, %v1281_v29, 0.0  ;;  %v4780_v26 = vmul.f32 %v4423_v39, %v4746_v40 }
 0x31c   :  { %5973 = vst [vmem:[#allocation51_spill] sm:$0xff] %v4759_v38  ;;  %5974 = vst [vmem:[#allocation52_spill] sm:$0xff] %v4776_v2  ;;  %v1217_v18 = vadd.f32 %v1202_v53, %v1168_v41  ;;  %v1264_v36 = vmul.f32 %v4398_v63, %v4752_v34  ;;  %v1357_v32 = vrot.slane %v4727_v58, 1  ;;  %v4787_v27 = vmul.f32 %v4423_v39, %v4763_v46 }
 0x31d   :  { %v1303_v5 = vmul.f32 %v4423_v39, %v4776_v2  ;;  %v1339_v29 = vmul.f32 %v4408_v25, %v4727_v58  ;;  %v1134_v53 = vrot.slane %v4742_v52, 7  ;;  %v4794_v41 = vadd.f32 %v1200_v13, %v1166_v48 }
 0x31e   :  { %v1279_v23 = vadd.f32 %v1264_v36, %v1217_v18  ;;  %v4798_v12 = vsel %vm296_vm1, %v1357_v32, 0.0  ;;  %v1201_v34 = vmul.f32 %v4385_v11, %v4742_v52  ;;  %v1382_v58 = vadd.f32 %v4653_v45, %v1342_v61 }
 0x31f   :  { %v4804_v38 = vsel %vm297_vm2, %v1134_v53, 0.0  ;;  %v1400_v13 = vmul.f32 %v4414_v0, %v4508_v44  ;;  %v1379_v18 = vmul.f32 %v4426_v49, %v4798_v12  ;;  %v1401_v11 = vmul.f32 %v4414_v0, %v4448_v28 }
 0x320   :  { %v1319_v48 = vadd.f32 %v1303_v5, %v1279_v23  ;;  %v1167_v36 = vmul.f32 %v4382_v4, %v4804_v38  ;;  %v4818_v32 = vmul.f32 %v4423_v39, %v4804_v38  ;;  %v1417_v45 = vadd.f32 %v4512_v59, %v1382_v58 }
 0x321   :  { %v1415_v53 = vadd.f32 %v1400_v13, %v4528_v30  ;;  %v1435_v44 = vmul.f32 %v4417_v60, %v4465_v42  ;;  %v1416_v23 = vadd.f32 %v1401_v11, %v1381_v1  ;;  %v1436_v5 = vmul.f32 %v4417_v60, %v4411_v10  ;;  %v4837_v42 = vld [vmem:[%s5752_s10] ss:$0 sm:$0xff] }
 0x322   :  { %v1355_v61 = vadd.f32 %v1339_v29, %v1319_v48  ;;  %v1470_v4 = vmul.f32 %v4434_v62, %v4526_v14  ;;  %v1471_v39 = vmul.f32 %v4434_v62, %v4477_v20  ;;  %v1383_v2 = vadd.f32 %v4504_v8, %v1343_v22 }
 0x323   :  { %v1450_v28 = vadd.f32 %v1435_v44, %v1415_v53  ;;  %v1452_v30 = vadd.f32 %v4495_v33, %v1417_v45  ;;  %v1451_v58 = vadd.f32 %v1436_v5, %v1416_v23  ;;  %v5975_v10 = vrot.slane %v4549_v55, 1 }
 0x324   :  { %v4832_v59 = vadd.f32 %v1379_v18, %v1355_v61  ;;  %v1368_v20 = vmul.f32 %v4426_v49, %v4572_v56  ;;  %v1418_v8 = vadd.f32 %v4592_v47, %v1383_v2  ;;  %v1404_v18 = vmul.f32 %v4414_v0, %v4616_v7  ;;  %v5976_v61 = vld [vmem:[#allocation30_spill] sm:$0xff] }
 0x325   :  { %v1237_v14 = vsel %vm296_vm1, %v5975_v10, 0.0  ;;  %v1485_v1 = vadd.f32 %v1470_v4, %v1450_v28  ;;  %v1487_v33 = vadd.f32 %v4531_v15, %v1452_v30  ;;  %v1486_v29 = vadd.f32 %v1471_v39, %v1451_v58 }
 0x326   :  { %v1256_v22 = vmul.f32 %v4398_v63, %v1237_v14  ;;  %v1369_v13 = vmul.f32 %v4426_v49, %v1237_v14  ;;  %v1384_v48 = vadd.f32 %v1368_v20, %v4596_v17  ;;  %v1453_v53 = vadd.f32 %v4579_v37, %v1418_v8 }
 0x327   :  { %v1505_v11 = vadd.f32 %v4837_v42, %v1485_v1  ;;  %v1507_v56 = vadd.f32 %v4837_v42, %v1487_v33  ;;  %v1506_v15 = vadd.f32 %v4837_v42, %v1486_v29  ;;  %v1405_v45 = vmul.f32 %v4414_v0, %v4553_v57  ;;  %v5978_v1 = vld [vmem:[#allocation39_spill] sm:$0xff]  ;;  %v5979_v33 = vld [vmem:[#allocation40_spill] sm:$0xff]  ;;  %v5980_v29 = vld [vmem:[#allocation34_spill] sm:$0xff] }
 0x328   :  { %v1271_v47 = vadd.f32 %v1256_v22, %v4645_v3  ;;  %v1385_v2 = vadd.f32 %v1369_v13, %v4640_v21  ;;  %v1419_v44 = vadd.f32 %v1404_v18, %v1384_v48  ;;  %v1488_v23 = vadd.f32 %v5976_v61, %v1453_v53  ;;  %v5977_v3 = vld [vmem:[#allocation35_spill] sm:$0xff]  ;;  %v5981_v13 = vld [vmem:[#allocation25_spill] sm:$0xff]  ;;  %v5982_v53 = vld [vmem:[#allocation32_spill] sm:$0xff] }
 0x329   :  { %v1521_v17 = vmax.f32 %v1505_v11, 0.0  ;;  %v1523_v7 = vmax.f32 %v1507_v56, 0.0  ;;  %v1439_v5 = vmul.f32 %v4417_v60, %v4549_v55  ;;  %v4863_v37 = vadd.f32 %v1201_v34, %v1167_v36 }
 0x32a   :  { %v1522_v4 = vmax.f32 %v1506_v15, 0.0  ;;  %v1420_v28 = vadd.f32 %v1405_v45, %v1385_v2  ;;  %v1440_v39 = vmul.f32 %v4417_v60, %v5977_v3  ;;  %v1508_v21 = vadd.f32 %v4837_v42, %v1488_v23  ;;  %v5983_v45 = vld [vmem:[#allocation37_spill] sm:$0xff] }
 0x32b   :  { %v1537_v30 = vmin.f32 %v1521_v17, 6.0  ;;  %v1454_v58 = vadd.f32 %v1439_v5, %v1419_v44  ;;  %v1474_v57 = vmul.f32 %v4434_v62, %v1237_v14  ;;  %v1475_v8 = vmul.f32 %v4434_v62, %v5978_v1 }
 0x32c   :  { %v1538_v10 = vmin.f32 %v1522_v4, 6.0  ;;  %v1455_v20 = vadd.f32 %v1440_v39, %v1420_v28  ;;  %v1310_v55 = vadd.f32 %v5979_v33, %v1271_v47  ;;  %v1524_v34 = vmax.f32 %v1508_v21, 0.0 }
 0x32d   :  { %v1539_v36 = vmin.f32 %v1523_v7, 6.0  ;;  %v1489_v22 = vadd.f32 %v1474_v57, %v1454_v58  ;;  %v1422_v48 = vadd.f32 %v5981_v13, %v5980_v29  ;;  %v1370_v14 = vmul.f32 %v4426_v49, %v5978_v1  ;;  %v5985_v7 = vld [vmem:[#allocation36_spill] sm:$0xff]  ;;  %v5989_v1 = vld [vmem:[#allocation42_spill] sm:$0xff] }
 0x32e   :  { %v1553_v18 = vpack.c.bf16 %v1538_v10, %v1537_v30  ;;  %v1490_v11 = vadd.f32 %v1475_v8, %v1455_v20  ;;  %v1346_v56 = vadd.f32 %v5982_v53, %v1310_v55  ;;  %v1540_v15 = vmin.f32 %v1524_v34, 6.0  ;;  %v5987_v30 = vld [vmem:[#allocation41_spill] sm:$0xff] }
 0x32f   :  { %v1509_v2 = vadd.f32 %v4837_v42, %v1489_v22  ;;  %v1457_v44 = vadd.f32 %v5983_v45, %v1422_v48  ;;  %v5984_v47 = vrot.slane %v4686_v24, 1  ;;  %v5986_v5 = vrot.slane %v5985_v7, 1  ;;  %v5988_v10 = vld [vmem:[#allocation33_spill] sm:$0xff]  ;;  %v5990_v48 = vld [vmem:[#allocation31_spill] sm:$0xff] }
 0x330   :  { %3241 = vmatprep.mubr.bf16.mxu1 %v1553_v18  ;;  %v1510_v61 = vadd.f32 %v4837_v42, %v1490_v11  ;;  %v1386_v23 = vadd.f32 %v1370_v14, %v1346_v56  ;;  %v1554_v3 = vpack.c.bf16 %v1540_v15, %v1539_v36  ;;  %v1476_v8 = vmul.f32 %v4434_v62, %v5989_v1  ;;  %v5991_v15 = vld [vmem:[#allocation43_spill] sm:$0xff] }
 0x331   :  { %v1240_v17 = vsel %vm296_vm1, %v5984_v47, 0.0  ;;  %v1241_v4 = vsel %vm296_vm1, %v5986_v5, 0.0  ;;  %v1525_v39 = vmax.f32 %v1509_v2, 0.0  ;;  %v1492_v21 = vadd.f32 %v5987_v30, %v1457_v44  ;;  %v5992_v5 = vld [vmem:[#allocation38_spill] sm:$0xff] }
 0x332   :  { %v1259_v28 = vmul.f32 %v4398_v63, %v1240_v17  ;;  %v1260_v58 = vmul.f32 %v4398_v63, %v1241_v4  ;;  %v1526_v57 = vmax.f32 %v1510_v61, 0.0  ;;  %v1421_v20 = vadd.f32 %v5988_v10, %v1386_v23  ;;  %3242 = vmatmul.mubr.bf16.vlgmr.msra.gmra.mrb[16].mxu1 %v1554_v3 }
 0x333   :  { %v1373_v33 = vmul.f32 %v4426_v49, %v1240_v17  ;;  %v1541_v55 = vmin.f32 %v1525_v39, 6.0  ;;  %v1512_v34 = vadd.f32 %v4837_v42, %v1492_v21  ;;  %v1408_v53 = vmul.f32 %v4414_v0, %v4709_v35 }
 0x334   :  { %v1274_v22 = vadd.f32 %v1259_v28, %v4739_v43  ;;  %v1275_v36 = vadd.f32 %v1260_v58, %v4691_v54  ;;  %v1542_v29 = vmin.f32 %v1526_v57, 6.0  ;;  %v1456_v18 = vadd.f32 %v5990_v48, %v1421_v20  ;;  %v5996_v20 = vld [vmem:[#allocation48_spill] sm:$0xff] }
 0x335   :  { %v1389_v11 = vadd.f32 %v1373_v33, %v4733_v16  ;;  %v1528_v56 = vmax.f32 %v1512_v34, 0.0  ;;  %v1374_v14 = vmul.f32 %v4426_v49, %v1241_v4  ;;  %v1409_v2 = vmul.f32 %v4414_v0, %v5991_v15  ;;  %v5997_v48 = vld [vmem:[#allocation44_spill] sm:$0xff] }
 0x336   :  { %v1443_v44 = vmul.f32 %v4417_v60, %v4686_v24  ;;  %v1555_v43 = vpack.c.bf16 %v1542_v29, %v1541_v55  ;;  %v1491_v47 = vadd.f32 %v1476_v8, %v1456_v18  ;;  %v1423_v54 = vadd.f32 %v1408_v53, %v4737_v9 }
 0x337   :  { %v1444_v61 = vmul.f32 %v4417_v60, %v5985_v7  ;;  %v1544_v16 = vmin.f32 %v1528_v56, 6.0  ;;  %v1424_v23 = vadd.f32 %v1409_v2, %v1389_v11  ;;  %v1478_v35 = vmul.f32 %v4434_v62, %v1240_v17  ;;  %v5995_v17 = vld [vmem:[#allocation45_spill] sm:$0xff]  ;;  %v5998_v11 = vld [vmem:[#allocation47_spill] sm:$0xff]  ;;  %v5999_v2 = vld [vmem:[#allocation46_spill] sm:$0xff] }
 0x338   :  { %v5993_v28 = vrot.slane %v5992_v5, 1  ;;  %3245 = vmatprep.mubr.bf16.mxu1 %v1555_v43  ;;  %v1511_v39 = vadd.f32 %v4837_v42, %v1491_v47  ;;  %v1458_v24 = vadd.f32 %v1443_v44, %v1423_v54  ;;  %v5994_v21 = vrot.slane %v4725_v6, 1 }
 0x339   :  { %v1459_v58 = vadd.f32 %v1444_v61, %v1424_v23  ;;  %v1479_v57 = vmul.f32 %v4434_v62, %v1241_v4  ;;  %v1314_v10 = vadd.f32 %v5995_v17, %v1274_v22  ;;  %v1315_v1 = vadd.f32 %v5996_v20, %v1275_v36 }
 0x33a   :  { %v1242_v3 = vsel %vm296_vm1, %v5993_v28, 0.0  ;;  %v1243_v9 = vsel %vm296_vm1, %v5994_v21, 0.0  ;;  %v1527_v8 = vmax.f32 %v1511_v39, 0.0  ;;  %v1493_v33 = vadd.f32 %v1478_v35, %v1458_v24 }
 0x33b   :  { %v1261_v7 = vmul.f32 %v4398_v63, %v1242_v3  ;;  %v1262_v55 = vmul.f32 %v4398_v63, %v1243_v9  ;;  %v1494_v29 = vadd.f32 %v1479_v57, %v1459_v58  ;;  %v1350_v18 = vadd.f32 %v5997_v48, %v1314_v10 }
 0x33c   :  { %v1351_v53 = vadd.f32 %v5998_v11, %v1315_v1  ;;  %v1375_v56 = vmul.f32 %v4426_v49, %v1242_v3  ;;  %v1543_v15 = vmin.f32 %v1527_v8, 6.0  ;;  %v1513_v4 = vadd.f32 %v4837_v42, %v1493_v33 }
 0x33d   :  { %v1276_v34 = vadd.f32 %v1261_v7, %v4731_v51  ;;  %v1277_v22 = vadd.f32 %v1262_v55, %v4794_v41  ;;  %v1410_v36 = vmul.f32 %v4414_v0, %v5999_v2  ;;  %v1514_v44 = vadd.f32 %v4837_v42, %v1494_v29 }
 0x33e   :  { %v1390_v43 = vadd.f32 %v1374_v14, %v1350_v18  ;;  %v1391_v47 = vadd.f32 %v1375_v56, %v1351_v53  ;;  %v1411_v51 = vmul.f32 %v4414_v0, %v4763_v46  ;;  %v1556_v54 = vpack.c.bf16 %v1544_v16, %v1543_v15 }
 0x33f   :  { %v1529_v61 = vmax.f32 %v1513_v4, 0.0  ;;  %v1445_v23 = vmul.f32 %v4417_v60, %v5992_v5  ;;  %v1446_v35 = vmul.f32 %v4417_v60, %v4725_v6  ;;  %v1530_v28 = vmax.f32 %v1514_v44, 0.0  ;;  %v6003_v44 = vld [vmem:[#allocation52_spill] sm:$0xff] }
 0x340   :  { %v1425_v41 = vadd.f32 %v1410_v36, %v1390_v43  ;;  %v1426_v39 = vadd.f32 %v1411_v51, %v1391_v47  ;;  %v1480_v24 = vmul.f32 %v4434_v62, %v1242_v3  ;;  %3246 = vmatmul.mubr.bf16.gmra.mrb[20].mxu1 %v1556_v54  ;;  %v1481_v14 = vmul.f32 %v4434_v62, %v1243_v9  ;;  %v6002_v36 = vld [vmem:[#allocation50_spill] sm:$0xff] }
 0x341   :  { %v1545_v21 = vmin.f32 %v1529_v61, 6.0  ;;  %v6000_v7 = vrot.slane %v4742_v52, 1  ;;  %v1316_v16 = vadd.f32 %v4787_v27, %v1276_v34  ;;  %v1546_v5 = vmin.f32 %v1530_v28, 6.0 }
 0x342   :  { %v1460_v58 = vadd.f32 %v1445_v23, %v1425_v41  ;;  %v1461_v57 = vadd.f32 %v1446_v35, %v1426_v39  ;;  %v1337_v17 = vmul.f32 %v4408_v25, %v4742_v52  ;;  %v1376_v3 = vmul.f32 %v4426_v49, %v1243_v9  ;;  %v6004_v35 = vld [vmem:[#allocation49_spill] sm:$0xff] }
 0x343   :  { %v1244_v46 = vsel %vm296_vm1, %v6000_v7, 0.0  ;;  %v1317_v10 = vadd.f32 %v4818_v32, %v1277_v22  ;;  %v1352_v20 = vadd.f32 %v4772_v31, %v1316_v16  ;;  %v1557_v1 = vpack.c.bf16 %v1546_v5, %v1545_v21 }
 0x344   :  { %v1263_v6 = vmul.f32 %v4398_v63, %v1244_v46  ;;  %v1495_v8 = vadd.f32 %v1480_v24, %v1460_v58  ;;  %v1496_v33 = vadd.f32 %v1481_v14, %v1461_v57  ;;  %v1377_v34 = vmul.f32 %v4426_v49, %v1244_v46 }
 0x345   :  { %v1353_v27 = vadd.f32 %v1337_v17, %v1317_v10  ;;  %v1392_v29 = vadd.f32 %v1376_v3, %v1352_v20  ;;  %v1412_v63 = vmul.f32 %v4414_v0, %v4804_v38  ;;  %3249 = vmatprep.mubr.bf16.mxu1 %v1557_v1  ;;  %v1413_v31 = vmul.f32 %v4414_v0, %v4746_v40  ;;  %v6001_v40 = vld [vmem:[#allocation51_spill] sm:$0xff] }
 0x346   :  { %v1278_v55 = vadd.f32 %v1263_v6, %v4863_v37  ;;  %v1515_v25 = vadd.f32 %v4837_v42, %v1495_v8  ;;  %v1516_v9 = vadd.f32 %v4837_v42, %v1496_v33  ;;  %v1447_v32 = vmul.f32 %v4417_v60, %v4742_v52 }
 0x347   :  { %v1393_v48 = vadd.f32 %v1377_v34, %v1353_v27  ;;  %v1427_v37 = vadd.f32 %v1412_v63, %v1392_v29  ;;  %v1448_v18 = vmul.f32 %v4417_v60, %v4721_v50  ;;  %v1482_v56 = vmul.f32 %v4434_v62, %v1244_v46  ;;  %v6005_v29 = vld [vmem:[#allocation13_spill] sm:$0xff] }
 0x348   :  { %v1318_v11 = vadd.f32 %v4780_v26, %v1278_v55  ;;  %v1531_v53 = vmax.f32 %v1515_v25, 0.0  ;;  %v1532_v38 = vmax.f32 %v1516_v9, 0.0  ;;  %v1430_v15 = vadd.f32 %v5981_v13, %v4832_v59  ;;  %v6006_v25 = vld [vmem:[#allocation16_spill] sm:$0xff] }
 0x349   :  { %v1428_v4 = vadd.f32 %v1413_v31, %v1393_v48  ;;  %v1462_v22 = vadd.f32 %v1447_v32, %v1427_v37  ;;  %v1378_v52 = vmul.f32 %v4426_v49, %v6002_v36  ;;  %v1414_v43 = vmul.f32 %v4414_v0, %v6003_v44  ;;  %v6007_v31 = vld [vmem:[#allocation18_spill] sm:$0xff]  ;;  %v6008_v48 = vld [vmem:[#allocation23_spill] sm:$0xff]  ;;  %v6010_v44 = vld [vmem:[#allocation17_spill] sm:$0xff] }
 0x34a   :  { %v1354_v2 = vadd.f32 %v6001_v40, %v1318_v11  ;;  %v1547_v50 = vmin.f32 %v1531_v53, 6.0  ;;  %v1548_v47 = vmin.f32 %v1532_v38, 6.0  ;;  %v1465_v26 = vadd.f32 %v5983_v45, %v1430_v15 }
 0x34b   :  { %v1463_v51 = vadd.f32 %v1448_v18, %v1428_v4  ;;  %v1483_v54 = vmul.f32 %v4434_v62, %v6002_v36  ;;  %v1497_v61 = vadd.f32 %v1482_v56, %v1462_v22  ;;  %v1449_v28 = vmul.f32 %v4417_v60, %v6004_v35  ;;  %v6009_v36 = vld [vmem:[#allocation19_spill] sm:$0xff] }
 0x34c   :  { %v1394_v59 = vadd.f32 %v1378_v52, %v1354_v2  ;;  %v1558_v13 = vpack.c.bf16 %v1548_v47, %v1547_v50  ;;  %v1500_v23 = vadd.f32 %v5987_v30, %v1465_v26  ;;  %v1484_v45 = vmul.f32 %v4434_v62, %v4798_v12  ;;  %v3456_v62 = vld [vmem:[%s5749_s7 + $0x70] sm:$0xff]   ;;  %v3457_v12 = vld [vmem:[%s5749_s7 + $0x78] sm:$0xff]  }
 0x34d   :  { %v1498_v49 = vadd.f32 %v1483_v54, %v1463_v51  ;;  %v1517_v41 = vadd.f32 %v4837_v42, %v1497_v61  ;;  %3269 = vmatprep.subr.bf16.mxu0 %v3456_v62  ;;  %v6011_v50 = vld [vmem:[#allocation14_spill] sm:$0xff] }
 0x34e   :  { %v1429_v0 = vadd.f32 %v1414_v43, %v1394_v59  ;;  %3250 = vmatmul.mubr.bf16.gmra.mrb[24].mxu1 %v1558_v13  ;;  %v1520_v14 = vadd.f32 %v4837_v42, %v1500_v23  ;;  %3270 = vmatpush3.bf16.msra.mxu0 %v3456_v62  ;;  %v6012_v26 = vld [vmem:[#allocation22_spill] sm:$0xff] }
 0x34f   :  { %v1518_v39 = vadd.f32 %v4837_v42, %v1498_v49  ;;  %v1533_v24 = vmax.f32 %v1517_v41, 0.0  ;;  %3271 = vmatprep.subr.bf16.mxu0 %v3457_v12 }
 0x350   :  { %v1464_v21 = vadd.f32 %v1449_v28, %v1429_v0  ;;  %v1536_v5 = vmax.f32 %v1520_v14, 0.0  ;;  %v6015_v14 = vld [vmem:[#allocation21_spill] sm:$0xff] }
 0x351   :  { %v1534_v7 = vmax.f32 %v1518_v39, 0.0  ;;  %v1549_v30 = vmin.f32 %v1533_v24, 6.0  ;;  %v6014_v24 = vld [vmem:[#allocation15_spill] sm:$0xff] }
 0x352   :  { %v1499_v46 = vadd.f32 %v1484_v45, %v1464_v21  ;;  %v1552_v17 = vmin.f32 %v1536_v5, 6.0  ;;  %3272 = vmatpush3.bf16.msra.mxu0 %v3457_v12  ;;  %v6013_v45 = vld [vmem:[#allocation24_spill] sm:$0xff] }
 0x353   :  { %v1550_v16 = vmin.f32 %v1534_v7, 6.0 }
 0x354   :  { %v1519_v60 = vadd.f32 %v4837_v42, %v1499_v46  ;;  %v2945_v42 = vld [vmem:[%s5754_s12] ss:$0 sm:$0xff] }
 0x355   :  { %v1559_v58 = vpack.c.bf16 %v1550_v16, %v1549_v30  ;;  %v6016_v46 = vld [vmem:[#allocation20_spill] sm:$0xff] }
 0x356   :  { %v1535_v57 = vmax.f32 %v1519_v60, 0.0 }
 0x357   :  { %3253 = vmatprep.mubr.bf16.mxu1 %v1559_v58 }
 0x358   :  { %v1551_v6 = vmin.f32 %v1535_v57, 6.0 }
 0x35a   :  { %v1560_v3 = vpack.c.bf16 %v1552_v17, %v1551_v6 }
 0x35c   :  { %3254 = vmatmul.mubr.bf16.gmra.mrb[28].mxu1 %v1560_v3 }
 0x405   :  { %v3243_v10 = vpop.f32.mrb[16].mxu1 }
 0x406   :  { %v1673_v20 = vadd.f32 %v3243_v10, %v2945_v42  ;;  %v1664_v1 = vpop.f32.mrb[17].mxu1  ;;  %v6017_v10 = vld [vmem:[#allocation29_spill] sm:$0xff] }
 0x407   :  { %v1665_v8 = vadd.f32 %v2945_v42, %v1664_v1  ;;  %v3244_v33 = vpop.f32.mrb[18].mxu1  ;;  %v6018_v1 = vld [vmem:[#allocation26_spill] sm:$0xff] }
 0x408   :  { %v1676_v55 = vadd.f32 %v3244_v33, %v2945_v42  ;;  %v1667_v27 = vpop.f32.mrb[19].mxu1  ;;  %v1729_v63 = vadd.f32 %v1673_v20, %v6005_v29  ;;  %v6019_v33 = vld [vmem:[#allocation28_spill] sm:$0xff] }
 0x409   :  { %v1668_v34 = vadd.f32 %v2945_v42, %v1667_v27  ;;  %v1727_v32 = vadd.f32 %v1665_v8, %v6007_v31  ;;  %v6020_v27 = vld [vmem:[#allocation27_spill] sm:$0xff] }
 0x40a   :  { %v1730_v9 = vadd.f32 %v1676_v55, %v6006_v25  ;;  %v3458_v25 = vld [vmem:[%s5753_s11 + $0x40] sm:$0xff]   ;;  %v3461_v31 = vld [vmem:[%s5753_s11 + $0x58] sm:$0xff]  }
 0x40b   :  { %v1728_v37 = vadd.f32 %v1668_v34, %v6008_v48  ;;  %3289 = vmatprep.subr.bf16.mxu1 %v3458_v25  ;;  %v3463_v48 = vld [vmem:[%s5753_s11 + $0x68] sm:$0xff]  }
 0x40c   :  { %v1744_v18 = vpack.c.bf16 %v1730_v9, %v1729_v63  ;;  %3290 = vmatpush3.bf16.msra.mxu1 %v3458_v25  ;;  %v3460_v9 = vld [vmem:[%s5753_s11 + $0x50] sm:$0xff]  }
 0x40d   :  { %v1743_v11 = vpack.c.bf16 %v1728_v37, %v1727_v32  ;;  %v3462_v32 = vld [vmem:[%s5753_s11 + $0x60] sm:$0xff]   ;;  %v3464_v37 = vld [vmem:[%s5753_s11 + $0x70] sm:$0xff]  }
 0x40f   :  { %3273 = vmatprep.mubr.bf16.mxu0 %v1743_v11  ;;  %v2979_v11 = vld [vmem:[%s5751_s9 + $0x10] sm:$0xff] }
 0x410   :  { %3274 = vmatmul.mubr.bf16.vlgmr.msra.gmra.mrb[32].mxu0 %v1744_v18  ;;  %v3465_v18 = vld [vmem:[%s5753_s11 + $0x78] sm:$0xff]  }
 0x413   :  { %v3247_v53 = vpop.f32.mrb[20].mxu1 }
 0x414   :  { %v1689_v38 = vadd.f32 %v3247_v53, %v2945_v42  ;;  %v1680_v56 = vpop.f32.mrb[21].mxu1  ;;  %v3466_v53 = vld [vmem:[%s5755_s13] sm:$0xff]  }
 0x415   :  { %v1681_v15 = vadd.f32 %v2945_v42, %v1680_v56  ;;  %v3248_v4 = vpop.f32.mrb[22].mxu1  ;;  %v6021_v56 = vld [vmem:[#allocation6_spill] sm:$0xff]  ;;  %3321 = vmatprep.subr.bf16.mxu0 %v3466_v53 }
 0x416   :  { %v1692_v22 = vadd.f32 %v3248_v4, %v2945_v42  ;;  %v1683_v40 = vpop.f32.mrb[23].mxu1  ;;  %v1733_v52 = vadd.f32 %v1689_v38, %v6009_v36  ;;  %v3467_v38 = vld [vmem:[%s5755_s13 + $0x8] sm:$0xff]   ;;  %3322 = vmatpush3.bf16.msra.mxu0 %v3466_v53 }
 0x417   :  { %v1684_v2 = vadd.f32 %v2945_v42, %v1683_v40  ;;  %v1731_v47 = vadd.f32 %v1681_v15, %v6011_v50  ;;  %v5045_v15 = vrot.slane %v2979_v11, %v6021_v56  ;;  %v6022_v4 = vld [vmem:[#allocation5_spill] sm:$0xff]  ;;  %3323 = vmatprep.subr.bf16.mxu0 %v3467_v38  ;;  %v3468_v40 = vld [vmem:[%s5755_s13 + $0x10] sm:$0xff]  }
 0x418   :  { %v1734_v43 = vadd.f32 %v1692_v22, %v6010_v44  ;;  %v5048_v22 = vrot.slane %v2979_v11, %v6022_v4  ;;  %v6023_v44 = vld [vmem:[#allocation7_spill] sm:$0xff] }
 0x419   :  { %v1732_v51 = vadd.f32 %v1684_v2, %v6012_v26  ;;  %v5056_v2 = vld [vmem:[%s5750_s8 + $0x1] ss:$0 sm:$0xff]  ;;  %v1986_v36 = vmul.f32 0.0, %v5045_v15 }
 0x41a   :  { %v1746_v54 = vpack.c.bf16 %v1734_v43, %v1733_v52  ;;  %v2020_v52 = vmul.f32 0.0, %v5048_v22  ;;  %v5061_v43 = vrot.slane %v2979_v11, %v6023_v44  ;;  %3324 = vmatpush3.bf16.msra.mxu0 %v3467_v38 }
 0x41b   :  { %v1745_v61 = vpack.c.bf16 %v1732_v51, %v1731_v47  ;;  %3325 = vmatprep.subr.bf16.mxu0 %v3468_v40  ;;  %v3469_v51 = vld [vmem:[%s5755_s13 + $0x18] sm:$0xff]  }
 0x41d   :  { %3277 = vmatprep.mubr.bf16.mxu0 %v1745_v61 }
 0x41e   :  { %3278 = vmatmul.mubr.bf16.gmra.mrb[36].mxu0 %v1746_v54 }
 0x41f   :  { %3326 = vmatpush3.bf16.msra.mxu0 %v3468_v40 }
 0x420   :  { %3327 = vmatprep.subr.bf16.mxu0 %v3469_v51 }
 0x421   :  { %v3251_v59 = vpop.f32.mrb[24].mxu1 }
 0x422   :  { %v1705_v13 = vadd.f32 %v3251_v59, %v2945_v42  ;;  %v1696_v23 = vpop.f32.mrb[25].mxu1 }
 0x423   :  { %v1697_v35 = vadd.f32 %v2945_v42, %v1696_v23  ;;  %v3252_v28 = vpop.f32.mrb[26].mxu1  ;;  %v2082_v23 = vmul.f32 0.0, %v5061_v43  ;;  %3328 = vmatpush3.bf16.msra.mxu0 %v3469_v51 }
 0x424   :  { %v1708_v49 = vadd.f32 %v3252_v28, %v2945_v42  ;;  %v1699_v41 = vpop.f32.mrb[27].mxu1  ;;  %v1737_v39 = vadd.f32 %v1705_v13, %v6013_v45  ;;  %v2035_v13 = vadd.f32 %v2020_v52, %v1986_v36 }
 0x425   :  { %v1700_v0 = vadd.f32 %v2945_v42, %v1699_v41  ;;  %v1735_v7 = vadd.f32 %v1697_v35, %v6015_v14 }
 0x426   :  { %v1738_v21 = vadd.f32 %v1708_v49, %v6014_v24  ;;  %v6024_v49 = vld [vmem:[#allocation8_spill] sm:$0xff] }
 0x427   :  { %v1736_v30 = vadd.f32 %v1700_v0, %v6016_v46  ;;  %v5071_v41 = vrot.slane %v2979_v11, %v6024_v49 }
 0x428   :  { %v1748_v16 = vpack.c.bf16 %v1738_v21, %v1737_v39  ;;  %v6025_v21 = vld [vmem:[#allocation9_spill] sm:$0xff] }
 0x429   :  { %v1747_v60 = vpack.c.bf16 %v1736_v30, %v1735_v7  ;;  %v5077_v14 = vrot.slane %v2979_v11, %v6025_v21  ;;  %v6026_v7 = vld [vmem:[#allocation10_spill] sm:$0xff]  ;;  %v3470_v30 = vld [vmem:[%s5755_s13 + $0x20] sm:$0xff]  }
 0x42a   :  { %v5080_v46 = vrot.slane %v2979_v11, %v6026_v7  ;;  %3329 = vmatprep.subr.bf16.mxu0 %v3470_v30 }
 0x42b   :  { %3281 = vmatprep.mubr.bf16.mxu0 %v1747_v60  ;;  %3330 = vmatpush3.bf16.msra.mxu0 %v3470_v30 }
 0x42c   :  { %3282 = vmatmul.mubr.bf16.gmra.mrb[40].mxu0 %v1748_v16  ;;  %v6027_v16 = vld [vmem:[#allocation11_spill] sm:$0xff] }
 0x42d   :  { %v5086_v60 = vrot.slane %v2979_v11, %v6027_v16 }
 0x42f   :  { %v3255_v5 = vpop.f32.mrb[28].mxu1 }
 0x430   :  { %v1721_v58 = vadd.f32 %v3255_v5, %v2945_v42  ;;  %v1712_v57 = vpop.f32.mrb[29].mxu1 }
 0x431   :  { %v1713_v6 = vadd.f32 %v2945_v42, %v1712_v57  ;;  %v3256_v17 = vpop.f32.mrb[30].mxu1 }
 0x432   :  { %v1724_v3 = vadd.f32 %v3256_v17, %v2945_v42  ;;  %v1715_v62 = vpop.f32.mrb[31].mxu1  ;;  %v1741_v20 = vadd.f32 %v1721_v58, %v6017_v10  ;;  %v6028_v58 = vld [vmem:[#allocation12_spill] sm:$0xff]  ;;  %v5103_v10 = vmul.f32 0.0, %v5080_v46 }
 0x433   :  { %v1716_v12 = vadd.f32 %v2945_v42, %v1715_v62  ;;  %v1739_v55 = vadd.f32 %v1713_v6, %v6019_v33  ;;  %v3459_v42 = vld [vmem:[%s5753_s11 + $0x48] sm:$0xff]   ;;  %v5089_v57 = vrot.slane %v2979_v11, %v6028_v58  ;;  %v5097_v62 = vld [vmem:[%s5751_s9 + $0x18] ss:$0 sm:$0xff]  ;;  %s3501_s11 = smov [#allocation2]  }
 0x434   :  { %v1742_v8 = vadd.f32 %v1724_v3, %v6018_v1  ;;  %3291 = vmatprep.subr.bf16.mxu1 %v3459_v42  ;;  %v5092_v3 = vadd.f32 %v2082_v23, %v2035_v13  ;;  %6030 = vst [vmem:[#allocation35_spill] sm:$0xff] %v5103_v10  ;;  %v5107_v33 = vmul.f32 0.0, %v5097_v62  ;;  %s2896_s24 = sshll.u32 %s3501_s11, 4  ;;  %s2897_s24 = int_to_ptr.vmem [resolvable:$true] %s2896_s24 }
 0x435   :  { %v1740_v34 = vadd.f32 %v1716_v12, %v6020_v27  ;;  %3292 = vmatpush3.bf16.msra.mxu1 %v3459_v42  ;;  %v5100_v12 = vmul.f32 0.0, %v5077_v14  ;;  %s3474_s25 = scalar_lea.vmem %s2897_s24, 32  ;;  %p3479_p1 = scmp.lt.s32.totalorder %s2897_s24, %s2897_s24 }
 0x436   :  { %v1750_v29 = vpack.c.bf16 %v1742_v8, %v1741_v20  ;;  %3293 = vmatprep.subr.bf16.mxu1 %v3460_v9  ;;  %6031 = vst [vmem:[#allocation39_spill] sm:$0xff] %v5107_v33  ;;  %p3475_p0 = scmp.ne.s32.totalorder %s2897_s24, %s3474_s25  ;;  %p3480_p2 = scmp.lt.s32.totalorder %s3474_s25, %s3474_s25 }
 0x437   :  { %v1749_v63 = vpack.c.bf16 %v1740_v34, %v1739_v55  ;;  %6029 = vst [vmem:[#allocation30_spill] sm:$0xff] %v5100_v12 }
 0x438   :  { %p3481_p3 = por %p3480_p2, %p3479_p1 }
 0x439   :  { %3285 = vmatprep.mubr.bf16.mxu0 %v1749_v63  ;;  %3294 = vmatpush3.bf16.msra.mxu1 %v3460_v9  ;;  %v3471_v63 = vld [vmem:[%s5755_s13 + $0x28] sm:$0xff]  }
 0x43a   :  { %3286 = vmatmul.mubr.bf16.gmra.mrb[44].mxu0 %v1750_v29  ;;  %3295 = vmatprep.subr.bf16.mxu1 %v3461_v31  ;;  %p3482_p4 = pnand %p3481_p3, %p3475_p0 }
 0x43b   :  { %3331 = vmatprep.subr.bf16.mxu0 %v3471_v63 }
 0x43c   :  { %3332 = vmatpush3.bf16.msra.mxu0 %v3471_v63 }
 0x43d   :  { %3296 = vmatpush3.bf16.msra.mxu1 %v3461_v31 }
 0x43e   :  { %3297 = vmatprep.subr.bf16.mxu1 %v3462_v32 }
 0x441   :  { %3298 = vmatpush3.bf16.msra.mxu1 %v3462_v32 }
 0x442   :  { %3299 = vmatprep.subr.bf16.mxu1 %v3463_v48 }
 0x445   :  { %3300 = vmatpush3.bf16.msra.mxu1 %v3463_v48 }
 0x446   :  { %3301 = vmatprep.subr.bf16.mxu1 %v3464_v37 }
 0x449   :  { %3302 = vmatpush3.bf16.msra.mxu1 %v3464_v37 }
 0x44a   :  { %3303 = vmatprep.subr.bf16.mxu1 %v3465_v18 }
 0x44d   :  { %3304 = vmatpush3.bf16.msra.mxu1 %v3465_v18 }
 0x4e3   :  { %v3275_v50 = vpop.f32.mrb[32].mxu0 }
 0x4e4   :  { %v1864_v47 = vadd.f32 %v3275_v50, %v5056_v2  ;;  %v1855_v26 = vpop.f32.mrb[33].mxu0 }
 0x4e5   :  { %v1856_v54 = vadd.f32 %v5056_v2, %v1855_v26  ;;  %v3276_v61 = vpop.f32.mrb[34].mxu0 }
 0x4e6   :  { %v1920_v59 = vmax.f32 %v1864_v47, 0.0  ;;  %v1867_v35 = vadd.f32 %v3276_v61, %v5056_v2  ;;  %v1858_v28 = vpop.f32.mrb[35].mxu0 }
 0x4e7   :  { %v1918_v0 = vmax.f32 %v1856_v54, 0.0  ;;  %v1859_v45 = vadd.f32 %v5056_v2, %v1858_v28 }
 0x4e8   :  { %v5074_v39 = vmin.f32 %v1920_v59, 6.0  ;;  %v1921_v24 = vmax.f32 %v1867_v35, 0.0 }
 0x4e9   :  { %v1934_v5 = vmin.f32 %v1918_v0, 6.0  ;;  %v1919_v6 = vmax.f32 %v1859_v45, 0.0 }
 0x4ea   :  { %v1956_v17 = vrot.slane %v5074_v39, 7  ;;  %v2052_v20 = vrot.slane %v5074_v39, 1  ;;  %v2023_v27 = vmul.f32 %v5048_v22, %v5074_v39  ;;  %v5117_v34 = vmul.f32 %v5071_v41, %v5074_v39 }
 0x4eb   :  { %v1954_v1 = vrot.slane %v1934_v5, 7  ;;  %v2050_v8 = vrot.slane %v1934_v5, 1  ;;  %v1937_v29 = vmin.f32 %v1921_v24, 6.0  ;;  %v5128_v31 = vmin.f32 %v1919_v6, 6.0 }
 0x4ec   :  { %v5111_v55 = vsel %vm297_vm2, %v1956_v17, 0.0  ;;  %v2021_v48 = vmul.f32 %v5048_v22, %v1934_v5  ;;  %v2156_v18 = vmul.f32 %v5071_v41, %v1934_v5  ;;  %v5140_v56 = vsel %vm296_vm1, %v2052_v20, 0.0 }
 0x4ed   :  { %v1989_v25 = vmul.f32 %v5045_v15, %v5111_v55  ;;  %v1968_v42 = vsel %vm297_vm2, %v1954_v1, 0.0  ;;  %v2064_v9 = vsel %vm296_vm1, %v2050_v8, 0.0  ;;  %v5136_v11 = vmul.f32 %v5086_v60, %v5111_v55 }
 0x4ee   :  { %v1987_v32 = vmul.f32 %v5045_v15, %v1968_v42  ;;  %v2120_v37 = vmul.f32 %v5086_v60, %v1968_v42  ;;  %v1957_v53 = vrot.slane %v1937_v29, 7  ;;  %v2053_v38 = vrot.slane %v1937_v29, 1 }
 0x4ef   :  { %v2083_v40 = vmul.f32 %v5061_v43, %v2064_v9  ;;  %v2196_v52 = vmul.f32 %v5089_v57, %v2064_v9  ;;  %v5145_v50 = vadd.f32 %v2023_v27, %v1989_v25  ;;  %v1955_v51 = vrot.slane %v5128_v31, 7 }
 0x4f0   :  { %v2036_v4 = vadd.f32 %v2021_v48, %v1987_v32  ;;  %v2136_v36 = vadd.f32 %v2120_v37, %v5092_v3  ;;  %v1971_v47 = vsel %vm297_vm2, %v1957_v53, 0.0  ;;  %v2067_v26 = vsel %vm296_vm1, %v2053_v38, 0.0 }
 0x4f1   :  { %v3279_v44 = vpop.f32.mrb[36].mxu0  ;;  %v1990_v61 = vmul.f32 %v5045_v15, %v1971_v47  ;;  %v2024_v59 = vmul.f32 %v5048_v22, %v1937_v29  ;;  %v5155_v13 = vmul.f32 %v5071_v41, %v1937_v29  ;;  %v5158_v23 = vmul.f32 %v5080_v46, %v1937_v29 }
 0x4f2   :  { %v1871_v54 = vpop.f32.mrb[37].mxu0  ;;  %v2098_v28 = vadd.f32 %v2083_v40, %v2036_v4  ;;  %v2172_v49 = vadd.f32 %v2156_v18, %v2136_v36  ;;  %v2086_v0 = vmul.f32 %v5061_v43, %v2067_v26  ;;  %v2022_v45 = vmul.f32 %v5048_v22, %v5128_v31 }
 0x4f3   :  { %v3280_v35 = vpop.f32.mrb[38].mxu0  ;;  %v5164_v21 = vmul.f32 %v5086_v60, %v1971_v47  ;;  %v5167_v7 = vmul.f32 %v5089_v57, %v2067_v26  ;;  %v5171_v30 = vsel %vm297_vm2, %v1955_v51, 0.0  ;;  %v2051_v16 = vrot.slane %v5128_v31, 1 }
 0x4f4   :  { %v1874_v24 = vpop.f32.mrb[39].mxu0  ;;  %v5175_v5 = vmul.f32 %v5077_v14, %v1971_v47  ;;  %v1988_v58 = vmul.f32 %v5045_v15, %v5171_v30  ;;  %v2121_v6 = vmul.f32 %v5086_v60, %v5171_v30  ;;  %v1880_v17 = vadd.f32 %v3279_v44, %v5056_v2 }
 0x4f5   :  { %v2039_v20 = vadd.f32 %v2024_v59, %v1990_v61  ;;  %v1872_v1 = vadd.f32 %v5056_v2, %v1871_v54  ;;  %v1883_v8 = vadd.f32 %v3280_v35, %v5056_v2  ;;  %v1875_v27 = vadd.f32 %v5056_v2, %v1874_v24 }
 0x4f6   :  { %v2137_v29 = vadd.f32 %v2121_v6, %v2098_v28  ;;  %v2157_v63 = vmul.f32 %v5071_v41, %v5128_v31  ;;  %v1924_v25 = vmax.f32 %v1880_v17, 0.0  ;;  %v5189_v42 = vsel %vm296_vm1, %v2051_v16, 0.0 }
 0x4f7   :  { %v2037_v9 = vadd.f32 %v2022_v45, %v1988_v58  ;;  %v1922_v32 = vmax.f32 %v1872_v1, 0.0  ;;  %v1925_v48 = vmax.f32 %v1883_v8, 0.0  ;;  %v1923_v37 = vmax.f32 %v1875_v27, 0.0 }
 0x4f8   :  { %v5191_v18 = vadd.f32 %v2196_v52, %v2172_v49  ;;  %v5194_v53 = vmul.f32 %v5097_v62, %v2067_v26  ;;  %v5196_v38 = vadd.f32 %v2157_v63, %v2137_v29  ;;  %v5198_v4 = vmin.f32 %v1924_v25, 6.0 }
 0x4f9   :  { %v2101_v40 = vadd.f32 %v2086_v0, %v2039_v20  ;;  %v1938_v36 = vmin.f32 %v1922_v32, 6.0  ;;  %v5200_v44 = vmin.f32 %v1925_v48, 6.0  ;;  %v2084_v47 = vmul.f32 %v5061_v43, %v5189_v42 }
 0x4fa   :  { %6032 = vst [vmem:[#allocation40_spill] sm:$0xff] %v5198_v4  ;;  %v1960_v51 = vrot.slane %v5198_v4, 7  ;;  %v2056_v54 = vrot.slane %v5198_v4, 1  ;;  %v2085_v52 = vmul.f32 %v5061_v43, %v5140_v56  ;;  %v5210_v26 = vmul.f32 %v5089_v57, %v5189_v42 }
 0x4fb   :  { %v1958_v61 = vrot.slane %v1938_v36, 7  ;;  %v2054_v59 = vrot.slane %v1938_v36, 1  ;;  %v5212_v35 = vmin.f32 %v1923_v37, 6.0  ;;  %v2099_v28 = vadd.f32 %v2084_v47, %v2037_v9 }
 0x4fc   :  { %v5216_v49 = vsel %vm297_vm2, %v1960_v51, 0.0  ;;  %v2027_v0 = vmul.f32 %v5048_v22, %v5198_v4  ;;  %v5222_v45 = vsel %vm296_vm1, %v2056_v54, 0.0  ;;  %v2112_v24 = vrot.slane %v5200_v44, 7 }
 0x4fd   :  { %6033 = vst [vmem:[#allocation34_spill] sm:$0xff] %v5222_v45  ;;  %v1993_v58 = vmul.f32 %v5045_v15, %v5216_v49  ;;  %v5229_v6 = vmul.f32 %v5071_v41, %v5198_v4  ;;  %v1972_v17 = vsel %vm297_vm2, %v1958_v61, 0.0  ;;  %v5235_v20 = vsel %vm296_vm1, %v2054_v59, 0.0 }
 0x4fe   :  { %v1991_v8 = vmul.f32 %v5045_v15, %v1972_v17  ;;  %v2025_v27 = vmul.f32 %v5048_v22, %v1938_v36  ;;  %v2124_v29 = vmul.f32 %v5086_v60, %v1972_v17  ;;  %v2160_v63 = vmul.f32 %v5071_v41, %v1938_v36 }
 0x4ff   :  { %v3283_v16 = vpop.f32.mrb[40].mxu0  ;;  %6034 = vst [vmem:[#allocation25_spill] sm:$0xff] %v5229_v6  ;;  %v2042_v9 = vadd.f32 %v2027_v0, %v1993_v58  ;;  %v5242_v32 = vmul.f32 %v5080_v46, %v1938_v36  ;;  %v2089_v48 = vmul.f32 %v5061_v43, %v5222_v45  ;;  %v2114_v37 = vsel %vm297_vm2, %v2112_v24, 0.0 }
 0x500   :  { %v1887_v1 = vpop.f32.mrb[41].mxu0  ;;  %v5250_v51 = vmul.f32 %v5086_v60, %v5216_v49  ;;  %v2040_v54 = vadd.f32 %v2025_v27, %v1991_v8  ;;  %v2087_v61 = vmul.f32 %v5061_v43, %v5235_v20  ;;  %v2140_v59 = vadd.f32 %v2124_v29, %v2101_v40 }
 0x501   :  { %v3284_v25 = vpop.f32.mrb[42].mxu0  ;;  %v5255_v0 = vmul.f32 %v5077_v14, %v1972_v17  ;;  %v2104_v36 = vadd.f32 %v2089_v48, %v2042_v9  ;;  %v2127_v58 = vmul.f32 %v5086_v60, %v2114_v37  ;;  %v2188_v33 = vrot.slane %v5200_v44, 1 }
 0x502   :  { %v1890_v47 = vpop.f32.mrb[43].mxu0  ;;  %6035 = vst [vmem:[#allocation32_spill] sm:$0xff] %v5250_v51  ;;  %v5259_v10 = vadd.f32 %v2160_v63, %v2140_v59  ;;  %v5263_v24 = vmul.f32 %v5097_v62, %v5235_v20  ;;  %v2163_v8 = vmul.f32 %v5071_v41, %v5200_v44  ;;  %v1959_v27 = vrot.slane %v5212_v35, 7 }
 0x503   :  { %v2102_v40 = vadd.f32 %v2087_v61, %v2040_v54  ;;  %v2143_v29 = vadd.f32 %v2127_v58, %v2104_v36  ;;  %v5270_v17 = vsel %vm296_vm1, %v2188_v33, 0.0  ;;  %v5273_v9 = vmul.f32 %v5077_v14, %v2114_v37 }
 0x504   :  { %6036 = vst [vmem:[#allocation37_spill] sm:$0xff] %v5263_v24  ;;  %6037 = vst [vmem:[#allocation36_spill] sm:$0xff] %v5270_v17  ;;  %v2203_v63 = vmul.f32 %v5089_v57, %v5270_v17  ;;  %v5279_v48 = vsel %vm297_vm2, %v1959_v27, 0.0  ;;  %v1896_v59 = vadd.f32 %v3283_v16, %v5056_v2  ;;  %v1888_v6 = vadd.f32 %v5056_v2, %v1887_v1 }
 0x505   :  { %6038 = vst [vmem:[#allocation41_spill] sm:$0xff] %v5273_v9  ;;  %v2179_v54 = vadd.f32 %v2163_v8, %v2143_v29  ;;  %v1992_v61 = vmul.f32 %v5045_v15, %v5279_v48  ;;  %v2125_v33 = vmul.f32 %v5086_v60, %v5279_v48  ;;  %v1899_v37 = vadd.f32 %v3284_v25, %v5056_v2 }
 0x506   :  { %v1928_v36 = vmax.f32 %v1896_v59, 0.0  ;;  %v1926_v58 = vmax.f32 %v1888_v6, 0.0  ;;  %v1891_v17 = vadd.f32 %v5056_v2, %v1890_v47  ;;  %v2100_v27 = vadd.f32 %v2085_v52, %v5145_v50 }
 0x507   :  { %v5290_v9 = vadd.f32 %v2203_v63, %v2179_v54  ;;  %v2141_v16 = vadd.f32 %v2125_v33, %v2102_v40  ;;  %v2161_v1 = vmul.f32 %v5071_v41, %v5212_v35  ;;  %v1929_v8 = vmax.f32 %v1899_v37, 0.0 }
 0x508   :  { %v2026_v29 = vmul.f32 %v5048_v22, %v5212_v35  ;;  %v5296_v12 = vmin.f32 %v1928_v36, 6.0  ;;  %v1942_v51 = vmin.f32 %v1926_v58, 6.0  ;;  %v2138_v25 = vadd.f32 %v5136_v11, %v2099_v28 }
 0x509   :  { %6039 = vst [vmem:[#allocation33_spill] sm:$0xff] %v5290_v9  ;;  %v5301_v6 = vmul.f32 %v5080_v46, %v5200_v44  ;;  %v5303_v50 = vadd.f32 %v2161_v1, %v2141_v16  ;;  %v5305_v52 = vmin.f32 %v1929_v8, 6.0  ;;  %v2139_v40 = vadd.f32 %v5164_v21, %v2100_v27 }
 0x50a   :  { %6040 = vst [vmem:[#allocation42_spill] sm:$0xff] %v5296_v12  ;;  %v5308_v63 = vadd.f32 %v2026_v29, %v1992_v61  ;;  %v1963_v54 = vrot.slane %v5296_v12, 7  ;;  %v1927_v33 = vmax.f32 %v1891_v17, 0.0  ;;  %v2030_v11 = vmul.f32 %v5048_v22, %v5296_v12 }
 0x50b   :  { %6041 = vst [vmem:[#allocation31_spill] sm:$0xff] %v5301_v6  ;;  %6042 = vst [vmem:[#allocation43_spill] sm:$0xff] %v5305_v52  ;;  %v1961_v44 = vrot.slane %v1942_v51, 7  ;;  %v2057_v28 = vrot.slane %v1942_v51, 1  ;;  %v5316_v58 = vmul.f32 %v5089_v57, %v5140_v56  ;;  %v5325_v17 = vmul.f32 %v5071_v41, %v5296_v12 }
 0x50c   :  { %v5320_v21 = vsel %vm297_vm2, %v1963_v54, 0.0  ;;  %v1964_v27 = vrot.slane %v5305_v52, 7  ;;  %v2028_v29 = vmul.f32 %v5048_v22, %v1942_v51  ;;  %v2031_v6 = vmul.f32 %v5048_v22, %v5305_v52 }
 0x50d   :  { %v3287_v47 = vpop.f32.mrb[44].mxu0  ;;  %6043 = vst [vmem:[#allocation38_spill] sm:$0xff] %v5320_v21  ;;  %6044 = vst [vmem:[#allocation45_spill] sm:$0xff] %v5325_v17  ;;  %v1996_v1 = vmul.f32 %v5045_v15, %v5320_v21  ;;  %v1975_v8 = vsel %vm297_vm2, %v1961_v44, 0.0  ;;  %v2071_v54 = vsel %vm296_vm1, %v2057_v28, 0.0  ;;  %v2164_v17 = vmul.f32 %v5071_v41, %v1942_v51 }
 0x50e   :  { %v1903_v37 = vpop.f32.mrb[45].mxu0  ;;  %v1994_v61 = vmul.f32 %v5045_v15, %v1975_v8  ;;  %v2128_v59 = vmul.f32 %v5086_v60, %v1975_v8  ;;  %v5342_v12 = vmul.f32 %v5086_v60, %v5320_v21  ;;  %v5346_v44 = vsel %vm297_vm2, %v1964_v27, 0.0 }
 0x50f   :  { %v3288_v36 = vpop.f32.mrb[46].mxu0  ;;  %6046 = vst [vmem:[#allocation44_spill] sm:$0xff] %v5346_v44  ;;  %v5349_v28 = vmin.f32 %v1927_v33, 6.0  ;;  %v2090_v8 = vmul.f32 %v5061_v43, %v2071_v54  ;;  %v2204_v4 = vmul.f32 %v5089_v57, %v2071_v54  ;;  %v5354_v24 = vadd.f32 %v2030_v11, %v1996_v1 }
 0x510   :  { %v1906_v16 = vpop.f32.mrb[47].mxu0  ;;  %6045 = vst [vmem:[#allocation48_spill] sm:$0xff] %v5342_v12  ;;  %v2043_v45 = vadd.f32 %v2028_v29, %v1994_v61  ;;  %v2144_v51 = vadd.f32 %v2128_v59, %v5092_v3  ;;  %v1997_v12 = vmul.f32 %v5045_v15, %v5346_v44  ;;  %v5360_v27 = vmul.f32 %v5071_v41, %v5305_v52 }
 0x511   :  { %v1962_v9 = vrot.slane %v5349_v28, 7  ;;  %v5365_v61 = vmul.f32 %v5086_v60, %v5346_v44  ;;  %v2029_v3 = vmul.f32 %v5048_v22, %v5349_v28  ;;  %v1912_v59 = vadd.f32 %v3287_v47, %v5056_v2 }
 0x512   :  { %6047 = vst [vmem:[#allocation47_spill] sm:$0xff] %v5360_v27  ;;  %v2105_v33 = vadd.f32 %v2090_v8, %v2043_v45  ;;  %v1904_v1 = vadd.f32 %v5056_v2, %v1903_v37  ;;  %v1915_v29 = vadd.f32 %v3288_v36, %v5056_v2  ;;  %v1907_v54 = vadd.f32 %v5056_v2, %v1906_v16 }
 0x513   :  { %6048 = vst [vmem:[#allocation46_spill] sm:$0xff] %v5365_v61  ;;  %v5372_v11 = vsel %vm297_vm2, %v1962_v9, 0.0  ;;  %v2180_v45 = vadd.f32 %v2164_v17, %v2144_v51  ;;  %v1932_v27 = vmax.f32 %v1912_v59, 0.0  ;;  %v2174_v9 = vadd.f32 %v5117_v34, %v2138_v25 }
 0x514   :  { %v1995_v8 = vmul.f32 %v5045_v15, %v5372_v11  ;;  %v2129_v44 = vmul.f32 %v5086_v60, %v5372_v11  ;;  %v1930_v61 = vmax.f32 %v1904_v1, 0.0  ;;  %v1933_v47 = vmax.f32 %v1915_v29, 0.0 }
 0x515   :  { %v1931_v52 = vmax.f32 %v1907_v54, 0.0  ;;  %v2165_v37 = vmul.f32 %v5071_v41, %v5349_v28  ;;  %v5384_v36 = vmin.f32 %v1932_v27, 6.0  ;;  %v2175_v2 = vadd.f32 %v5155_v13, %v2139_v40 }
 0x516   :  { %v2145_v21 = vadd.f32 %v2129_v44, %v2105_v33  ;;  %v5388_v16 = vmin.f32 %v1930_v61, 6.0  ;;  %v5390_v51 = vmin.f32 %v1933_v47, 6.0  ;;  %v2213_v59 = vadd.f32 %v5210_v26, %v5196_v38 }
 0x517   :  { %v5394_v1 = vadd.f32 %v2031_v6, %v1997_v12  ;;  %v1967_v25 = vrot.slane %v5384_v36, 7  ;;  %v2063_v44 = vrot.slane %v5384_v36, 1  ;;  %v5400_v27 = vadd.f32 %v2204_v4, %v2180_v45 }
 0x518   :  { %6049 = vst [vmem:[#allocation51_spill] sm:$0xff] %v5390_v51  ;;  %v5396_v34 = vadd.f32 %v2165_v37, %v2145_v21  ;;  %v5402_v13 = vadd.f32 %v2029_v3, %v1995_v8  ;;  %v1965_v40 = vrot.slane %v5388_v16, 7  ;;  %v5405_v33 = vmin.f32 %v1931_v52, 6.0 }
 0x519   :  { %v5409_v61 = vsel %vm297_vm2, %v1967_v25, 0.0  ;;  %v2034_v12 = vmul.f32 %v5048_v22, %v5384_v36  ;;  %v5415_v38 = vsel %vm296_vm1, %v2063_v44, 0.0  ;;  %v2113_v4 = vrot.slane %v5390_v51, 7 }
 0x51a   :  { %6050 = vst [vmem:[#allocation50_spill] sm:$0xff] %v5415_v38  ;;  %v2000_v26 = vmul.f32 %v5045_v15, %v5409_v61  ;;  %v5422_v6 = vmul.f32 %v5071_v41, %v5384_v36  ;;  %v5426_v52 = vsel %vm297_vm2, %v1965_v40, 0.0  ;;  %v2032_v21 = vmul.f32 %v5048_v22, %v5388_v16 }
 0x51b   :  { %v1998_v3 = vmul.f32 %v5045_v15, %v5426_v52  ;;  %v5435_v54 = vmul.f32 %v5071_v41, %v5388_v16  ;;  %v5439_v45 = vsel %vm297_vm2, %v2113_v4, 0.0  ;;  %v5443_v47 = vmul.f32 %v5086_v60, %v5409_v61 }
 0x51c   :  { %6051 = vst [vmem:[#allocation52_spill] sm:$0xff] %v5422_v6  ;;  %6052 = vst [vmem:[#allocation49_spill] sm:$0xff] %v5439_v45  ;;  %v2049_v8 = vadd.f32 %v2034_v12, %v2000_v26  ;;  %v2096_v37 = vmul.f32 %v5061_v43, %v5415_v38  ;;  %v2189_v25 = vrot.slane %v5390_v51, 1  ;;  %v5450_v44 = vmul.f32 %v5086_v60, %v5426_v52 }
 0x51d   :  { %v2135_v40 = vmul.f32 %v5086_v60, %v5439_v45  ;;  %v2171_v4 = vmul.f32 %v5071_v41, %v5390_v51  ;;  %v1966_v12 = vrot.slane %v5405_v33, 7  ;;  %v5457_v26 = vadd.f32 %v2032_v21, %v1998_v3 }
 0x51e   :  { %v2111_v29 = vadd.f32 %v2096_v37, %v2049_v8  ;;  %v5461_v17 = vsel %vm296_vm1, %v2189_v25, 0.0  ;;  %v2033_v38 = vmul.f32 %v5048_v22, %v5405_v33  ;;  %v2214_v51 = vadd.f32 %v5316_v58, %v2174_v9 }
 0x51f   :  { %v5467_v6 = vsel %vm297_vm2, %v1966_v12, 0.0  ;;  %v2232_v21 = vmul.f32 %v5077_v14, %v5171_v30  ;;  %v2211_v8 = vmul.f32 %v5089_v57, %v5461_v17  ;;  %v2233_v22 = vmul.f32 %v5077_v14, %v5111_v55 }
 0x520   :  { %v2151_v3 = vadd.f32 %v2135_v40, %v2111_v29  ;;  %v1999_v37 = vmul.f32 %v5045_v15, %v5467_v6  ;;  %v5481_v25 = vmul.f32 %v5086_v60, %v5467_v6  ;;  %v2249_v58 = vadd.f32 %v5175_v5, %v2214_v51 }
 0x521   :  { %v2247_v12 = vadd.f32 %v2232_v21, %v5191_v18  ;;  %v2267_v30 = vmul.f32 %v5080_v46, %v5128_v31  ;;  %v2248_v29 = vadd.f32 %v2233_v22, %v2213_v59  ;;  %v2268_v40 = vmul.f32 %v5080_v46, %v5074_v39  ;;  %v5500_v31 = vld [vmem:[%s5752_s10 + $0x1] ss:$0 sm:$0xff] }
 0x522   :  { %v2187_v9 = vadd.f32 %v2171_v4, %v2151_v3  ;;  %v2302_v15 = vmul.f32 %v5097_v62, %v5189_v42  ;;  %v2303_v60 = vmul.f32 %v5097_v62, %v5140_v56  ;;  %v2215_v45 = vadd.f32 %v5167_v7, %v2175_v2 }
 0x523   :  { %v2282_v55 = vadd.f32 %v2267_v30, %v2247_v12  ;;  %v2284_v18 = vadd.f32 %v5158_v23, %v2249_v58  ;;  %v2283_v51 = vadd.f32 %v2268_v40, %v2248_v29  ;;  %v6053_v39 = vrot.slane %v5212_v35, 1 }
 0x524   :  { %v5495_v5 = vadd.f32 %v2211_v8, %v2187_v9  ;;  %v2200_v56 = vmul.f32 %v5089_v57, %v5235_v20  ;;  %v2250_v7 = vadd.f32 %v5255_v0, %v2215_v45  ;;  %v2236_v8 = vmul.f32 %v5077_v14, %v5279_v48  ;;  %v6054_v9 = vld [vmem:[#allocation37_spill] sm:$0xff] }
 0x525   :  { %v2069_v42 = vsel %vm296_vm1, %v6053_v39, 0.0  ;;  %v2317_v59 = vadd.f32 %v2302_v15, %v2282_v55  ;;  %v2319_v23 = vadd.f32 %v5194_v53, %v2284_v18  ;;  %v2318_v4 = vadd.f32 %v2303_v60, %v2283_v51 }
 0x526   :  { %v2088_v2 = vmul.f32 %v5061_v43, %v2069_v42  ;;  %v2201_v21 = vmul.f32 %v5089_v57, %v2069_v42  ;;  %v2216_v3 = vadd.f32 %v2200_v56, %v5259_v10  ;;  %v2285_v12 = vadd.f32 %v5242_v32, %v2250_v7 }
 0x527   :  { %v2337_v22 = vadd.f32 %v5500_v31, %v2317_v59  ;;  %v2339_v20 = vadd.f32 %v5500_v31, %v2319_v23  ;;  %v2338_v53 = vadd.f32 %v5500_v31, %v2318_v4  ;;  %v2237_v58 = vmul.f32 %v5077_v14, %v5216_v49  ;;  %v6056_v59 = vld [vmem:[#allocation34_spill] sm:$0xff]  ;;  %v6057_v23 = vld [vmem:[#allocation32_spill] sm:$0xff]  ;;  %v6058_v4 = vld [vmem:[#allocation33_spill] sm:$0xff] }
 0x528   :  { %v2103_v0 = vadd.f32 %v2088_v2, %v5308_v63  ;;  %v2217_v45 = vadd.f32 %v2201_v21, %v5303_v50  ;;  %v2251_v30 = vadd.f32 %v2236_v8, %v2216_v3  ;;  %v2320_v29 = vadd.f32 %v6054_v9, %v2285_v12  ;;  %v6055_v63 = vld [vmem:[#allocation40_spill] sm:$0xff]  ;;  %v6059_v21 = vld [vmem:[#allocation30_spill] sm:$0xff]  ;;  %v6060_v12 = vld [vmem:[#allocation25_spill] sm:$0xff] }
 0x529   :  { %v2353_v10 = vmax.f32 %v2337_v22, 0.0  ;;  %v2355_v48 = vmax.f32 %v2339_v20, 0.0  ;;  %v2271_v40 = vmul.f32 %v5080_v46, %v5212_v35  ;;  %v5526_v32 = vadd.f32 %v2033_v38, %v1999_v37 }
 0x52a   :  { %v2354_v15 = vmax.f32 %v2338_v53, 0.0  ;;  %v2252_v55 = vadd.f32 %v2237_v58, %v2217_v45  ;;  %v2272_v60 = vmul.f32 %v5080_v46, %v6055_v63  ;;  %v2340_v50 = vadd.f32 %v5500_v31, %v2320_v29  ;;  %v6061_v58 = vld [vmem:[#allocation35_spill] sm:$0xff] }
 0x52b   :  { %v2369_v18 = vmin.f32 %v2353_v10, 6.0  ;;  %v2286_v51 = vadd.f32 %v2271_v40, %v2251_v30  ;;  %v2306_v49 = vmul.f32 %v5097_v62, %v2069_v42  ;;  %v2307_v7 = vmul.f32 %v5097_v62, %v6056_v59 }
 0x52c   :  { %v2370_v39 = vmin.f32 %v2354_v15, 6.0  ;;  %v2287_v56 = vadd.f32 %v2272_v60, %v2252_v55  ;;  %v2142_v35 = vadd.f32 %v6057_v23, %v2103_v0  ;;  %v2356_v38 = vmax.f32 %v2340_v50, 0.0 }
 0x52d   :  { %v2371_v37 = vmin.f32 %v2355_v48, 6.0  ;;  %v2321_v2 = vadd.f32 %v2306_v49, %v2286_v51  ;;  %v2254_v3 = vadd.f32 %v6059_v21, %v6058_v4  ;;  %v2202_v42 = vmul.f32 %v5089_v57, %v6056_v59  ;;  %v6063_v48 = vld [vmem:[#allocation42_spill] sm:$0xff]  ;;  %v6067_v59 = vld [vmem:[#allocation36_spill] sm:$0xff] }
 0x52e   :  { %v2385_v8 = vpack.c.bf16 %v2370_v39, %v2369_v18  ;;  %v2322_v22 = vadd.f32 %v2307_v7, %v2287_v56  ;;  %v2178_v20 = vadd.f32 %v6060_v12, %v2142_v35  ;;  %v2372_v53 = vmin.f32 %v2356_v38, 6.0  ;;  %v6065_v18 = vld [vmem:[#allocation39_spill] sm:$0xff]  ;;  %v6066_v39 = vld [vmem:[#allocation41_spill] sm:$0xff] }
 0x52f   :  { %v2341_v45 = vadd.f32 %v5500_v31, %v2321_v2  ;;  %v2289_v30 = vadd.f32 %v6061_v58, %v2254_v3  ;;  %v6062_v0 = vrot.slane %v5349_v28, 1  ;;  %v6064_v40 = vrot.slane %v6063_v48, 1  ;;  %v6068_v3 = vld [vmem:[#allocation31_spill] sm:$0xff] }
 0x530   :  { %3305 = vmatprep.mubr.bf16.mxu1 %v2385_v8  ;;  %v2342_v9 = vadd.f32 %v5500_v31, %v2322_v22  ;;  %v2218_v29 = vadd.f32 %v2202_v42, %v2178_v20  ;;  %v2386_v63 = vpack.c.bf16 %v2372_v53, %v2371_v37  ;;  %v2308_v7 = vmul.f32 %v5097_v62, %v6067_v59  ;;  %v6069_v53 = vld [vmem:[#allocation38_spill] sm:$0xff] }
 0x531   :  { %v2072_v10 = vsel %vm296_vm1, %v6062_v0, 0.0  ;;  %v2073_v15 = vsel %vm296_vm1, %v6064_v40, 0.0  ;;  %v2357_v60 = vmax.f32 %v2341_v45, 0.0  ;;  %v2324_v50 = vadd.f32 %v6065_v18, %v2289_v30  ;;  %v6070_v40 = vld [vmem:[#allocation43_spill] sm:$0xff] }
 0x532   :  { %v2091_v55 = vmul.f32 %v5061_v43, %v2072_v10  ;;  %v2092_v51 = vmul.f32 %v5061_v43, %v2073_v15  ;;  %v2358_v49 = vmax.f32 %v2342_v9, 0.0  ;;  %v2253_v56 = vadd.f32 %v6066_v39, %v2218_v29  ;;  %3306 = vmatmul.mubr.bf16.vlgmr.msra.gmra.mrb[32].mxu1 %v2386_v63 }
 0x533   :  { %v2205_v23 = vmul.f32 %v5089_v57, %v2072_v10  ;;  %v2373_v35 = vmin.f32 %v2357_v60, 6.0  ;;  %v2344_v38 = vadd.f32 %v5500_v31, %v2324_v50  ;;  %v2240_v12 = vmul.f32 %v5077_v14, %v5372_v11 }
 0x534   :  { %v2106_v2 = vadd.f32 %v2091_v55, %v5402_v13  ;;  %v2107_v37 = vadd.f32 %v2092_v51, %v5354_v24  ;;  %v2374_v4 = vmin.f32 %v2358_v49, 6.0  ;;  %v2288_v8 = vadd.f32 %v6068_v3, %v2253_v56  ;;  %v6074_v56 = vld [vmem:[#allocation46_spill] sm:$0xff]  ;;  %v6075_v3 = vld [vmem:[#allocation45_spill] sm:$0xff] }
 0x535   :  { %v2221_v22 = vadd.f32 %v2205_v23, %v5396_v34  ;;  %v2360_v20 = vmax.f32 %v2344_v38, 0.0  ;;  %v2206_v42 = vmul.f32 %v5089_v57, %v2073_v15  ;;  %v2241_v45 = vmul.f32 %v5077_v14, %v6069_v53 }
 0x536   :  { %v2275_v30 = vmul.f32 %v5080_v46, %v5349_v28  ;;  %v2387_v13 = vpack.c.bf16 %v2374_v4, %v2373_v35  ;;  %v2323_v0 = vadd.f32 %v2308_v7, %v2288_v8  ;;  %v2255_v24 = vadd.f32 %v2240_v12, %v5400_v27 }
 0x537   :  { %v2276_v9 = vmul.f32 %v5080_v46, %v6063_v48  ;;  %v2376_v34 = vmin.f32 %v2360_v20, 6.0  ;;  %v2256_v29 = vadd.f32 %v2241_v45, %v2221_v22  ;;  %v2310_v11 = vmul.f32 %v5097_v62, %v2072_v10  ;;  %v6073_v10 = vld [vmem:[#allocation48_spill] sm:$0xff]  ;;  %v6076_v22 = vld [vmem:[#allocation47_spill] sm:$0xff] }
 0x538   :  { %v6071_v55 = vrot.slane %v6070_v40, 1  ;;  %3309 = vmatprep.mubr.bf16.mxu1 %v2387_v13  ;;  %v2343_v60 = vadd.f32 %v5500_v31, %v2323_v0  ;;  %v2290_v28 = vadd.f32 %v2275_v30, %v2255_v24  ;;  %v6072_v50 = vrot.slane %v5388_v16, 1  ;;  %v6077_v45 = vld [vmem:[#allocation44_spill] sm:$0xff] }
 0x539   :  { %v2291_v51 = vadd.f32 %v2276_v9, %v2256_v29  ;;  %v2311_v49 = vmul.f32 %v5097_v62, %v2073_v15  ;;  %v2146_v39 = vadd.f32 %v6073_v10, %v2106_v2  ;;  %v2147_v59 = vadd.f32 %v6074_v56, %v2107_v37 }
 0x53a   :  { %v2074_v63 = vsel %vm296_vm1, %v6071_v55, 0.0  ;;  %v2075_v27 = vsel %vm296_vm1, %v6072_v50, 0.0  ;;  %v2359_v7 = vmax.f32 %v2343_v60, 0.0  ;;  %v2325_v23 = vadd.f32 %v2310_v11, %v2290_v28 }
 0x53b   :  { %v2093_v48 = vmul.f32 %v5061_v43, %v2074_v63  ;;  %v2094_v35 = vmul.f32 %v5061_v43, %v2075_v27  ;;  %v2326_v4 = vadd.f32 %v2311_v49, %v2291_v51  ;;  %v2182_v8 = vadd.f32 %v6075_v3, %v2146_v39 }
 0x53c   :  { %v2183_v12 = vadd.f32 %v6076_v22, %v2147_v59  ;;  %v2207_v20 = vmul.f32 %v5089_v57, %v2074_v63  ;;  %v2375_v53 = vmin.f32 %v2359_v7, 6.0  ;;  %v2345_v15 = vadd.f32 %v5500_v31, %v2325_v23 }
 0x53d   :  { %v2108_v38 = vadd.f32 %v2093_v48, %v5394_v1  ;;  %v2109_v2 = vadd.f32 %v2094_v35, %v5457_v26  ;;  %v2242_v37 = vmul.f32 %v5077_v14, %v6077_v45  ;;  %v2346_v30 = vadd.f32 %v5500_v31, %v2326_v4  ;;  %v6080_v45 = vld [vmem:[#allocation50_spill] sm:$0xff] }
 0x53e   :  { %v2222_v13 = vadd.f32 %v2206_v42, %v2182_v8  ;;  %v2223_v0 = vadd.f32 %v2207_v20, %v2183_v12  ;;  %v2243_v1 = vmul.f32 %v5077_v14, %v5426_v52  ;;  %v2388_v24 = vpack.c.bf16 %v2376_v34, %v2375_v53 }
 0x53f   :  { %v2361_v9 = vmax.f32 %v2345_v15, 0.0  ;;  %v2277_v29 = vmul.f32 %v5080_v46, %v6070_v40  ;;  %v2278_v11 = vmul.f32 %v5080_v46, %v5388_v16  ;;  %v2362_v55 = vmax.f32 %v2346_v30, 0.0 }
 0x540   :  { %v2257_v26 = vadd.f32 %v2242_v37, %v2222_v13  ;;  %v2258_v60 = vadd.f32 %v2243_v1, %v2223_v0  ;;  %v2312_v28 = vmul.f32 %v5097_v62, %v2074_v63  ;;  %3310 = vmatmul.mubr.bf16.gmra.mrb[36].mxu1 %v2388_v24  ;;  %v2313_v42 = vmul.f32 %v5097_v62, %v2075_v27  ;;  %v6081_v37 = vld [vmem:[#allocation49_spill] sm:$0xff] }
 0x541   :  { %v2377_v50 = vmin.f32 %v2361_v9, 6.0  ;;  %v6078_v48 = vrot.slane %v5405_v33, 1  ;;  %v2148_v34 = vadd.f32 %v5450_v44, %v2108_v38  ;;  %v2378_v40 = vmin.f32 %v2362_v55, 6.0 }
 0x542   :  { %v2292_v51 = vadd.f32 %v2277_v29, %v2257_v26  ;;  %v2293_v49 = vadd.f32 %v2278_v11, %v2258_v60  ;;  %v2169_v10 = vmul.f32 %v5071_v41, %v5405_v33  ;;  %v2208_v63 = vmul.f32 %v5089_v57, %v2075_v27  ;;  %v6082_v29 = vld [vmem:[#allocation51_spill] sm:$0xff] }
 0x543   :  { %v2076_v52 = vsel %vm296_vm1, %v6078_v48, 0.0  ;;  %v2149_v39 = vadd.f32 %v5481_v25, %v2109_v2  ;;  %v2184_v56 = vadd.f32 %v5435_v54, %v2148_v34  ;;  %v2389_v59 = vpack.c.bf16 %v2378_v40, %v2377_v50 }
 0x544   :  { %v2095_v16 = vmul.f32 %v5061_v43, %v2076_v52  ;;  %v2327_v7 = vadd.f32 %v2312_v28, %v2292_v51  ;;  %v2328_v19 = vadd.f32 %v2313_v42, %v2293_v49  ;;  %v2209_v35 = vmul.f32 %v5089_v57, %v2076_v52 }
 0x545   :  { %v2185_v44 = vadd.f32 %v2169_v10, %v2149_v39  ;;  %v2224_v38 = vadd.f32 %v2208_v63, %v2184_v56  ;;  %v2244_v43 = vmul.f32 %v5077_v14, %v5467_v6  ;;  %3313 = vmatprep.mubr.bf16.mxu1 %v2389_v59  ;;  %v2245_v54 = vmul.f32 %v5077_v14, %v5409_v61  ;;  %v6079_v61 = vld [vmem:[#allocation52_spill] sm:$0xff] }
 0x546   :  { %v2110_v23 = vadd.f32 %v2095_v16, %v5526_v32  ;;  %v2347_v41 = vadd.f32 %v5500_v31, %v2327_v7  ;;  %v2348_v27 = vadd.f32 %v5500_v31, %v2328_v19  ;;  %v2279_v25 = vmul.f32 %v5080_v46, %v5405_v33  ;;  %v2999_v63 = vld [vmem:[%s5754_s12 + $0x1] ss:$0 sm:$0xff] }
 0x547   :  { %v2225_v4 = vadd.f32 %v2209_v35, %v2185_v44  ;;  %v2259_v32 = vadd.f32 %v2244_v43, %v2224_v38  ;;  %v2280_v3 = vmul.f32 %v5080_v46, %v5384_v36  ;;  %v2314_v12 = vmul.f32 %v5097_v62, %v2076_v52 }
 0x548   :  { %v2150_v8 = vadd.f32 %v5443_v47, %v2110_v23  ;;  %v2363_v22 = vmax.f32 %v2347_v41, 0.0  ;;  %v2364_v6 = vmax.f32 %v2348_v27, 0.0  ;;  %v2262_v20 = vadd.f32 %v6059_v21, %v5495_v5 }
 0x549   :  { %v2260_v53 = vadd.f32 %v2245_v54, %v2225_v4  ;;  %v2294_v15 = vadd.f32 %v2279_v25, %v2259_v32  ;;  %v2210_v33 = vmul.f32 %v5089_v57, %v6080_v45  ;;  %v2246_v30 = vmul.f32 %v5077_v14, %v6081_v37 }
 0x54a   :  { %v2186_v2 = vadd.f32 %v6079_v61, %v2150_v8  ;;  %v2379_v36 = vmin.f32 %v2363_v22, 6.0  ;;  %v2380_v13 = vmin.f32 %v2364_v6, 6.0  ;;  %v2297_v47 = vadd.f32 %v6061_v58, %v2262_v20 }
 0x54b   :  { %v2295_v0 = vadd.f32 %v2280_v3, %v2260_v53  ;;  %v2315_v1 = vmul.f32 %v5097_v62, %v6080_v45  ;;  %v2329_v24 = vadd.f32 %v2314_v12, %v2294_v15  ;;  %v2281_v11 = vmul.f32 %v5080_v46, %v6082_v29  ;;  %v2796_v29 = vld [vmem:[%s5757_s15] sm:$0xff] }
 0x54c   :  { %v2226_v5 = vadd.f32 %v2210_v33, %v2186_v2  ;;  %v2390_v21 = vpack.c.bf16 %v2380_v13, %v2379_v36  ;;  %v2332_v9 = vadd.f32 %v6065_v18, %v2297_v47  ;;  %v2316_v58 = vmul.f32 %v5097_v62, %v5461_v17  ;;  %v3472_v62 = vld [vmem:[%s5755_s13 + $0x30] sm:$0xff]   ;;  %v3473_v17 = vld [vmem:[%s5755_s13 + $0x38] sm:$0xff]  }
 0x54d   :  { %v2330_v57 = vadd.f32 %v2315_v1, %v2295_v0  ;;  %v2349_v55 = vadd.f32 %v5500_v31, %v2329_v24  ;;  %3333 = vmatprep.subr.bf16.mxu0 %v3472_v62 }
 0x54e   :  { %v2261_v14 = vadd.f32 %v2246_v30, %v2226_v5  ;;  %3314 = vmatmul.mubr.bf16.gmra.mrb[40].mxu1 %v2390_v21  ;;  %v2352_v50 = vadd.f32 %v5500_v31, %v2332_v9  ;;  %3334 = vmatpush3.bf16.msra.mxu0 %v3472_v62  ;;  %v2809_v62 = vld [vmem:[%s5757_s15 + $0x68] sm:$0xff] }
 0x54f   :  { %v2350_v26 = vadd.f32 %v5500_v31, %v2330_v57  ;;  %v2365_v60 = vmax.f32 %v2349_v55, 0.0  ;;  %3335 = vmatprep.subr.bf16.mxu0 %v3473_v17  ;;  %v3498_v57 = vmov 0.0|0.0  }
 0x550   :  { %v2296_v28 = vadd.f32 %v2281_v11, %v2261_v14  ;;  %v2368_v34 = vmax.f32 %v2352_v50, 0.0  ;;  %v2797_v11 = vld [vmem:[%s5757_s15 + $0x8] sm:$0xff]  ;;  %3388 = vmatprep.subr.bf16.mxu1 %v3498_v57  ;;  %v2798_v14 = vld [vmem:[%s5757_s15 + $0x10] sm:$0xff] }
 0x551   :  { %v2366_v42 = vmax.f32 %v2350_v26, 0.0  ;;  %v2381_v18 = vmin.f32 %v2365_v60, 6.0  ;;  %v3389_v55 = vpack.c.bf16 %v2797_v11, %v2796_v29  ;;  %v2800_v60 = vld [vmem:[%s5757_s15 + $0x20] sm:$0xff] }
 0x552   :  { %v2331_v48 = vadd.f32 %v2316_v58, %v2296_v28  ;;  %v2384_v16 = vmin.f32 %v2368_v34, 6.0  ;;  %3336 = vmatpush3.bf16.msra.mxu0 %v3473_v17  ;;  %v2799_v58 = vld [vmem:[%s5757_s15 + $0x18] sm:$0xff]  ;;  %v2801_v28 = vld [vmem:[%s5757_s15 + $0x28] sm:$0xff]  ;;  %v2806_v34 = vld [vmem:[%s5757_s15 + $0x50] sm:$0xff] }
 0x553   :  { %v2382_v52 = vmin.f32 %v2366_v42, 6.0  ;;  %3390 = vmatpush3.bf16.msra.mxu1 %v3389_v55  ;;  %v3392_v26 = vpack.c.bf16 %v2799_v58, %v2798_v14  ;;  %v3395_v50 = vpack.c.bf16 %v2801_v28, %v2800_v60  ;;  %v2802_v42 = vld [vmem:[%s5757_s15 + $0x30] sm:$0xff] }
 0x554   :  { %v2351_v46 = vadd.f32 %v5500_v31, %v2331_v48  ;;  %3391 = vmatprep.subr.bf16.mxu1 %v3498_v57  ;;  %v2803_v48 = vld [vmem:[%s5757_s15 + $0x38] sm:$0xff] }
 0x555   :  { %v2391_v40 = vpack.c.bf16 %v2382_v52, %v2381_v18  ;;  %v3398_v18 = vpack.c.bf16 %v2803_v48, %v2802_v42  ;;  %v2804_v52 = vld [vmem:[%s5757_s15 + $0x40] sm:$0xff] }
 0x556   :  { %v2367_v51 = vmax.f32 %v2351_v46, 0.0  ;;  %v2805_v46 = vld [vmem:[%s5757_s15 + $0x48] sm:$0xff] }
 0x557   :  { %3317 = vmatprep.mubr.bf16.mxu1 %v2391_v40  ;;  %3393 = vmatpush3.bf16.msra.mxu1 %v3392_v26  ;;  %v3401_v40 = vpack.c.bf16 %v2805_v46, %v2804_v52 }
 0x558   :  { %v2383_v49 = vmin.f32 %v2367_v51, 6.0  ;;  %3394 = vmatprep.subr.bf16.mxu1 %v3498_v57  ;;  %v2807_v51 = vld [vmem:[%s5757_s15 + $0x58] sm:$0xff] }
 0x55a   :  { %v2392_v10 = vpack.c.bf16 %v2384_v16, %v2383_v49  ;;  %v3500_v49 = vmov 0.0   ;;  %v3404_v16 = vpack.c.bf16 %v2807_v51, %v2806_v34 }
 0x55b   :  { %3396 = vmatpush3.bf16.msra.mxu1 %v3395_v50 }
 0x55c   :  { %3318 = vmatmul.mubr.bf16.gmra.mrb[44].mxu1 %v2392_v10  ;;  %3397 = vmatprep.subr.bf16.mxu1 %v3498_v57  ;;  %v2808_v10 = vld [vmem:[%s5757_s15 + $0x60] sm:$0xff] }
 0x55d   :  { %3385 = vmatprep.mubr.msk.f32.mxu1 %vm3499_vm3, %v3500_v49  ;;  %v3407_v17 = vpack.c.bf16 %v2809_v62, %v2808_v10 }
 0x55f   :  { %3399 = vmatpush3.bf16.msra.mxu1 %v3398_v18 }
 0x560   :  { %3400 = vmatprep.subr.bf16.mxu1 %v3498_v57 }
 0x563   :  { %3402 = vmatpush3.bf16.msra.mxu1 %v3401_v40 }
 0x564   :  { %3403 = vmatprep.subr.bf16.mxu1 %v3498_v57 }
 0x567   :  { %3405 = vmatpush3.bf16.msra.mxu1 %v3404_v16 }
 0x568   :  { %3406 = vmatprep.subr.bf16.mxu1 %v3498_v57 }
 0x56b   :  { %3408 = vmatpush3.bf16.msra.mxu1 %v3407_v17 }
 0x56c   :  { %3409 = vmatprep.subr.bf16.mxu1 %v3498_v57 }
 0x605   :  { %v3307_v31 = vpop.f32.mrb[32].mxu1 }
 0x606   :  { %v2497_v39 = vpop.f32.mrb[33].mxu1  ;;  %v2506_v59 = vadd.f32 %v3307_v31, %v2999_v63  ;;  %v2810_v31 = vld [vmem:[%s5757_s15 + $0x70] sm:$0xff] }
 0x607   :  { %v3308_v56 = vpop.f32.mrb[34].mxu1  ;;  %v2498_v23 = vadd.f32 %v2999_v63, %v2497_v39 }
 0x608   :  { %v2509_v7 = vadd.f32 %v3308_v56, %v2999_v63  ;;  %v2500_v19 = vpop.f32.mrb[35].mxu1  ;;  %v5709_v56 = vld [vmem:[%s5756_s14] ss:$0 sm:$0xff] }
 0x609   :  { %v2501_v44 = vadd.f32 %v2999_v63, %v2500_v19 }
 0x60a   :  { %v2561_v35 = vpack.c.bf16 %v2509_v7, %v2506_v59 }
 0x60b   :  { %v2560_v38 = vpack.c.bf16 %v2501_v44, %v2498_v23 }
 0x60d   :  { %3337 = vmatprep.mubr.bf16.mxu0 %v2560_v38 }
 0x60e   :  { %3338 = vmatmul.mubr.bf16.vlgmr.msra.gmra.mrb[48].mxu0 %v2561_v35 }
 0x613   :  { %v3311_v43 = vpop.f32.mrb[36].mxu1 }
 0x614   :  { %v2513_v41 = vpop.f32.mrb[37].mxu1  ;;  %v2522_v54 = vadd.f32 %v3311_v43, %v2999_v63 }
 0x615   :  { %v3312_v27 = vpop.f32.mrb[38].mxu1  ;;  %v2514_v32 = vadd.f32 %v2999_v63, %v2513_v41 }
 0x616   :  { %v2525_v25 = vadd.f32 %v3312_v27, %v2999_v63  ;;  %v2516_v4 = vpop.f32.mrb[39].mxu1 }
 0x617   :  { %v2517_v3 = vadd.f32 %v2999_v63, %v2516_v4 }
 0x618   :  { %v2563_v8 = vpack.c.bf16 %v2525_v25, %v2522_v54 }
 0x619   :  { %v2562_v22 = vpack.c.bf16 %v2517_v3, %v2514_v32 }
 0x61b   :  { %3341 = vmatprep.mubr.bf16.mxu0 %v2562_v22 }
 0x61c   :  { %3342 = vmatmul.mubr.bf16.gmra.mrb[52].mxu0 %v2563_v8 }
 0x621   :  { %v3315_v6 = vpop.f32.mrb[40].mxu1 }
 0x622   :  { %v2529_v12 = vpop.f32.mrb[41].mxu1  ;;  %v2538_v53 = vadd.f32 %v3315_v6, %v2999_v63 }
 0x623   :  { %v3316_v20 = vpop.f32.mrb[42].mxu1  ;;  %v2530_v2 = vadd.f32 %v2999_v63, %v2529_v12 }
 0x624   :  { %v2541_v15 = vadd.f32 %v3316_v20, %v2999_v63  ;;  %v2532_v61 = vpop.f32.mrb[43].mxu1 }
 0x625   :  { %v2533_v45 = vadd.f32 %v2999_v63, %v2532_v61 }
 0x626   :  { %v2565_v33 = vpack.c.bf16 %v2541_v15, %v2538_v53 }
 0x627   :  { %v2564_v37 = vpack.c.bf16 %v2533_v45, %v2530_v2 }
 0x629   :  { %3345 = vmatprep.mubr.bf16.mxu0 %v2564_v37 }
 0x62a   :  { %3346 = vmatmul.mubr.bf16.gmra.mrb[56].mxu0 %v2565_v33 }
 0x62f   :  { %v3319_v30 = vpop.f32.mrb[44].mxu1 }
 0x630   :  { %v2545_v36 = vpop.f32.mrb[45].mxu1  ;;  %v2554_v47 = vadd.f32 %v3319_v30, %v2999_v63 }
 0x631   :  { %v3320_v13 = vpop.f32.mrb[46].mxu1  ;;  %v2546_v24 = vadd.f32 %v2999_v63, %v2545_v36 }
 0x632   :  { %v2557_v0 = vadd.f32 %v3320_v13, %v2999_v63  ;;  %v2548_v1 = vpop.f32.mrb[47].mxu1 }
 0x633   :  { %v2549_v5 = vadd.f32 %v2999_v63, %v2548_v1  ;;  %v2811_v63 = vld [vmem:[%s5757_s15 + $0x78] sm:$0xff] }
 0x634   :  { %v2567_v21 = vpack.c.bf16 %v2557_v0, %v2554_v47  ;;  %v3410_v39 = vpack.c.bf16 %v2811_v63, %v2810_v31 }
 0x635   :  { %v2566_v9 = vpack.c.bf16 %v2549_v5, %v2546_v24 }
 0x636   :  { %3411 = vmatpush3.bf16.msra.mxu1 %v3410_v39 }
 0x637   :  { %3349 = vmatprep.mubr.bf16.mxu0 %v2566_v9 }
 0x638   :  { %3350 = vmatmul.mubr.bf16.gmra.mrb[60].mxu0 %v2567_v21 }
 0x6e1   :  { %v3339_v59 = vpop.f32.mrb[48].mxu0 }
 0x6e2   :  { %v2673_v7 = vpop.f32.mrb[49].mxu0  ;;  %v2682_v19 = vadd.f32 %v3339_v59, %v5709_v56 }
 0x6e3   :  { %v2674_v23 = vadd.f32 %v5709_v56, %v2673_v7  ;;  %v3340_v44 = vpop.f32.mrb[50].mxu0 }
 0x6e4   :  { %v2676_v35 = vpop.f32.mrb[51].mxu0  ;;  %v2685_v43 = vadd.f32 %v3340_v44, %v5709_v56  ;;  %v2738_v27 = vmax.f32 %v2682_v19, 0.0 }
 0x6e5   :  { %v2736_v38 = vmax.f32 %v2674_v23, 0.0  ;;  %v2677_v41 = vadd.f32 %v5709_v56, %v2676_v35 }
 0x6e6   :  { %v2739_v4 = vmax.f32 %v2685_v43, 0.0  ;;  %v2754_v3 = vmin.f32 %v2738_v27, 6.0 }
 0x6e7   :  { %v2737_v54 = vmax.f32 %v2677_v41, 0.0  ;;  %v2752_v25 = vmin.f32 %v2736_v38, 6.0 }
 0x6e8   :  { %v2755_v22 = vmin.f32 %v2739_v4, 6.0 }
 0x6e9   :  { %v2753_v32 = vmin.f32 %v2737_v54, 6.0 }
 0x6eb   :  { %v2768_v8 = vadd.f32 %v2753_v32, %v2752_v25 }
 0x6ed   :  { %v2769_v6 = vadd.f32 %v2768_v8, %v2754_v3 }
 0x6ef   :  { %v3343_v12 = vpop.f32.mrb[52].mxu0  ;;  %v2770_v53 = vadd.f32 %v2769_v6, %v2755_v22 }
 0x6f0   :  { %v2689_v20 = vpop.f32.mrb[53].mxu0  ;;  %v2698_v15 = vadd.f32 %v3343_v12, %v5709_v56 }
 0x6f1   :  { %v2690_v61 = vadd.f32 %v5709_v56, %v2689_v20  ;;  %v3344_v2 = vpop.f32.mrb[54].mxu0 }
 0x6f2   :  { %v2692_v45 = vpop.f32.mrb[55].mxu0  ;;  %v2701_v37 = vadd.f32 %v3344_v2, %v5709_v56  ;;  %v2742_v36 = vmax.f32 %v2698_v15, 0.0 }
 0x6f3   :  { %v2740_v33 = vmax.f32 %v2690_v61, 0.0  ;;  %v2693_v30 = vadd.f32 %v5709_v56, %v2692_v45 }
 0x6f4   :  { %v2743_v1 = vmax.f32 %v2701_v37, 0.0  ;;  %v2758_v5 = vmin.f32 %v2742_v36, 6.0 }
 0x6f5   :  { %v2756_v13 = vmin.f32 %v2740_v33, 6.0  ;;  %v2741_v47 = vmax.f32 %v2693_v30, 0.0  ;;  %v3017_v30 = vld [vmem:[%s5758_s16] ss:$0 sm:$0xff] }
 0x6f6   :  { %v2759_v9 = vmin.f32 %v2743_v1, 6.0 }
 0x6f7   :  { %v2771_v0 = vadd.f32 %v2770_v53, %v2756_v13  ;;  %v2757_v24 = vmin.f32 %v2741_v47, 6.0 }
 0x6f9   :  { %v2772_v21 = vadd.f32 %v2771_v0, %v2757_v24 }
 0x6fb   :  { %v2773_v29 = vadd.f32 %v2772_v21, %v2758_v5 }
 0x6fd   :  { %v3347_v11 = vpop.f32.mrb[56].mxu0  ;;  %v2774_v57 = vadd.f32 %v2773_v29, %v2759_v9 }
 0x6fe   :  { %v2705_v55 = vpop.f32.mrb[57].mxu0  ;;  %v2714_v14 = vadd.f32 %v3347_v11, %v5709_v56 }
 0x6ff   :  { %v2706_v58 = vadd.f32 %v5709_v56, %v2705_v55  ;;  %v3348_v26 = vpop.f32.mrb[58].mxu0  ;;  %v2775_v44 = vrot.slane %v2774_v57, 4 }
 0x700   :  { %v2708_v60 = vpop.f32.mrb[59].mxu0  ;;  %v2717_v50 = vadd.f32 %v3348_v26, %v5709_v56  ;;  %v2746_v48 = vmax.f32 %v2714_v14, 0.0 }
 0x701   :  { %v2744_v28 = vmax.f32 %v2706_v58, 0.0  ;;  %v2709_v42 = vadd.f32 %v5709_v56, %v2708_v60  ;;  %v2776_v25 = vadd.f32 %v2775_v44, %v2774_v57 }
 0x702   :  { %v2747_v46 = vmax.f32 %v2717_v50, 0.0  ;;  %v2762_v40 = vmin.f32 %v2746_v48, 6.0 }
 0x703   :  { %v2745_v18 = vmax.f32 %v2709_v42, 0.0  ;;  %v2760_v52 = vmin.f32 %v2744_v28, 6.0  ;;  %v2777_v22 = vrot.slane %v2776_v25, 2 }
 0x704   :  { %v2763_v49 = vmin.f32 %v2747_v46, 6.0 }
 0x705   :  { %v2761_v34 = vmin.f32 %v2745_v18, 6.0  ;;  %v2778_v20 = vadd.f32 %v2777_v22, %v2776_v25 }
 0x707   :  { %v2781_v51 = vadd.f32 %v2761_v34, %v2760_v52 }
 0x709   :  { %v2782_v16 = vadd.f32 %v2781_v51, %v2762_v40 }
 0x70b   :  { %v3351_v10 = vpop.f32.mrb[60].mxu0  ;;  %v2783_v17 = vadd.f32 %v2782_v16, %v2763_v49 }
 0x70c   :  { %v2721_v62 = vpop.f32.mrb[61].mxu0  ;;  %v2730_v31 = vadd.f32 %v3351_v10, %v5709_v56 }
 0x70d   :  { %v2722_v63 = vadd.f32 %v5709_v56, %v2721_v62  ;;  %v3352_v39 = vpop.f32.mrb[62].mxu0 }
 0x70e   :  { %v2724_v59 = vpop.f32.mrb[63].mxu0  ;;  %v2733_v19 = vadd.f32 %v3352_v39, %v5709_v56  ;;  %v2750_v35 = vmax.f32 %v2730_v31, 0.0 }
 0x70f   :  { %v2748_v7 = vmax.f32 %v2722_v63, 0.0  ;;  %v2725_v23 = vadd.f32 %v5709_v56, %v2724_v59  ;;  %v2779_v56 = vrot.slane %v2778_v20, 1 }
 0x710   :  { %v2751_v27 = vmax.f32 %v2733_v19, 0.0  ;;  %v2766_v4 = vmin.f32 %v2750_v35, 6.0 }
 0x711   :  { %v2764_v38 = vmin.f32 %v2748_v7, 6.0  ;;  %v2749_v43 = vmax.f32 %v2725_v23, 0.0  ;;  %v2780_v45 = vadd.f32 %v2779_v56, %v2778_v20 }
 0x712   :  { %v2767_v3 = vmin.f32 %v2751_v27, 6.0 }
 0x713   :  { %v2784_v41 = vadd.f32 %v2783_v17, %v2764_v38  ;;  %v2765_v54 = vmin.f32 %v2749_v43, 6.0 }
 0x715   :  { %v2785_v32 = vadd.f32 %v2784_v41, %v2765_v54 }
 0x717   :  { %v2786_v8 = vadd.f32 %v2785_v32, %v2766_v4 }
 0x719   :  { %v2787_v6 = vadd.f32 %v2786_v8, %v2767_v3 }
 0x71b   :  { %v2788_v12 = vrot.slane %v2787_v6, 4 }
 0x71d   :  { %v2789_v53 = vadd.f32 %v2788_v12, %v2787_v6 }
 0x71f   :  { %v2790_v15 = vrot.slane %v2789_v53, 2 }
 0x721   :  { %v2791_v61 = vadd.f32 %v2790_v15, %v2789_v53 }
 0x723   :  { %v2792_v2 = vrot.slane %v2791_v61, 1 }
 0x725   :  { %v2793_v33 = vadd.f32 %v2792_v2, %v2791_v61 }
 0x727   :  { %v2795_v37 = vsel %vm2794_vm4, %v2780_v45, %v2793_v33 }
 0x728   :  { %3386 = vmatmul.mubr.f32.vlgmr.msra.gmra.mrb[48].mxu1 %v2795_v37 }
 0x7fb   :  { %v2885_v36 = vpop.f32.mrb[48].mxu1 }
 0x7fc   :  { %v2886_v13 = vadd.f32 %v3017_v30, %v2885_v36  ;;  %v3387_v47 = vpop.f32.mrb[49].mxu1 }
 0x7fe   :  { %2889 = vst [vmem:[#allocation2] sm:$0x3] %v2886_v13 }
 0x7ff   :  { %3485 = shalt.err (!%p3482_p4)
}
 0x800   :  { %s3486_s27 = scalar_lea.hbm %s5759_s17, 32 }
 0x801   :  { %p3487_p5 = scmp.ne.s32.totalorder %s5759_s17, %s3486_s27  ;;  %p3490_p6 = scmp.lt.u32.totalorder %s3486_s27, %s5759_s17 }
 0x803   :  { %p3492_p7 = pnand %p3490_p6, %p3487_p5 }
 0x805   :  { %3495 = shalt.err (!%p3492_p7)
}
 0x806   :  { %2899 = dma.vmem_to_hbm [thread:$0]  %s2897_s24, 32, %s5759_s17, [#allocation3]  }
 0x807   :  { %3496 = dma.done.wait [#allocation3], 32  }
 0x808   :  { %3497 = vsyncadd [#allocation3], 4294967264 }
 0x809   :  { %2903 = vsyncpa [#allocation3], 1 }

</bundles_post_ra>
